<compile_context>
chip_gen: v7x
topology: tpu7x:2x2x1
jax: 0.10.0
libtpu: 0.0.40
codegen_flags: <defaults>
</compile_context>

<pallas_src>
import numpy as np

import jax
import jax.numpy as jnp
from jax.experimental import pallas as pl
from jax.experimental.pallas import tpu as pltpu


# ----------------------------------------------------------------------------
# Pallas kernels
# ----------------------------------------------------------------------------
def _conv_pool_relu_kernel(p_ref, w_ref, b_ref, o_ref):
    """Fused conv (as im2col matmul) + bias + 2x2 max-pool + ReLU.

    p_ref: (4, R, Kd)  im2col rows, pre-ordered so candidate c of pooled
                       output row r is p_ref[c, r, :]
    w_ref: (Kd, Cout)  conv weight as a matmul matrix
    b_ref: (1, Cout)   bias (constant per channel -> add after the max)
    o_ref: (R, Cout)   pooled + ReLU'd output rows in (n, po, qo) order
    """
    w = w_ref[...]
    acc = jnp.dot(p_ref[0], w, preferred_element_type=jnp.float32)
    for c in range(1, 4):
        acc = jnp.maximum(
            acc, jnp.dot(p_ref[c], w, preferred_element_type=jnp.float32))
    o_ref[...] = jnp.maximum(acc + b_ref[...], 0.0)


def _conv_bias_relu_kernel(p_ref, w_ref, b_ref, o_ref):
    """Fused conv (im2col matmul) + bias + ReLU (no pool)."""
    acc = jnp.dot(p_ref[...], w_ref[...], preferred_element_type=jnp.float32)
    o_ref[...] = jnp.maximum(acc + b_ref[...], 0.0)


def _heads_kernel(e0_ref, e1_ref, m_ref,
                  we0_ref, be0_ref,
                  we1a_ref, be1a_ref, we1b_ref, be1b_ref,
                  wm1_ref, bm1_ref, wm2_ref, bm2_ref,
                  exit0_ref, main_ref, exit1_ref):
    """All five Linear layers of the three heads, fused (weights in VMEM)."""
    f32 = jnp.float32
    exit0_ref[...] = (jnp.dot(e0_ref[...], we0_ref[...],
                              preferred_element_type=f32) + be0_ref[...])
    h = jnp.dot(e1_ref[...], we1a_ref[...],
                preferred_element_type=f32) + be1a_ref[...]
    exit1_ref[...] = (jnp.dot(h, we1b_ref[...],
                              preferred_element_type=f32) + be1b_ref[...])
    g = jnp.dot(m_ref[...], wm1_ref[...],
                preferred_element_type=f32) + bm1_ref[...]
    main_ref[...] = (jnp.dot(g, wm2_ref[...],
                             preferred_element_type=f32) + bm2_ref[...])


# ----------------------------------------------------------------------------
# Pallas wrappers (single full-array VMEM block, grid=(1,))
# ----------------------------------------------------------------------------
_COMPILER_PARAMS = pltpu.CompilerParams(dimension_semantics=("arbitrary",))


def _full_spec(shape):
    n = len(shape)
    return pl.BlockSpec(shape, lambda i, _n=n: (0,) * _n)


def _im2col_nhwc(x, K, pad):
    """x: (N,H,W,C) -> (N,Ho,Wo,K*K*C) patches, column order (ky, kx, c)."""
    N, H, W, C = x.shape
    xp = jnp.pad(x, ((0, 0), (pad, pad), (pad, pad), (0, 0)))
    Ho = H + 2 * pad - K + 1
    Wo = W + 2 * pad - K + 1
    cols = [xp[:, ky:ky + Ho, kx:kx + Wo, :]
            for ky in range(K) for kx in range(K)]
    return jnp.concatenate(cols, axis=-1), Ho, Wo


def _pool_candidate_rows(N, Ho, Wo, pool_pad):
    """Static (4, N*Po*Qo) gather index: candidate (dy,dx) of pooled output
    (n,po,qo) -> flat conv-output row.  PyTorch max_pool2d(2, padding=1)
    -inf padding is reproduced by clamping (every window has >=1 real elem,
    so the max is unchanged)."""
    Po = (Ho + 2 * pool_pad - 2) // 2 + 1
    Qo = (Wo + 2 * pool_pad - 2) // 2 + 1
    idx = np.zeros((4, N * Po * Qo), dtype=np.int32)
    for dy in range(2):
        for dx in range(2):
            cand = dy * 2 + dx
            for n in range(N):
                for po in range(Po):
                    y = min(max(2 * po - pool_pad + dy, 0), Ho - 1)
                    for qo in range(Qo):
                        x = min(max(2 * qo - pool_pad + dx, 0), Wo - 1)
                        idx[cand, (n * Po + po) * Qo + qo] = (n * Ho + y) * Wo + x
    return idx, Po, Qo


def conv_pool_relu_stage(x_nhwc, wmat, bias, *, K, conv_pad, pool_pad):
    """relu(max_pool2d(conv(x), 2, padding=pool_pad)) as ONE pallas_call."""
    N = x_nhwc.shape[0]
    pat, Ho, Wo = _im2col_nhwc(x_nhwc, K, conv_pad)
    Kd = pat.shape[-1]
    idx, Po, Qo = _pool_candidate_rows(N, Ho, Wo, pool_pad)
    R = N * Po * Qo
    cand = pat.reshape(N * Ho * Wo, Kd)[jnp.asarray(idx)]     # (4, R, Kd)
    Cout = wmat.shape[1]
    out = pl.pallas_call(
        _conv_pool_relu_kernel,
        out_shape=jax.ShapeDtypeStruct((R, Cout), jnp.float32),
        grid=(1,),
        in_specs=[_full_spec((4, R, Kd)),
                  _full_spec((Kd, Cout)),
                  _full_spec((1, Cout))],
        out_specs=_full_spec((R, Cout)),
        compiler_params=_COMPILER_PARAMS,
    )(cand, wmat, bias)
    return out.reshape(N, Po, Qo, Cout)                       # NHWC


def conv_relu_stage(x_nhwc, wmat, bias, *, K, conv_pad):
    """relu(conv(x)) as ONE pallas_call (used for conv_b2, which has no pool)."""
    N = x_nhwc.shape[0]
    pat, Ho, Wo = _im2col_nhwc(x_nhwc, K, conv_pad)
    Kd = pat.shape[-1]
    M = N * Ho * Wo
    Cout = wmat.shape[1]
    out = pl.pallas_call(
        _conv_bias_relu_kernel,
        out_shape=jax.ShapeDtypeStruct((M, Cout), jnp.float32),
        grid=(1,),
        in_specs=[_full_spec((M, Kd)),
                  _full_spec((Kd, Cout)),
                  _full_spec((1, Cout))],
        out_specs=_full_spec((M, Cout)),
        compiler_params=_COMPILER_PARAMS,
    )(pat.reshape(M, Kd), wmat, bias)
    return out.reshape(N, Ho, Wo, Cout)


def heads_stage(e0f, e1f, mf, q):
    """fc_exit0 / (fc_exit1 -> fc_exit11) / (fc1 -> fc2), all in one kernel."""
    N = e0f.shape[0]
    args = (e0f, e1f, mf,
            q["fc_exit0_w"], q["fc_exit0_b"],
            q["fc_exit1_w"], q["fc_exit1_b"],
            q["fc_exit11_w"], q["fc_exit11_b"],
            q["fc1_w"], q["fc1_b"],
            q["fc2_w"], q["fc2_b"])
    exit0, main_out, exit1 = pl.pallas_call(
        _heads_kernel,
        out_shape=tuple(jax.ShapeDtypeStruct((N, 10), jnp.float32)
                        for _ in range(3)),
        grid=(1,),
        in_specs=[_full_spec(a.shape) for a in args],
        out_specs=tuple(_full_spec((N, 10)) for _ in range(3)),
        compiler_params=_COMPILER_PARAMS,
    )(*args)
    return exit0, main_out, exit1


# ----------------------------------------------------------------------------
# Model config (mirrors LeNetEarlyExit2_2_CFG.__init__) and parameters
# ----------------------------------------------------------------------------
PRUNE_D_LIST = [3, 8, 8, 8, 8, 8, 128, 256, 32, 256, 32]
PRUNE_STRATEGY = [1.0, 1.0, 1.0, 1.0, 1.0, 1.0, 0.8, 0.8, 1.0, 0.8]

CHANNELS = [0, 0] + list(PRUNE_D_LIST)
POLICY = [0, 0] + list(PRUNE_STRATEGY)


def init_params(key):
    """Parameters in PyTorch layout: conv (Cout,Cin,K,K), linear (out,in)."""
    def mk(k, shape, scale=0.1):
        return scale * jax.random.normal(k, shape, dtype=jnp.float32)

    shapes = {
        "conv1_w": (CHANNELS[3], CHANNELS[2], 5, 5),
        "conv1_b": (CHANNELS[3],),
        "convb1_w": (int(10 * POLICY[8]), CHANNELS[3], 3, 3),
        "convb1_b": (int(10 * POLICY[8]),),
        "conv2_w": (CHANNELS[5], CHANNELS[4], 5, 5),
        "conv2_b": (CHANNELS[5],),
        "conv3_w": (int(20 * POLICY[11]), CHANNELS[5], 5, 5),
        "conv3_b": (int(20 * POLICY[11]),),
        "convb2_w": (CHANNELS[7], CHANNELS[6], 5, 5),
        "convb2_b": (CHANNELS[7],),
        "convb22_w": (int(20 * POLICY[9]), CHANNELS[7], 3, 3),
        "convb22_b": (int(20 * POLICY[9]),),
        "fc_exit0_w": (10, CHANNELS[8]),
        "fc_exit0_b": (10,),
        "fc_exit1_w": (CHANNELS[10], CHANNELS[9]),
        "fc_exit1_b": (CHANNELS[10],),
        "fc_exit11_w": (10, CHANNELS[10]),
        "fc_exit11_b": (10,),
        "fc1_w": (CHANNELS[12], CHANNELS[11]),
        "fc1_b": (CHANNELS[12],),
        "fc2_w": (10, CHANNELS[12]),
        "fc2_b": (10,),
    }
    keys = jax.random.split(key, len(shapes))
    return {name: mk(k, shape) for k, (name, shape) in zip(keys, shapes.items())}


def preprocess_params(p):
    """One-time conversion of PyTorch-layout params to kernel layout:
       * conv (Cout,Cin,K,K) -> (K*K*Cin, Cout) matching (ky,kx,c) im2col cols
       * linear fed by a conv map: columns permuted from NCHW flatten order to
         the kernel's NHWC flatten order, then transposed to (in, out)
       * biases -> (1, out) rows for in-kernel broadcasting."""
    def conv_w(w):
        Cout, Cin, K, _ = w.shape
        return jnp.transpose(w, (2, 3, 1, 0)).reshape(K * K * Cin, Cout)

    def fc_w_from_map(w, C, P, Q):
        out = w.shape[0]
        w4 = w.reshape(out, C, P, Q)
        return jnp.transpose(w4, (2, 3, 1, 0)).reshape(P * Q * C, out)

    def b2(b):
        return b.reshape(1, -1)

    c_b1 = int(10 * POLICY[8])      # conv_b1 out channels (feeds fc_exit0)
    c_b22 = int(20 * POLICY[9])     # conv_b22 out channels (feeds fc_exit1)
    c_3 = int(20 * POLICY[11])      # conv3 out channels (feeds fc1)

    return {
        "conv1_w": conv_w(p["conv1_w"]), "conv1_b": b2(p["conv1_b"]),
        "convb1_w": conv_w(p["convb1_w"]), "convb1_b": b2(p["convb1_b"]),
        "conv2_w": conv_w(p["conv2_w"]), "conv2_b": b2(p["conv2_b"]),
        "conv3_w": conv_w(p["conv3_w"]), "conv3_b": b2(p["conv3_b"]),
        "convb2_w": conv_w(p["convb2_w"]), "convb2_b": b2(p["convb2_b"]),
        "convb22_w": conv_w(p["convb22_w"]), "convb22_b": b2(p["convb22_b"]),
        "fc_exit0_w": fc_w_from_map(p["fc_exit0_w"], c_b1, 4, 4),
        "fc_exit0_b": b2(p["fc_exit0_b"]),
        "fc_exit1_w": fc_w_from_map(p["fc_exit1_w"], c_b22, 4, 4),
        "fc_exit1_b": b2(p["fc_exit1_b"]),
        "fc_exit11_w": p["fc_exit11_w"].T, "fc_exit11_b": b2(p["fc_exit11_b"]),
        "fc1_w": fc_w_from_map(p["fc1_w"], c_3, 4, 4),
        "fc1_b": b2(p["fc1_b"]),
        "fc2_w": p["fc2_w"].T, "fc2_b": b2(p["fc2_b"]),
    }


# ----------------------------------------------------------------------------
# Forward pass (matches LeNetEarlyExit2_2_CFG.forward)
# ----------------------------------------------------------------------------
@jax.jit
def forward(x_nchw, q):
    x = jnp.transpose(x_nchw, (0, 2, 3, 1))                       # NCHW -> NHWC

    # conv1; relu(maxpool(.,2)) is identical for the exit0 and main branches.
    pooled1 = conv_pool_relu_stage(x, q["conv1_w"], q["conv1_b"],
                                   K=5, conv_pad=1, pool_pad=0)   # (N,7,7,8)

    # ----- exit 0 -----
    e0 = conv_pool_relu_stage(pooled1, q["convb1_w"], q["convb1_b"],
                              K=3, conv_pad=1, pool_pad=1)        # (N,4,4,8)
    e0f = e0.reshape(e0.shape[0], -1)                             # (N,128) NHWC-flat

    # ----- main path -----
    o = conv_pool_relu_stage(pooled1, q["conv2_w"], q["conv2_b"],
                             K=5, conv_pad=3, pool_pad=0)         # (N,4,4,8)

    # ----- exit 1 -----
    e1 = conv_relu_stage(o, q["convb2_w"], q["convb2_b"],
                         K=5, conv_pad=3)                         # (N,6,6,8)
    e1 = conv_pool_relu_stage(e1, q["convb22_w"], q["convb22_b"],
                              K=3, conv_pad=1, pool_pad=1)        # (N,4,4,16)
    e1f = e1.reshape(e1.shape[0], -1)                             # (N,256)

    # ----- main path continued -----
    m = conv_pool_relu_stage(o, q["conv3_w"], q["conv3_b"],
                             K=5, conv_pad=3, pool_pad=1)         # (N,4,4,16)
    mf = m.reshape(m.shape[0], -1)                                # (N,256)

    exit0, main_out, exit1 = heads_stage(e0f, e1f, mf, q)
    return [exit0, main_out, exit1]


if __name__ == "__main__":
    key = jax.random.PRNGKey(0)
    k_x, k_p = jax.random.split(key)
    x = jax.random.normal(k_x, (2, CHANNELS[2], 16, 16), dtype=jnp.float32)
    params = preprocess_params(init_params(k_p))

    res = forward(x, params)
    res = jax.block_until_ready(res)

    assert res[0].shape == (2, 10)   # exit0
    assert res[1].shape == (2, 10)   # main output
    assert res[2].shape == (2, 10)   # exit1
    assert all(bool(jnp.all(jnp.isfinite(r))) for r in res)
    print("KERNEL_OK")
</pallas_src>

<mosaic_0001>
module attributes {stable_mosaic.version = 11 : i64} {
  func.func @_conv_pool_relu_kernel(%arg0: i32, %arg1: memref<4x98x75xf32, #tpu.memory_space<vmem>>, %arg2: memref<75x8xf32, #tpu.memory_space<vmem>>, %arg3: memref<1x8xf32, #tpu.memory_space<vmem>>, %arg4: memref<98x8xf32, #tpu.memory_space<vmem>>) attributes {dimension_semantics = [#tpu.dimension_semantics<arbitrary>], iteration_bounds = array<i64: 1>, scalar_prefetch = 0 : i64, scratch_operands = 0 : i64, tpu.core_type = #tpu.core_type<tc>, window_params = [{pipeline_mode = #tpu.pipeline_mode<synchronous>, transform_indices = @transform_0, window_bounds = array<i64: 4, 98, 75>}, {pipeline_mode = #tpu.pipeline_mode<synchronous>, transform_indices = @transform_1, window_bounds = array<i64: 75, 8>}, {pipeline_mode = #tpu.pipeline_mode<synchronous>, transform_indices = @transform_2, window_bounds = array<i64: 1, 8>}, {pipeline_mode = #tpu.pipeline_mode<synchronous>, transform_indices = @transform_3, window_bounds = array<i64: 98, 8>}]} {
    %c0 = arith.constant 0 : index
    %c0_0 = arith.constant 0 : index
    %0 = vector.load %arg2[%c0, %c0_0] : memref<75x8xf32, #tpu.memory_space<vmem>>, vector<75x8xf32>
    %c0_1 = arith.constant 0 : index
    %c0_2 = arith.constant 0 : index
    %c0_3 = arith.constant 0 : index
    %1 = vector.load %arg1[%c0_1, %c0_2, %c0_3] : memref<4x98x75xf32, #tpu.memory_space<vmem>>, vector<1x98x75xf32>
    %2 = vector.shape_cast %1 : vector<1x98x75xf32> to vector<98x75xf32>
    %cst = arith.constant dense<0.000000e+00> : vector<98x8xf32>
    %3 = tpu.matmul %2, %0, %cst {dimension_numbers = #tpu.dot_dimension_numbers<[1], [0], [0], [1], [0, 0, 1, 1], [], []>} : vector<98x75xf32>, vector<75x8xf32>, vector<98x8xf32> -> vector<98x8xf32>
    %c1 = arith.constant 1 : index
    %c0_4 = arith.constant 0 : index
    %c0_5 = arith.constant 0 : index
    %4 = vector.load %arg1[%c1, %c0_4, %c0_5] : memref<4x98x75xf32, #tpu.memory_space<vmem>>, vector<1x98x75xf32>
    %5 = vector.shape_cast %4 : vector<1x98x75xf32> to vector<98x75xf32>
    %cst_6 = arith.constant dense<0.000000e+00> : vector<98x8xf32>
    %6 = tpu.matmul %5, %0, %cst_6 {dimension_numbers = #tpu.dot_dimension_numbers<[1], [0], [0], [1], [0, 0, 1, 1], [], []>} : vector<98x75xf32>, vector<75x8xf32>, vector<98x8xf32> -> vector<98x8xf32>
    %7 = arith.maximumf %3, %6 : vector<98x8xf32>
    %c2 = arith.constant 2 : index
    %c0_7 = arith.constant 0 : index
    %c0_8 = arith.constant 0 : index
    %8 = vector.load %arg1[%c2, %c0_7, %c0_8] : memref<4x98x75xf32, #tpu.memory_space<vmem>>, vector<1x98x75xf32>
    %9 = vector.shape_cast %8 : vector<1x98x75xf32> to vector<98x75xf32>
    %cst_9 = arith.constant dense<0.000000e+00> : vector<98x8xf32>
    %10 = tpu.matmul %9, %0, %cst_9 {dimension_numbers = #tpu.dot_dimension_numbers<[1], [0], [0], [1], [0, 0, 1, 1], [], []>} : vector<98x75xf32>, vector<75x8xf32>, vector<98x8xf32> -> vector<98x8xf32>
    %11 = arith.maximumf %7, %10 : vector<98x8xf32>
    %c3 = arith.constant 3 : index
    %c0_10 = arith.constant 0 : index
    %c0_11 = arith.constant 0 : index
    %12 = vector.load %arg1[%c3, %c0_10, %c0_11] : memref<4x98x75xf32, #tpu.memory_space<vmem>>, vector<1x98x75xf32>
    %13 = vector.shape_cast %12 : vector<1x98x75xf32> to vector<98x75xf32>
    %cst_12 = arith.constant dense<0.000000e+00> : vector<98x8xf32>
    %14 = tpu.matmul %13, %0, %cst_12 {dimension_numbers = #tpu.dot_dimension_numbers<[1], [0], [0], [1], [0, 0, 1, 1], [], []>} : vector<98x75xf32>, vector<75x8xf32>, vector<98x8xf32> -> vector<98x8xf32>
    %15 = arith.maximumf %11, %14 : vector<98x8xf32>
    %c0_13 = arith.constant 0 : index
    %c0_14 = arith.constant 0 : index
    %16 = vector.load %arg3[%c0_13, %c0_14] : memref<1x8xf32, #tpu.memory_space<vmem>>, vector<1x8xf32>
    %17 = vector.broadcast %16 : vector<1x8xf32> to vector<98x8xf32>
    %18 = arith.addf %15, %17 : vector<98x8xf32>
    %cst_15 = arith.constant 0.000000e+00 : f32
    %19 = vector.broadcast %cst_15 : f32 to vector<98x8xf32>
    %20 = arith.maximumf %18, %19 : vector<98x8xf32>
    %c0_16 = arith.constant 0 : index
    %c0_17 = arith.constant 0 : index
    %21 = vector.load %arg4[%c0_16, %c0_17] : memref<98x8xf32, #tpu.memory_space<vmem>>, vector<98x8xf32>
    tpu.vector_store %arg4[%c0_16, %c0_17], %20 {strides = array<i32>} : memref<98x8xf32, #tpu.memory_space<vmem>>, vector<98x8xf32>,
    return
  }
  func.func @transform_0(%arg0: i32) -> (i32, i32, i32) {
    %c0_i32 = arith.constant 0 : i32
    %c0_i32_0 = arith.constant 0 : i32
    %c0_i32_1 = arith.constant 0 : i32
    %c0_i32_2 = arith.constant 0 : i32
    return %c0_i32, %c0_i32_0, %c0_i32_1 : i32, i32, i32
  }
  func.func @transform_1(%arg0: i32) -> (i32, i32) {
    %c0_i32 = arith.constant 0 : i32
    %c0_i32_0 = arith.constant 0 : i32
    %c0_i32_1 = arith.constant 0 : i32
    return %c0_i32, %c0_i32_0 : i32, i32
  }
  func.func @transform_2(%arg0: i32) -> (i32, i32) {
    %c0_i32 = arith.constant 0 : i32
    %c0_i32_0 = arith.constant 0 : i32
    %c0_i32_1 = arith.constant 0 : i32
    return %c0_i32, %c0_i32_0 : i32, i32
  }
  func.func @transform_3(%arg0: i32) -> (i32, i32) {
    %c0_i32 = arith.constant 0 : i32
    %c0_i32_0 = arith.constant 0 : i32
    %c0_i32_1 = arith.constant 0 : i32
    return %c0_i32, %c0_i32_0 : i32, i32
  }
}

module attributes {stable_mosaic.version = 11 : i64} {
  func.func @_conv_pool_relu_kernel(%arg0: i32, %arg1: memref<4x32x72xf32, #tpu.memory_space<vmem>>, %arg2: memref<72x8xf32, #tpu.memory_space<vmem>>, %arg3: memref<1x8xf32, #tpu.memory_space<vmem>>, %arg4: memref<32x8xf32, #tpu.memory_space<vmem>>) attributes {dimension_semantics = [#tpu.dimension_semantics<arbitrary>], iteration_bounds = array<i64: 1>, scalar_prefetch = 0 : i64, scratch_operands = 0 : i64, tpu.core_type = #tpu.core_type<tc>, window_params = [{pipeline_mode = #tpu.pipeline_mode<synchronous>, transform_indices = @transform_0, window_bounds = array<i64: 4, 32, 72>}, {pipeline_mode = #tpu.pipeline_mode<synchronous>, transform_indices = @transform_1, window_bounds = array<i64: 72, 8>}, {pipeline_mode = #tpu.pipeline_mode<synchronous>, transform_indices = @transform_2, window_bounds = array<i64: 1, 8>}, {pipeline_mode = #tpu.pipeline_mode<synchronous>, transform_indices = @transform_3, window_bounds = array<i64: 32, 8>}]} {
    %c0 = arith.constant 0 : index
    %c0_0 = arith.constant 0 : index
    %0 = vector.load %arg2[%c0, %c0_0] : memref<72x8xf32, #tpu.memory_space<vmem>>, vector<72x8xf32>
    %c0_1 = arith.constant 0 : index
    %c0_2 = arith.constant 0 : index
    %c0_3 = arith.constant 0 : index
    %1 = vector.load %arg1[%c0_1, %c0_2, %c0_3] : memref<4x32x72xf32, #tpu.memory_space<vmem>>, vector<1x32x72xf32>
    %2 = vector.shape_cast %1 : vector<1x32x72xf32> to vector<32x72xf32>
    %cst = arith.constant dense<0.000000e+00> : vector<32x8xf32>
    %3 = tpu.matmul %2, %0, %cst {dimension_numbers = #tpu.dot_dimension_numbers<[1], [0], [0], [1], [0, 0, 1, 1], [], []>} : vector<32x72xf32>, vector<72x8xf32>, vector<32x8xf32> -> vector<32x8xf32>
    %c1 = arith.constant 1 : index
    %c0_4 = arith.constant 0 : index
    %c0_5 = arith.constant 0 : index
    %4 = vector.load %arg1[%c1, %c0_4, %c0_5] : memref<4x32x72xf32, #tpu.memory_space<vmem>>, vector<1x32x72xf32>
    %5 = vector.shape_cast %4 : vector<1x32x72xf32> to vector<32x72xf32>
    %cst_6 = arith.constant dense<0.000000e+00> : vector<32x8xf32>
    %6 = tpu.matmul %5, %0, %cst_6 {dimension_numbers = #tpu.dot_dimension_numbers<[1], [0], [0], [1], [0, 0, 1, 1], [], []>} : vector<32x72xf32>, vector<72x8xf32>, vector<32x8xf32> -> vector<32x8xf32>
    %7 = arith.maximumf %3, %6 : vector<32x8xf32>
    %c2 = arith.constant 2 : index
    %c0_7 = arith.constant 0 : index
    %c0_8 = arith.constant 0 : index
    %8 = vector.load %arg1[%c2, %c0_7, %c0_8] : memref<4x32x72xf32, #tpu.memory_space<vmem>>, vector<1x32x72xf32>
    %9 = vector.shape_cast %8 : vector<1x32x72xf32> to vector<32x72xf32>
    %cst_9 = arith.constant dense<0.000000e+00> : vector<32x8xf32>
    %10 = tpu.matmul %9, %0, %cst_9 {dimension_numbers = #tpu.dot_dimension_numbers<[1], [0], [0], [1], [0, 0, 1, 1], [], []>} : vector<32x72xf32>, vector<72x8xf32>, vector<32x8xf32> -> vector<32x8xf32>
    %11 = arith.maximumf %7, %10 : vector<32x8xf32>
    %c3 = arith.constant 3 : index
    %c0_10 = arith.constant 0 : index
    %c0_11 = arith.constant 0 : index
    %12 = vector.load %arg1[%c3, %c0_10, %c0_11] : memref<4x32x72xf32, #tpu.memory_space<vmem>>, vector<1x32x72xf32>
    %13 = vector.shape_cast %12 : vector<1x32x72xf32> to vector<32x72xf32>
    %cst_12 = arith.constant dense<0.000000e+00> : vector<32x8xf32>
    %14 = tpu.matmul %13, %0, %cst_12 {dimension_numbers = #tpu.dot_dimension_numbers<[1], [0], [0], [1], [0, 0, 1, 1], [], []>} : vector<32x72xf32>, vector<72x8xf32>, vector<32x8xf32> -> vector<32x8xf32>
    %15 = arith.maximumf %11, %14 : vector<32x8xf32>
    %c0_13 = arith.constant 0 : index
    %c0_14 = arith.constant 0 : index
    %16 = vector.load %arg3[%c0_13, %c0_14] : memref<1x8xf32, #tpu.memory_space<vmem>>, vector<1x8xf32>
    %17 = vector.broadcast %16 : vector<1x8xf32> to vector<32x8xf32>
    %18 = arith.addf %15, %17 : vector<32x8xf32>
    %cst_15 = arith.constant 0.000000e+00 : f32
    %19 = vector.broadcast %cst_15 : f32 to vector<32x8xf32>
    %20 = arith.maximumf %18, %19 : vector<32x8xf32>
    %c0_16 = arith.constant 0 : index
    %c0_17 = arith.constant 0 : index
    %21 = vector.load %arg4[%c0_16, %c0_17] : memref<32x8xf32, #tpu.memory_space<vmem>>, vector<32x8xf32>
    tpu.vector_store %arg4[%c0_16, %c0_17], %20 {strides = array<i32>} : memref<32x8xf32, #tpu.memory_space<vmem>>, vector<32x8xf32>,
    return
  }
  func.func @transform_0(%arg0: i32) -> (i32, i32, i32) {
    %c0_i32 = arith.constant 0 : i32
    %c0_i32_0 = arith.constant 0 : i32
    %c0_i32_1 = arith.constant 0 : i32
    %c0_i32_2 = arith.constant 0 : i32
    return %c0_i32, %c0_i32_0, %c0_i32_1 : i32, i32, i32
  }
  func.func @transform_1(%arg0: i32) -> (i32, i32) {
    %c0_i32 = arith.constant 0 : i32
    %c0_i32_0 = arith.constant 0 : i32
    %c0_i32_1 = arith.constant 0 : i32
    return %c0_i32, %c0_i32_0 : i32, i32
  }
  func.func @transform_2(%arg0: i32) -> (i32, i32) {
    %c0_i32 = arith.constant 0 : i32
    %c0_i32_0 = arith.constant 0 : i32
    %c0_i32_1 = arith.constant 0 : i32
    return %c0_i32, %c0_i32_0 : i32, i32
  }
  func.func @transform_3(%arg0: i32) -> (i32, i32) {
    %c0_i32 = arith.constant 0 : i32
    %c0_i32_0 = arith.constant 0 : i32
    %c0_i32_1 = arith.constant 0 : i32
    return %c0_i32, %c0_i32_0 : i32, i32
  }
}

module attributes {stable_mosaic.version = 11 : i64} {
  func.func @_conv_pool_relu_kernel(%arg0: i32, %arg1: memref<4x32x200xf32, #tpu.memory_space<vmem>>, %arg2: memref<200x8xf32, #tpu.memory_space<vmem>>, %arg3: memref<1x8xf32, #tpu.memory_space<vmem>>, %arg4: memref<32x8xf32, #tpu.memory_space<vmem>>) attributes {dimension_semantics = [#tpu.dimension_semantics<arbitrary>], iteration_bounds = array<i64: 1>, scalar_prefetch = 0 : i64, scratch_operands = 0 : i64, tpu.core_type = #tpu.core_type<tc>, window_params = [{pipeline_mode = #tpu.pipeline_mode<synchronous>, transform_indices = @transform_0, window_bounds = array<i64: 4, 32, 200>}, {pipeline_mode = #tpu.pipeline_mode<synchronous>, transform_indices = @transform_1, window_bounds = array<i64: 200, 8>}, {pipeline_mode = #tpu.pipeline_mode<synchronous>, transform_indices = @transform_2, window_bounds = array<i64: 1, 8>}, {pipeline_mode = #tpu.pipeline_mode<synchronous>, transform_indices = @transform_3, window_bounds = array<i64: 32, 8>}]} {
    %c0 = arith.constant 0 : index
    %c0_0 = arith.constant 0 : index
    %0 = vector.load %arg2[%c0, %c0_0] : memref<200x8xf32, #tpu.memory_space<vmem>>, vector<200x8xf32>
    %c0_1 = arith.constant 0 : index
    %c0_2 = arith.constant 0 : index
    %c0_3 = arith.constant 0 : index
    %1 = vector.load %arg1[%c0_1, %c0_2, %c0_3] : memref<4x32x200xf32, #tpu.memory_space<vmem>>, vector<1x32x200xf32>
    %2 = vector.shape_cast %1 : vector<1x32x200xf32> to vector<32x200xf32>
    %cst = arith.constant dense<0.000000e+00> : vector<32x8xf32>
    %3 = tpu.matmul %2, %0, %cst {dimension_numbers = #tpu.dot_dimension_numbers<[1], [0], [0], [1], [0, 0, 1, 1], [], []>} : vector<32x200xf32>, vector<200x8xf32>, vector<32x8xf32> -> vector<32x8xf32>
    %c1 = arith.constant 1 : index
    %c0_4 = arith.constant 0 : index
    %c0_5 = arith.constant 0 : index
    %4 = vector.load %arg1[%c1, %c0_4, %c0_5] : memref<4x32x200xf32, #tpu.memory_space<vmem>>, vector<1x32x200xf32>
    %5 = vector.shape_cast %4 : vector<1x32x200xf32> to vector<32x200xf32>
    %cst_6 = arith.constant dense<0.000000e+00> : vector<32x8xf32>
    %6 = tpu.matmul %5, %0, %cst_6 {dimension_numbers = #tpu.dot_dimension_numbers<[1], [0], [0], [1], [0, 0, 1, 1], [], []>} : vector<32x200xf32>, vector<200x8xf32>, vector<32x8xf32> -> vector<32x8xf32>
    %7 = arith.maximumf %3, %6 : vector<32x8xf32>
    %c2 = arith.constant 2 : index
    %c0_7 = arith.constant 0 : index
    %c0_8 = arith.constant 0 : index
    %8 = vector.load %arg1[%c2, %c0_7, %c0_8] : memref<4x32x200xf32, #tpu.memory_space<vmem>>, vector<1x32x200xf32>
    %9 = vector.shape_cast %8 : vector<1x32x200xf32> to vector<32x200xf32>
    %cst_9 = arith.constant dense<0.000000e+00> : vector<32x8xf32>
    %10 = tpu.matmul %9, %0, %cst_9 {dimension_numbers = #tpu.dot_dimension_numbers<[1], [0], [0], [1], [0, 0, 1, 1], [], []>} : vector<32x200xf32>, vector<200x8xf32>, vector<32x8xf32> -> vector<32x8xf32>
    %11 = arith.maximumf %7, %10 : vector<32x8xf32>
    %c3 = arith.constant 3 : index
    %c0_10 = arith.constant 0 : index
    %c0_11 = arith.constant 0 : index
    %12 = vector.load %arg1[%c3, %c0_10, %c0_11] : memref<4x32x200xf32, #tpu.memory_space<vmem>>, vector<1x32x200xf32>
    %13 = vector.shape_cast %12 : vector<1x32x200xf32> to vector<32x200xf32>
    %cst_12 = arith.constant dense<0.000000e+00> : vector<32x8xf32>
    %14 = tpu.matmul %13, %0, %cst_12 {dimension_numbers = #tpu.dot_dimension_numbers<[1], [0], [0], [1], [0, 0, 1, 1], [], []>} : vector<32x200xf32>, vector<200x8xf32>, vector<32x8xf32> -> vector<32x8xf32>
    %15 = arith.maximumf %11, %14 : vector<32x8xf32>
    %c0_13 = arith.constant 0 : index
    %c0_14 = arith.constant 0 : index
    %16 = vector.load %arg3[%c0_13, %c0_14] : memref<1x8xf32, #tpu.memory_space<vmem>>, vector<1x8xf32>
    %17 = vector.broadcast %16 : vector<1x8xf32> to vector<32x8xf32>
    %18 = arith.addf %15, %17 : vector<32x8xf32>
    %cst_15 = arith.constant 0.000000e+00 : f32
    %19 = vector.broadcast %cst_15 : f32 to vector<32x8xf32>
    %20 = arith.maximumf %18, %19 : vector<32x8xf32>
    %c0_16 = arith.constant 0 : index
    %c0_17 = arith.constant 0 : index
    %21 = vector.load %arg4[%c0_16, %c0_17] : memref<32x8xf32, #tpu.memory_space<vmem>>, vector<32x8xf32>
    tpu.vector_store %arg4[%c0_16, %c0_17], %20 {strides = array<i32>} : memref<32x8xf32, #tpu.memory_space<vmem>>, vector<32x8xf32>,
    return
  }
  func.func @transform_0(%arg0: i32) -> (i32, i32, i32) {
    %c0_i32 = arith.constant 0 : i32
    %c0_i32_0 = arith.constant 0 : i32
    %c0_i32_1 = arith.constant 0 : i32
    %c0_i32_2 = arith.constant 0 : i32
    return %c0_i32, %c0_i32_0, %c0_i32_1 : i32, i32, i32
  }
  func.func @transform_1(%arg0: i32) -> (i32, i32) {
    %c0_i32 = arith.constant 0 : i32
    %c0_i32_0 = arith.constant 0 : i32
    %c0_i32_1 = arith.constant 0 : i32
    return %c0_i32, %c0_i32_0 : i32, i32
  }
  func.func @transform_2(%arg0: i32) -> (i32, i32) {
    %c0_i32 = arith.constant 0 : i32
    %c0_i32_0 = arith.constant 0 : i32
    %c0_i32_1 = arith.constant 0 : i32
    return %c0_i32, %c0_i32_0 : i32, i32
  }
  func.func @transform_3(%arg0: i32) -> (i32, i32) {
    %c0_i32 = arith.constant 0 : i32
    %c0_i32_0 = arith.constant 0 : i32
    %c0_i32_1 = arith.constant 0 : i32
    return %c0_i32, %c0_i32_0 : i32, i32
  }
}

module attributes {stable_mosaic.version = 11 : i64} {
  func.func @_conv_bias_relu_kernel(%arg0: i32, %arg1: memref<72x200xf32, #tpu.memory_space<vmem>>, %arg2: memref<200x8xf32, #tpu.memory_space<vmem>>, %arg3: memref<1x8xf32, #tpu.memory_space<vmem>>, %arg4: memref<72x8xf32, #tpu.memory_space<vmem>>) attributes {dimension_semantics = [#tpu.dimension_semantics<arbitrary>], iteration_bounds = array<i64: 1>, scalar_prefetch = 0 : i64, scratch_operands = 0 : i64, tpu.core_type = #tpu.core_type<tc>, window_params = [{pipeline_mode = #tpu.pipeline_mode<synchronous>, transform_indices = @transform_0, window_bounds = array<i64: 72, 200>}, {pipeline_mode = #tpu.pipeline_mode<synchronous>, transform_indices = @transform_1, window_bounds = array<i64: 200, 8>}, {pipeline_mode = #tpu.pipeline_mode<synchronous>, transform_indices = @transform_2, window_bounds = array<i64: 1, 8>}, {pipeline_mode = #tpu.pipeline_mode<synchronous>, transform_indices = @transform_3, window_bounds = array<i64: 72, 8>}]} {
    %c0 = arith.constant 0 : index
    %c0_0 = arith.constant 0 : index
    %0 = vector.load %arg1[%c0, %c0_0] : memref<72x200xf32, #tpu.memory_space<vmem>>, vector<72x200xf32>
    %c0_1 = arith.constant 0 : index
    %c0_2 = arith.constant 0 : index
    %1 = vector.load %arg2[%c0_1, %c0_2] : memref<200x8xf32, #tpu.memory_space<vmem>>, vector<200x8xf32>
    %cst = arith.constant dense<0.000000e+00> : vector<72x8xf32>
    %2 = tpu.matmul %0, %1, %cst {dimension_numbers = #tpu.dot_dimension_numbers<[1], [0], [0], [1], [0, 0, 1, 1], [], []>} : vector<72x200xf32>, vector<200x8xf32>, vector<72x8xf32> -> vector<72x8xf32>
    %c0_3 = arith.constant 0 : index
    %c0_4 = arith.constant 0 : index
    %3 = vector.load %arg3[%c0_3, %c0_4] : memref<1x8xf32, #tpu.memory_space<vmem>>, vector<1x8xf32>
    %4 = vector.broadcast %3 : vector<1x8xf32> to vector<72x8xf32>
    %5 = arith.addf %2, %4 : vector<72x8xf32>
    %cst_5 = arith.constant 0.000000e+00 : f32
    %6 = vector.broadcast %cst_5 : f32 to vector<72x8xf32>
    %7 = arith.maximumf %5, %6 : vector<72x8xf32>
    %c0_6 = arith.constant 0 : index
    %c0_7 = arith.constant 0 : index
    %8 = vector.load %arg4[%c0_6, %c0_7] : memref<72x8xf32, #tpu.memory_space<vmem>>, vector<72x8xf32>
    tpu.vector_store %arg4[%c0_6, %c0_7], %7 {strides = array<i32>} : memref<72x8xf32, #tpu.memory_space<vmem>>, vector<72x8xf32>,
    return
  }
  func.func @transform_0(%arg0: i32) -> (i32, i32) {
    %c0_i32 = arith.constant 0 : i32
    %c0_i32_0 = arith.constant 0 : i32
    %c0_i32_1 = arith.constant 0 : i32
    return %c0_i32, %c0_i32_0 : i32, i32
  }
  func.func @transform_1(%arg0: i32) -> (i32, i32) {
    %c0_i32 = arith.constant 0 : i32
    %c0_i32_0 = arith.constant 0 : i32
    %c0_i32_1 = arith.constant 0 : i32
    return %c0_i32, %c0_i32_0 : i32, i32
  }
  func.func @transform_2(%arg0: i32) -> (i32, i32) {
    %c0_i32 = arith.constant 0 : i32
    %c0_i32_0 = arith.constant 0 : i32
    %c0_i32_1 = arith.constant 0 : i32
    return %c0_i32, %c0_i32_0 : i32, i32
  }
  func.func @transform_3(%arg0: i32) -> (i32, i32) {
    %c0_i32 = arith.constant 0 : i32
    %c0_i32_0 = arith.constant 0 : i32
    %c0_i32_1 = arith.constant 0 : i32
    return %c0_i32, %c0_i32_0 : i32, i32
  }
}

module attributes {stable_mosaic.version = 11 : i64} {
  func.func @_conv_pool_relu_kernel(%arg0: i32, %arg1: memref<4x32x72xf32, #tpu.memory_space<vmem>>, %arg2: memref<72x16xf32, #tpu.memory_space<vmem>>, %arg3: memref<1x16xf32, #tpu.memory_space<vmem>>, %arg4: memref<32x16xf32, #tpu.memory_space<vmem>>) attributes {dimension_semantics = [#tpu.dimension_semantics<arbitrary>], iteration_bounds = array<i64: 1>, scalar_prefetch = 0 : i64, scratch_operands = 0 : i64, tpu.core_type = #tpu.core_type<tc>, window_params = [{pipeline_mode = #tpu.pipeline_mode<synchronous>, transform_indices = @transform_0, window_bounds = array<i64: 4, 32, 72>}, {pipeline_mode = #tpu.pipeline_mode<synchronous>, transform_indices = @transform_1, window_bounds = array<i64: 72, 16>}, {pipeline_mode = #tpu.pipeline_mode<synchronous>, transform_indices = @transform_2, window_bounds = array<i64: 1, 16>}, {pipeline_mode = #tpu.pipeline_mode<synchronous>, transform_indices = @transform_3, window_bounds = array<i64: 32, 16>}]} {
    %c0 = arith.constant 0 : index
    %c0_0 = arith.constant 0 : index
    %0 = vector.load %arg2[%c0, %c0_0] : memref<72x16xf32, #tpu.memory_space<vmem>>, vector<72x16xf32>
    %c0_1 = arith.constant 0 : index
    %c0_2 = arith.constant 0 : index
    %c0_3 = arith.constant 0 : index
    %1 = vector.load %arg1[%c0_1, %c0_2, %c0_3] : memref<4x32x72xf32, #tpu.memory_space<vmem>>, vector<1x32x72xf32>
    %2 = vector.shape_cast %1 : vector<1x32x72xf32> to vector<32x72xf32>
    %cst = arith.constant dense<0.000000e+00> : vector<32x16xf32>
    %3 = tpu.matmul %2, %0, %cst {dimension_numbers = #tpu.dot_dimension_numbers<[1], [0], [0], [1], [0, 0, 1, 1], [], []>} : vector<32x72xf32>, vector<72x16xf32>, vector<32x16xf32> -> vector<32x16xf32>
    %c1 = arith.constant 1 : index
    %c0_4 = arith.constant 0 : index
    %c0_5 = arith.constant 0 : index
    %4 = vector.load %arg1[%c1, %c0_4, %c0_5] : memref<4x32x72xf32, #tpu.memory_space<vmem>>, vector<1x32x72xf32>
    %5 = vector.shape_cast %4 : vector<1x32x72xf32> to vector<32x72xf32>
    %cst_6 = arith.constant dense<0.000000e+00> : vector<32x16xf32>
    %6 = tpu.matmul %5, %0, %cst_6 {dimension_numbers = #tpu.dot_dimension_numbers<[1], [0], [0], [1], [0, 0, 1, 1], [], []>} : vector<32x72xf32>, vector<72x16xf32>, vector<32x16xf32> -> vector<32x16xf32>
    %7 = arith.maximumf %3, %6 : vector<32x16xf32>
    %c2 = arith.constant 2 : index
    %c0_7 = arith.constant 0 : index
    %c0_8 = arith.constant 0 : index
    %8 = vector.load %arg1[%c2, %c0_7, %c0_8] : memref<4x32x72xf32, #tpu.memory_space<vmem>>, vector<1x32x72xf32>
    %9 = vector.shape_cast %8 : vector<1x32x72xf32> to vector<32x72xf32>
    %cst_9 = arith.constant dense<0.000000e+00> : vector<32x16xf32>
    %10 = tpu.matmul %9, %0, %cst_9 {dimension_numbers = #tpu.dot_dimension_numbers<[1], [0], [0], [1], [0, 0, 1, 1], [], []>} : vector<32x72xf32>, vector<72x16xf32>, vector<32x16xf32> -> vector<32x16xf32>
    %11 = arith.maximumf %7, %10 : vector<32x16xf32>
    %c3 = arith.constant 3 : index
    %c0_10 = arith.constant 0 : index
    %c0_11 = arith.constant 0 : index
    %12 = vector.load %arg1[%c3, %c0_10, %c0_11] : memref<4x32x72xf32, #tpu.memory_space<vmem>>, vector<1x32x72xf32>
    %13 = vector.shape_cast %12 : vector<1x32x72xf32> to vector<32x72xf32>
    %cst_12 = arith.constant dense<0.000000e+00> : vector<32x16xf32>
    %14 = tpu.matmul %13, %0, %cst_12 {dimension_numbers = #tpu.dot_dimension_numbers<[1], [0], [0], [1], [0, 0, 1, 1], [], []>} : vector<32x72xf32>, vector<72x16xf32>, vector<32x16xf32> -> vector<32x16xf32>
    %15 = arith.maximumf %11, %14 : vector<32x16xf32>
    %c0_13 = arith.constant 0 : index
    %c0_14 = arith.constant 0 : index
    %16 = vector.load %arg3[%c0_13, %c0_14] : memref<1x16xf32, #tpu.memory_space<vmem>>, vector<1x16xf32>
    %17 = vector.broadcast %16 : vector<1x16xf32> to vector<32x16xf32>
    %18 = arith.addf %15, %17 : vector<32x16xf32>
    %cst_15 = arith.constant 0.000000e+00 : f32
    %19 = vector.broadcast %cst_15 : f32 to vector<32x16xf32>
    %20 = arith.maximumf %18, %19 : vector<32x16xf32>
    %c0_16 = arith.constant 0 : index
    %c0_17 = arith.constant 0 : index
    %21 = vector.load %arg4[%c0_16, %c0_17] : memref<32x16xf32, #tpu.memory_space<vmem>>, vector<32x16xf32>
    tpu.vector_store %arg4[%c0_16, %c0_17], %20 {strides = array<i32>} : memref<32x16xf32, #tpu.memory_space<vmem>>, vector<32x16xf32>,
    return
  }
  func.func @transform_0(%arg0: i32) -> (i32, i32, i32) {
    %c0_i32 = arith.constant 0 : i32
    %c0_i32_0 = arith.constant 0 : i32
    %c0_i32_1 = arith.constant 0 : i32
    %c0_i32_2 = arith.constant 0 : i32
    return %c0_i32, %c0_i32_0, %c0_i32_1 : i32, i32, i32
  }
  func.func @transform_1(%arg0: i32) -> (i32, i32) {
    %c0_i32 = arith.constant 0 : i32
    %c0_i32_0 = arith.constant 0 : i32
    %c0_i32_1 = arith.constant 0 : i32
    return %c0_i32, %c0_i32_0 : i32, i32
  }
  func.func @transform_2(%arg0: i32) -> (i32, i32) {
    %c0_i32 = arith.constant 0 : i32
    %c0_i32_0 = arith.constant 0 : i32
    %c0_i32_1 = arith.constant 0 : i32
    return %c0_i32, %c0_i32_0 : i32, i32
  }
  func.func @transform_3(%arg0: i32) -> (i32, i32) {
    %c0_i32 = arith.constant 0 : i32
    %c0_i32_0 = arith.constant 0 : i32
    %c0_i32_1 = arith.constant 0 : i32
    return %c0_i32, %c0_i32_0 : i32, i32
  }
}

module attributes {stable_mosaic.version = 11 : i64} {
  func.func @_conv_pool_relu_kernel(%arg0: i32, %arg1: memref<4x32x200xf32, #tpu.memory_space<vmem>>, %arg2: memref<200x16xf32, #tpu.memory_space<vmem>>, %arg3: memref<1x16xf32, #tpu.memory_space<vmem>>, %arg4: memref<32x16xf32, #tpu.memory_space<vmem>>) attributes {dimension_semantics = [#tpu.dimension_semantics<arbitrary>], iteration_bounds = array<i64: 1>, scalar_prefetch = 0 : i64, scratch_operands = 0 : i64, tpu.core_type = #tpu.core_type<tc>, window_params = [{pipeline_mode = #tpu.pipeline_mode<synchronous>, transform_indices = @transform_0, window_bounds = array<i64: 4, 32, 200>}, {pipeline_mode = #tpu.pipeline_mode<synchronous>, transform_indices = @transform_1, window_bounds = array<i64: 200, 16>}, {pipeline_mode = #tpu.pipeline_mode<synchronous>, transform_indices = @transform_2, window_bounds = array<i64: 1, 16>}, {pipeline_mode = #tpu.pipeline_mode<synchronous>, transform_indices = @transform_3, window_bounds = array<i64: 32, 16>}]} {
    %c0 = arith.constant 0 : index
    %c0_0 = arith.constant 0 : index
    %0 = vector.load %arg2[%c0, %c0_0] : memref<200x16xf32, #tpu.memory_space<vmem>>, vector<200x16xf32>
    %c0_1 = arith.constant 0 : index
    %c0_2 = arith.constant 0 : index
    %c0_3 = arith.constant 0 : index
    %1 = vector.load %arg1[%c0_1, %c0_2, %c0_3] : memref<4x32x200xf32, #tpu.memory_space<vmem>>, vector<1x32x200xf32>
    %2 = vector.shape_cast %1 : vector<1x32x200xf32> to vector<32x200xf32>
    %cst = arith.constant dense<0.000000e+00> : vector<32x16xf32>
    %3 = tpu.matmul %2, %0, %cst {dimension_numbers = #tpu.dot_dimension_numbers<[1], [0], [0], [1], [0, 0, 1, 1], [], []>} : vector<32x200xf32>, vector<200x16xf32>, vector<32x16xf32> -> vector<32x16xf32>
    %c1 = arith.constant 1 : index
    %c0_4 = arith.constant 0 : index
    %c0_5 = arith.constant 0 : index
    %4 = vector.load %arg1[%c1, %c0_4, %c0_5] : memref<4x32x200xf32, #tpu.memory_space<vmem>>, vector<1x32x200xf32>
    %5 = vector.shape_cast %4 : vector<1x32x200xf32> to vector<32x200xf32>
    %cst_6 = arith.constant dense<0.000000e+00> : vector<32x16xf32>
    %6 = tpu.matmul %5, %0, %cst_6 {dimension_numbers = #tpu.dot_dimension_numbers<[1], [0], [0], [1], [0, 0, 1, 1], [], []>} : vector<32x200xf32>, vector<200x16xf32>, vector<32x16xf32> -> vector<32x16xf32>
    %7 = arith.maximumf %3, %6 : vector<32x16xf32>
    %c2 = arith.constant 2 : index
    %c0_7 = arith.constant 0 : index
    %c0_8 = arith.constant 0 : index
    %8 = vector.load %arg1[%c2, %c0_7, %c0_8] : memref<4x32x200xf32, #tpu.memory_space<vmem>>, vector<1x32x200xf32>
    %9 = vector.shape_cast %8 : vector<1x32x200xf32> to vector<32x200xf32>
    %cst_9 = arith.constant dense<0.000000e+00> : vector<32x16xf32>
    %10 = tpu.matmul %9, %0, %cst_9 {dimension_numbers = #tpu.dot_dimension_numbers<[1], [0], [0], [1], [0, 0, 1, 1], [], []>} : vector<32x200xf32>, vector<200x16xf32>, vector<32x16xf32> -> vector<32x16xf32>
    %11 = arith.maximumf %7, %10 : vector<32x16xf32>
    %c3 = arith.constant 3 : index
    %c0_10 = arith.constant 0 : index
    %c0_11 = arith.constant 0 : index
    %12 = vector.load %arg1[%c3, %c0_10, %c0_11] : memref<4x32x200xf32, #tpu.memory_space<vmem>>, vector<1x32x200xf32>
    %13 = vector.shape_cast %12 : vector<1x32x200xf32> to vector<32x200xf32>
    %cst_12 = arith.constant dense<0.000000e+00> : vector<32x16xf32>
    %14 = tpu.matmul %13, %0, %cst_12 {dimension_numbers = #tpu.dot_dimension_numbers<[1], [0], [0], [1], [0, 0, 1, 1], [], []>} : vector<32x200xf32>, vector<200x16xf32>, vector<32x16xf32> -> vector<32x16xf32>
    %15 = arith.maximumf %11, %14 : vector<32x16xf32>
    %c0_13 = arith.constant 0 : index
    %c0_14 = arith.constant 0 : index
    %16 = vector.load %arg3[%c0_13, %c0_14] : memref<1x16xf32, #tpu.memory_space<vmem>>, vector<1x16xf32>
    %17 = vector.broadcast %16 : vector<1x16xf32> to vector<32x16xf32>
    %18 = arith.addf %15, %17 : vector<32x16xf32>
    %cst_15 = arith.constant 0.000000e+00 : f32
    %19 = vector.broadcast %cst_15 : f32 to vector<32x16xf32>
    %20 = arith.maximumf %18, %19 : vector<32x16xf32>
    %c0_16 = arith.constant 0 : index
    %c0_17 = arith.constant 0 : index
    %21 = vector.load %arg4[%c0_16, %c0_17] : memref<32x16xf32, #tpu.memory_space<vmem>>, vector<32x16xf32>
    tpu.vector_store %arg4[%c0_16, %c0_17], %20 {strides = array<i32>} : memref<32x16xf32, #tpu.memory_space<vmem>>, vector<32x16xf32>,
    return
  }
  func.func @transform_0(%arg0: i32) -> (i32, i32, i32) {
    %c0_i32 = arith.constant 0 : i32
    %c0_i32_0 = arith.constant 0 : i32
    %c0_i32_1 = arith.constant 0 : i32
    %c0_i32_2 = arith.constant 0 : i32
    return %c0_i32, %c0_i32_0, %c0_i32_1 : i32, i32, i32
  }
  func.func @transform_1(%arg0: i32) -> (i32, i32) {
    %c0_i32 = arith.constant 0 : i32
    %c0_i32_0 = arith.constant 0 : i32
    %c0_i32_1 = arith.constant 0 : i32
    return %c0_i32, %c0_i32_0 : i32, i32
  }
  func.func @transform_2(%arg0: i32) -> (i32, i32) {
    %c0_i32 = arith.constant 0 : i32
    %c0_i32_0 = arith.constant 0 : i32
    %c0_i32_1 = arith.constant 0 : i32
    return %c0_i32, %c0_i32_0 : i32, i32
  }
  func.func @transform_3(%arg0: i32) -> (i32, i32) {
    %c0_i32 = arith.constant 0 : i32
    %c0_i32_0 = arith.constant 0 : i32
    %c0_i32_1 = arith.constant 0 : i32
    return %c0_i32, %c0_i32_0 : i32, i32
  }
}

module attributes {stable_mosaic.version = 11 : i64} {
  func.func @_heads_kernel(%arg0: i32, %arg1: memref<2x128xf32, #tpu.memory_space<vmem>>, %arg2: memref<2x256xf32, #tpu.memory_space<vmem>>, %arg3: memref<2x256xf32, #tpu.memory_space<vmem>>, %arg4: memref<128x10xf32, #tpu.memory_space<vmem>>, %arg5: memref<1x10xf32, #tpu.memory_space<vmem>>, %arg6: memref<256x32xf32, #tpu.memory_space<vmem>>, %arg7: memref<1x32xf32, #tpu.memory_space<vmem>>, %arg8: memref<32x10xf32, #tpu.memory_space<vmem>>, %arg9: memref<1x10xf32, #tpu.memory_space<vmem>>, %arg10: memref<256x32xf32, #tpu.memory_space<vmem>>, %arg11: memref<1x32xf32, #tpu.memory_space<vmem>>, %arg12: memref<32x10xf32, #tpu.memory_space<vmem>>, %arg13: memref<1x10xf32, #tpu.memory_space<vmem>>, %arg14: memref<2x10xf32, #tpu.memory_space<vmem>>, %arg15: memref<2x10xf32, #tpu.memory_space<vmem>>, %arg16: memref<2x10xf32, #tpu.memory_space<vmem>>) attributes {dimension_semantics = [#tpu.dimension_semantics<arbitrary>], iteration_bounds = array<i64: 1>, scalar_prefetch = 0 : i64, scratch_operands = 0 : i64, tpu.core_type = #tpu.core_type<tc>, window_params = [{pipeline_mode = #tpu.pipeline_mode<synchronous>, transform_indices = @transform_0, window_bounds = array<i64: 2, 128>}, {pipeline_mode = #tpu.pipeline_mode<synchronous>, transform_indices = @transform_1, window_bounds = array<i64: 2, 256>}, {pipeline_mode = #tpu.pipeline_mode<synchronous>, transform_indices = @transform_2, window_bounds = array<i64: 2, 256>}, {pipeline_mode = #tpu.pipeline_mode<synchronous>, transform_indices = @transform_3, window_bounds = array<i64: 128, 10>}, {pipeline_mode = #tpu.pipeline_mode<synchronous>, transform_indices = @transform_4, window_bounds = array<i64: 1, 10>}, {pipeline_mode = #tpu.pipeline_mode<synchronous>, transform_indices = @transform_5, window_bounds = array<i64: 256, 32>}, {pipeline_mode = #tpu.pipeline_mode<synchronous>, transform_indices = @transform_6, window_bounds = array<i64: 1, 32>}, {pipeline_mode = #tpu.pipeline_mode<synchronous>, transform_indices = @transform_7, window_bounds = array<i64: 32, 10>}, {pipeline_mode = #tpu.pipeline_mode<synchronous>, transform_indices = @transform_8, window_bounds = array<i64: 1, 10>}, {pipeline_mode = #tpu.pipeline_mode<synchronous>, transform_indices = @transform_9, window_bounds = array<i64: 256, 32>}, {pipeline_mode = #tpu.pipeline_mode<synchronous>, transform_indices = @transform_10, window_bounds = array<i64: 1, 32>}, {pipeline_mode = #tpu.pipeline_mode<synchronous>, transform_indices = @transform_11, window_bounds = array<i64: 32, 10>}, {pipeline_mode = #tpu.pipeline_mode<synchronous>, transform_indices = @transform_12, window_bounds = array<i64: 1, 10>}, {pipeline_mode = #tpu.pipeline_mode<synchronous>, transform_indices = @transform_13, window_bounds = array<i64: 2, 10>}, {pipeline_mode = #tpu.pipeline_mode<synchronous>, transform_indices = @transform_14, window_bounds = array<i64: 2, 10>}, {pipeline_mode = #tpu.pipeline_mode<synchronous>, transform_indices = @transform_15, window_bounds = array<i64: 2, 10>}]} {
    %c0 = arith.constant 0 : index
    %c0_0 = arith.constant 0 : index
    %0 = vector.load %arg1[%c0, %c0_0] : memref<2x128xf32, #tpu.memory_space<vmem>>, vector<2x128xf32>
    %c0_1 = arith.constant 0 : index
    %c0_2 = arith.constant 0 : index
    %1 = vector.load %arg4[%c0_1, %c0_2] : memref<128x10xf32, #tpu.memory_space<vmem>>, vector<128x10xf32>
    %cst = arith.constant dense<0.000000e+00> : vector<2x10xf32>
    %2 = tpu.matmul %0, %1, %cst {dimension_numbers = #tpu.dot_dimension_numbers<[1], [0], [0], [1], [0, 0, 1, 1], [], []>} : vector<2x128xf32>, vector<128x10xf32>, vector<2x10xf32> -> vector<2x10xf32>
    %c0_3 = arith.constant 0 : index
    %c0_4 = arith.constant 0 : index
    %3 = vector.load %arg5[%c0_3, %c0_4] : memref<1x10xf32, #tpu.memory_space<vmem>>, vector<1x10xf32>
    %4 = vector.broadcast %3 : vector<1x10xf32> to vector<2x10xf32>
    %5 = arith.addf %2, %4 : vector<2x10xf32>
    %c0_5 = arith.constant 0 : index
    %c0_6 = arith.constant 0 : index
    %6 = vector.load %arg14[%c0_5, %c0_6] : memref<2x10xf32, #tpu.memory_space<vmem>>, vector<2x10xf32>
    tpu.vector_store %arg14[%c0_5, %c0_6], %5 {strides = array<i32>} : memref<2x10xf32, #tpu.memory_space<vmem>>, vector<2x10xf32>,
    %c0_7 = arith.constant 0 : index
    %c0_8 = arith.constant 0 : index
    %7 = vector.load %arg2[%c0_7, %c0_8] : memref<2x256xf32, #tpu.memory_space<vmem>>, vector<2x256xf32>
    %c0_9 = arith.constant 0 : index
    %c0_10 = arith.constant 0 : index
    %8 = vector.load %arg6[%c0_9, %c0_10] : memref<256x32xf32, #tpu.memory_space<vmem>>, vector<256x32xf32>
    %cst_11 = arith.constant dense<0.000000e+00> : vector<2x32xf32>
    %9 = tpu.matmul %7, %8, %cst_11 {dimension_numbers = #tpu.dot_dimension_numbers<[1], [0], [0], [1], [0, 0, 1, 1], [], []>} : vector<2x256xf32>, vector<256x32xf32>, vector<2x32xf32> -> vector<2x32xf32>
    %c0_12 = arith.constant 0 : index
    %c0_13 = arith.constant 0 : index
    %10 = vector.load %arg7[%c0_12, %c0_13] : memref<1x32xf32, #tpu.memory_space<vmem>>, vector<1x32xf32>
    %11 = vector.broadcast %10 : vector<1x32xf32> to vector<2x32xf32>
    %12 = arith.addf %9, %11 : vector<2x32xf32>
    %c0_14 = arith.constant 0 : index
    %c0_15 = arith.constant 0 : index
    %13 = vector.load %arg8[%c0_14, %c0_15] : memref<32x10xf32, #tpu.memory_space<vmem>>, vector<32x10xf32>
    %cst_16 = arith.constant dense<0.000000e+00> : vector<2x10xf32>
    %14 = tpu.matmul %12, %13, %cst_16 {dimension_numbers = #tpu.dot_dimension_numbers<[1], [0], [0], [1], [0, 0, 1, 1], [], []>} : vector<2x32xf32>, vector<32x10xf32>, vector<2x10xf32> -> vector<2x10xf32>
    %c0_17 = arith.constant 0 : index
    %c0_18 = arith.constant 0 : index
    %15 = vector.load %arg9[%c0_17, %c0_18] : memref<1x10xf32, #tpu.memory_space<vmem>>, vector<1x10xf32>
    %16 = vector.broadcast %15 : vector<1x10xf32> to vector<2x10xf32>
    %17 = arith.addf %14, %16 : vector<2x10xf32>
    %c0_19 = arith.constant 0 : index
    %c0_20 = arith.constant 0 : index
    %18 = vector.load %arg16[%c0_19, %c0_20] : memref<2x10xf32, #tpu.memory_space<vmem>>, vector<2x10xf32>
    tpu.vector_store %arg16[%c0_19, %c0_20], %17 {strides = array<i32>} : memref<2x10xf32, #tpu.memory_space<vmem>>, vector<2x10xf32>,
    %c0_21 = arith.constant 0 : index
    %c0_22 = arith.constant 0 : index
    %19 = vector.load %arg3[%c0_21, %c0_22] : memref<2x256xf32, #tpu.memory_space<vmem>>, vector<2x256xf32>
    %c0_23 = arith.constant 0 : index
    %c0_24 = arith.constant 0 : index
    %20 = vector.load %arg10[%c0_23, %c0_24] : memref<256x32xf32, #tpu.memory_space<vmem>>, vector<256x32xf32>
    %cst_25 = arith.constant dense<0.000000e+00> : vector<2x32xf32>
    %21 = tpu.matmul %19, %20, %cst_25 {dimension_numbers = #tpu.dot_dimension_numbers<[1], [0], [0], [1], [0, 0, 1, 1], [], []>} : vector<2x256xf32>, vector<256x32xf32>, vector<2x32xf32> -> vector<2x32xf32>
    %c0_26 = arith.constant 0 : index
    %c0_27 = arith.constant 0 : index
    %22 = vector.load %arg11[%c0_26, %c0_27] : memref<1x32xf32, #tpu.memory_space<vmem>>, vector<1x32xf32>
    %23 = vector.broadcast %22 : vector<1x32xf32> to vector<2x32xf32>
    %24 = arith.addf %21, %23 : vector<2x32xf32>
    %c0_28 = arith.constant 0 : index
    %c0_29 = arith.constant 0 : index
    %25 = vector.load %arg12[%c0_28, %c0_29] : memref<32x10xf32, #tpu.memory_space<vmem>>, vector<32x10xf32>
    %cst_30 = arith.constant dense<0.000000e+00> : vector<2x10xf32>
    %26 = tpu.matmul %24, %25, %cst_30 {dimension_numbers = #tpu.dot_dimension_numbers<[1], [0], [0], [1], [0, 0, 1, 1], [], []>} : vector<2x32xf32>, vector<32x10xf32>, vector<2x10xf32> -> vector<2x10xf32>
    %c0_31 = arith.constant 0 : index
    %c0_32 = arith.constant 0 : index
    %27 = vector.load %arg13[%c0_31, %c0_32] : memref<1x10xf32, #tpu.memory_space<vmem>>, vector<1x10xf32>
    %28 = vector.broadcast %27 : vector<1x10xf32> to vector<2x10xf32>
    %29 = arith.addf %26, %28 : vector<2x10xf32>
    %c0_33 = arith.constant 0 : index
    %c0_34 = arith.constant 0 : index
    %30 = vector.load %arg15[%c0_33, %c0_34] : memref<2x10xf32, #tpu.memory_space<vmem>>, vector<2x10xf32>
    tpu.vector_store %arg15[%c0_33, %c0_34], %29 {strides = array<i32>} : memref<2x10xf32, #tpu.memory_space<vmem>>, vector<2x10xf32>,
    return
  }
  func.func @transform_0(%arg0: i32) -> (i32, i32) {
    %c0_i32 = arith.constant 0 : i32
    %c0_i32_0 = arith.constant 0 : i32
    %c0_i32_1 = arith.constant 0 : i32
    return %c0_i32, %c0_i32_0 : i32, i32
  }
  func.func @transform_1(%arg0: i32) -> (i32, i32) {
    %c0_i32 = arith.constant 0 : i32
    %c0_i32_0 = arith.constant 0 : i32
    %c0_i32_1 = arith.constant 0 : i32
    return %c0_i32, %c0_i32_0 : i32, i32
  }
  func.func @transform_2(%arg0: i32) -> (i32, i32) {
    %c0_i32 = arith.constant 0 : i32
    %c0_i32_0 = arith.constant 0 : i32
    %c0_i32_1 = arith.constant 0 : i32
    return %c0_i32, %c0_i32_0 : i32, i32
  }
  func.func @transform_3(%arg0: i32) -> (i32, i32) {
    %c0_i32 = arith.constant 0 : i32
    %c0_i32_0 = arith.constant 0 : i32
    %c0_i32_1 = arith.constant 0 : i32
    return %c0_i32, %c0_i32_0 : i32, i32
  }
  func.func @transform_4(%arg0: i32) -> (i32, i32) {
    %c0_i32 = arith.constant 0 : i32
    %c0_i32_0 = arith.constant 0 : i32
    %c0_i32_1 = arith.constant 0 : i32
    return %c0_i32, %c0_i32_0 : i32, i32
  }
  func.func @transform_5(%arg0: i32) -> (i32, i32) {
    %c0_i32 = arith.constant 0 : i32
    %c0_i32_0 = arith.constant 0 : i32
    %c0_i32_1 = arith.constant 0 : i32
    return %c0_i32, %c0_i32_0 : i32, i32
  }
  func.func @transform_6(%arg0: i32) -> (i32, i32) {
    %c0_i32 = arith.constant 0 : i32
    %c0_i32_0 = arith.constant 0 : i32
    %c0_i32_1 = arith.constant 0 : i32
    return %c0_i32, %c0_i32_0 : i32, i32
  }
  func.func @transform_7(%arg0: i32) -> (i32, i32) {
    %c0_i32 = arith.constant 0 : i32
    %c0_i32_0 = arith.constant 0 : i32
    %c0_i32_1 = arith.constant 0 : i32
    return %c0_i32, %c0_i32_0 : i32, i32
  }
  func.func @transform_8(%arg0: i32) -> (i32, i32) {
    %c0_i32 = arith.constant 0 : i32
    %c0_i32_0 = arith.constant 0 : i32
    %c0_i32_1 = arith.constant 0 : i32
    return %c0_i32, %c0_i32_0 : i32, i32
  }
  func.func @transform_9(%arg0: i32) -> (i32, i32) {
    %c0_i32 = arith.constant 0 : i32
    %c0_i32_0 = arith.constant 0 : i32
    %c0_i32_1 = arith.constant 0 : i32
    return %c0_i32, %c0_i32_0 : i32, i32
  }
  func.func @transform_10(%arg0: i32) -> (i32, i32) {
    %c0_i32 = arith.constant 0 : i32
    %c0_i32_0 = arith.constant 0 : i32
    %c0_i32_1 = arith.constant 0 : i32
    return %c0_i32, %c0_i32_0 : i32, i32
  }
  func.func @transform_11(%arg0: i32) -> (i32, i32) {
    %c0_i32 = arith.constant 0 : i32
    %c0_i32_0 = arith.constant 0 : i32
    %c0_i32_1 = arith.constant 0 : i32
    return %c0_i32, %c0_i32_0 : i32, i32
  }
  func.func @transform_12(%arg0: i32) -> (i32, i32) {
    %c0_i32 = arith.constant 0 : i32
    %c0_i32_0 = arith.constant 0 : i32
    %c0_i32_1 = arith.constant 0 : i32
    return %c0_i32, %c0_i32_0 : i32, i32
  }
  func.func @transform_13(%arg0: i32) -> (i32, i32) {
    %c0_i32 = arith.constant 0 : i32
    %c0_i32_0 = arith.constant 0 : i32
    %c0_i32_1 = arith.constant 0 : i32
    return %c0_i32, %c0_i32_0 : i32, i32
  }
  func.func @transform_14(%arg0: i32) -> (i32, i32) {
    %c0_i32 = arith.constant 0 : i32
    %c0_i32_0 = arith.constant 0 : i32
    %c0_i32_1 = arith.constant 0 : i32
    return %c0_i32, %c0_i32_0 : i32, i32
  }
  func.func @transform_15(%arg0: i32) -> (i32, i32) {
    %c0_i32 = arith.constant 0 : i32
    %c0_i32_0 = arith.constant 0 : i32
    %c0_i32_1 = arith.constant 0 : i32
    return %c0_i32, %c0_i32_0 : i32, i32
  }
}

</mosaic_0001>

<bundles_post_ra>
// kernel: forward.7
= control target key start
LH: loop header
LB: loop body
LE: loop exit
PB: predicated region body
PF: predicated region fallthrough
CT: control target
= control target key end

     0   :  { %v1343_v0 = vmov 0.0|0.0   ;;  %vm1344_vm0 = vmmov 0   ;;  %v1345_v6 = vmov 0.0   ;;  %vm77_vm1 = vcmask 1042432   ;;  %s1927_s1 = inlined_call_operand.vmem [shape: f32[75,8], index: 1, kind: input, shape index: {}]   ;;  %s1928_s0 = inlined_call_operand.vmem [shape: f32[4,98,75], index: 0, kind: input, shape index: {}]   ;;  %s1929_s2 = inlined_call_operand.vmem [shape: f32[1,8], index: 2, kind: input, shape index: {}]   ;;  %s1930_s3 = inlined_call_operand.vmem [shape: f32[98,8], index: 3, kind: output, shape index: {}]  }
   0x1   :  { %1275 = vmatprep.subr.bf16.mxu0 %v1343_v0  ;;  %v14_v1 = vld [vmem:[%s1927_s1] sm:$0xff]  ;;  %v15_v2 = vld [vmem:[%s1927_s1 + $0x8] sm:$0xff]  ;;  %1291 = vmatprep.subr.bf16.mxu1 %v1343_v0  ;;  %v16_v3 = vld [vmem:[%s1927_s1 + $0x10] sm:$0xff]  ;;  %vm1346_vm2 = vmmov 1   ;;  %vm37_vm4 = vcmask 613376   ;;  %vm832_vm5 = vcmask 64512  }
   0x2   :  { %v1276_v4 = vpack.c.bf16 %v15_v2, %v14_v1  ;;  %v17_v5 = vld [vmem:[%s1927_s1 + $0x18] sm:$0xff]  ;;  %1059 = vmatprep.mubr.msk.f32.mxu0 %vm1344_vm0, %v1345_v6  ;;  %1118 = vmatprep.mubr.msk.f32.mxu1 %vm1344_vm0, %v1345_v6  ;;  %v18_v8 = vld [vmem:[%s1927_s1 + $0x20] sm:$0xff]  ;;  %v19_v9 = vld [vmem:[%s1927_s1 + $0x28] sm:$0xff]  ;;  %vm845_vm6 = vcmask 58368  }
   0x3   :  { %v1279_v7 = vpack.c.bf16 %v17_v5, %v16_v3  ;;  %v1282_v10 = vpack.c.bf16 %v19_v9, %v18_v8  ;;  %v20_v11 = vld [vmem:[%s1927_s1 + $0x30] sm:$0xff]  ;;  %v21_v12 = vld [vmem:[%s1927_s1 + $0x38] sm:$0xff]  ;;  %v22_v14 = vld [vmem:[%s1927_s1 + $0x40] sm:$0xff] }
   0x4   :  { %1277 = vmatpush3.bf16.msra.mxu0 %v1276_v4  ;;  %1293 = vmatpush3.bf16.msra.mxu1 %v1276_v4  ;;  %v1285_v13 = vpack.c.bf16 %v21_v12, %v20_v11  ;;  %v23_v15 = vld [vmem:[%s1927_s1 + $0x48] sm:$0x7]  ;;  %vm1410_vm3 = vmpackc.low %vm77_vm1, %vm1346_vm2  ;;  %v24_v18 = vld [vmem:[%s1928_s0] sm:$0xff] }
   0x5   :  { %1278 = vmatprep.subr.bf16.mxu0 %v1343_v0  ;;  %1294 = vmatprep.subr.bf16.mxu1 %v1343_v0  ;;  %v1288_v16 = vpack.c.bf16 %v23_v15, %v22_v14  ;;  %v865_v19 = vld [vmem:[%s1928_s0 + $0x68] sm:$0xff]  ;;  %v866_v21 = vld [vmem:[%s1928_s0 + $0x70] sm:$0xff]  ;;  %v867_v23 = vld [vmem:[%s1928_s0 + $0x78] sm:$0xff] }
   0x6   :  { %v25_v20 = vld [vmem:[%s1928_s0 + $0x8] sm:$0xff]  ;;  %v26_v22 = vld [vmem:[%s1928_s0 + $0x10] sm:$0xff]  ;;  %v27_v24 = vld [vmem:[%s1928_s0 + $0x18] sm:$0xff] }
   0x7   :  { %v868_v25 = vld [vmem:[%s1928_s0 + $0x80] sm:$0xff]  ;;  %v869_v27 = vld [vmem:[%s1928_s0 + $0x88] sm:$0xff]  ;;  %v870_v29 = vld [vmem:[%s1928_s0 + $0x90] sm:$0xff] }
   0x8   :  { %1280 = vmatpush3.bf16.msra.mxu0 %v1279_v7  ;;  %1296 = vmatpush3.bf16.msra.mxu1 %v1279_v7  ;;  %v28_v26 = vld [vmem:[%s1928_s0 + $0x20] sm:$0xff]  ;;  %v29_v28 = vld [vmem:[%s1928_s0 + $0x28] sm:$0xff]  ;;  %v30_v30 = vld [vmem:[%s1928_s0 + $0x30] sm:$0xff] }
   0x9   :  { %1281 = vmatprep.subr.bf16.mxu0 %v1343_v0  ;;  %1297 = vmatprep.subr.bf16.mxu1 %v1343_v0  ;;  %v871_v31 = vld [vmem:[%s1928_s0 + $0x98] sm:$0xff]  ;;  %v872_v33 = vld [vmem:[%s1928_s0 + $0xa0] sm:$0xff]  ;;  %v873_v35 = vld [vmem:[%s1928_s0 + $0xa8] sm:$0xff] }
   0xa   :  { %v31_v32 = vld [vmem:[%s1928_s0 + $0x38] sm:$0xff]  ;;  %v32_v34 = vld [vmem:[%s1928_s0 + $0x40] sm:$0xff]  ;;  %v33_v36 = vld [vmem:[%s1928_s0 + $0x48] sm:$0xff] }
   0xb   :  { %v874_v37 = vld [vmem:[%s1928_s0 + $0xb0] sm:$0xff]  ;;  %v875_v39 = vld [vmem:[%s1928_s0 + $0xb8] sm:$0xff]  ;;  %v876_v41 = vld [vmem:[%s1928_s0 + $0xc0] sm:$0xff] }
   0xc   :  { %1283 = vmatpush3.bf16.msra.mxu0 %v1282_v10  ;;  %1299 = vmatpush3.bf16.msra.mxu1 %v1282_v10  ;;  %v34_v38 = vld [vmem:[%s1928_s0 + $0x50] sm:$0xff]  ;;  %v35_v40 = vld [vmem:[%s1928_s0 + $0x58] sm:$0xff]  ;;  %v36_v42 = vld [vmem:[%s1928_s0 + $0x60] sm:$0x3] }
   0xd   :  { %1284 = vmatprep.subr.bf16.mxu0 %v1343_v0  ;;  %1300 = vmatprep.subr.bf16.mxu1 %v1343_v0  ;;  %v877_v43 = vld [vmem:[%s1928_s0 + $0xc8] sm:$0x3]  ;;  %v892_v44 = vld [vmem:[%s1928_s0 + $0xd0] sm:$0xff]  ;;  %v919_v45 = vld [vmem:[%s1928_s0 + $0x138] sm:$0xff] }
   0xe   :  { %v893_v46 = vld [vmem:[%s1928_s0 + $0xd8] sm:$0xff]  ;;  %v920_v47 = vld [vmem:[%s1928_s0 + $0x140] sm:$0xff]  ;;  %v921_v49 = vld [vmem:[%s1928_s0 + $0x148] sm:$0xff] }
   0xf   :  { %v894_v48 = vld [vmem:[%s1928_s0 + $0xe0] sm:$0xff]  ;;  %v895_v50 = vld [vmem:[%s1928_s0 + $0xe8] sm:$0xff]  ;;  %v922_v51 = vld [vmem:[%s1928_s0 + $0x150] sm:$0xff] }
  0x10   :  { %1286 = vmatpush3.bf16.msra.mxu0 %v1285_v13  ;;  %1302 = vmatpush3.bf16.msra.mxu1 %v1285_v13  ;;  %v896_v52 = vld [vmem:[%s1928_s0 + $0xf0] sm:$0xff]  ;;  %v923_v53 = vld [vmem:[%s1928_s0 + $0x158] sm:$0xff]  ;;  %v924_v55 = vld [vmem:[%s1928_s0 + $0x160] sm:$0xff] }
  0x11   :  { %1287 = vmatprep.subr.bf16.mxu0 %v1343_v0  ;;  %1303 = vmatprep.subr.bf16.mxu1 %v1343_v0  ;;  %v897_v54 = vld [vmem:[%s1928_s0 + $0xf8] sm:$0xff]  ;;  %v898_v56 = vld [vmem:[%s1928_s0 + $0x100] sm:$0xff]  ;;  %v925_v57 = vld [vmem:[%s1928_s0 + $0x168] sm:$0xff] }
  0x12   :  { %v899_v58 = vld [vmem:[%s1928_s0 + $0x108] sm:$0xff]  ;;  %v926_v59 = vld [vmem:[%s1928_s0 + $0x170] sm:$0xff]  ;;  %v927_v61 = vld [vmem:[%s1928_s0 + $0x178] sm:$0xff] }
  0x13   :  { %v900_v60 = vld [vmem:[%s1928_s0 + $0x110] sm:$0xff]  ;;  %v901_v62 = vld [vmem:[%s1928_s0 + $0x118] sm:$0xff]  ;;  %v928_v63 = vld [vmem:[%s1928_s0 + $0x180] sm:$0xff] }
  0x14   :  { %1290 = vmatpush3.bf16.msk.msra.mxu0 %vm1410_vm3, %v1288_v16  ;;  %1306 = vmatpush3.bf16.msk.msra.mxu1 %vm1410_vm3, %v1288_v16  ;;  %v929_v1 = vld [vmem:[%s1928_s0 + $0x188] sm:$0xff]  ;;  %v930_v3 = vld [vmem:[%s1928_s0 + $0x190] sm:$0xff]  ;;  %v931_v5 = vld [vmem:[%s1928_s0 + $0x198] sm:$0x3] }
  0x15   :  { %1307 = vmatprep.subr.bf16.mxu0 %v1343_v0  ;;  %1323 = vmatprep.subr.bf16.mxu1 %v1343_v0  ;;  %v903_v2 = vld [vmem:[%s1928_s0 + $0x128] sm:$0xff] }
  0x17   :  { %1060 = vmatmul.mubr.msk.f32.vlgmr.msra.gmra.mrb[0].mxu0 %vm37_vm4, %v24_v18  ;;  %1119 = vmatmul.mubr.msk.f32.vlgmr.msra.gmra.mrb[0].mxu1 %vm37_vm4, %v865_v19 }
  0x18   :  { %1309 = vmatpush3.bf16.msra.mxu0 %v1276_v4  ;;  %1062 = vmatprep.mubr.msk.f32.mxu0 %vm1344_vm0, %v1345_v6 }
  0x19   :  { %1325 = vmatpush3.bf16.msra.mxu1 %v1276_v4  ;;  %1121 = vmatprep.mubr.msk.f32.mxu1 %vm1344_vm0, %v1345_v6  ;;  %v904_v4 = vld [vmem:[%s1928_s0 + $0x130] sm:$0x3] }
  0x1a   :  { %1310 = vmatprep.subr.bf16.mxu0 %v1343_v0  ;;  %1326 = vmatprep.subr.bf16.mxu1 %v1343_v0 }
  0x1b   :  { %1063 = vmatmul.mubr.msk.f32.gmra.mrb[2].mxu0 %vm37_vm4, %v25_v20  ;;  %1122 = vmatmul.mubr.msk.f32.gmra.mrb[2].mxu1 %vm37_vm4, %v866_v21 }
  0x1c   :  { %1065 = vmatprep.mubr.msk.f32.mxu0 %vm1344_vm0, %v1345_v6  ;;  %1124 = vmatprep.mubr.msk.f32.mxu1 %vm1344_vm0, %v1345_v6 }
  0x1d   :  { %1312 = vmatpush3.bf16.msra.mxu0 %v1279_v7  ;;  %1328 = vmatpush3.bf16.msra.mxu1 %v1279_v7 }
  0x1e   :  { %1313 = vmatprep.subr.bf16.mxu0 %v1343_v0  ;;  %1329 = vmatprep.subr.bf16.mxu1 %v1343_v0 }
  0x1f   :  { %1066 = vmatmul.mubr.msk.f32.gmra.mrb[4].mxu0 %vm37_vm4, %v26_v22  ;;  %1125 = vmatmul.mubr.msk.f32.gmra.mrb[4].mxu1 %vm37_vm4, %v867_v23 }
  0x20   :  { %1068 = vmatprep.mubr.msk.f32.mxu0 %vm1344_vm0, %v1345_v6  ;;  %1127 = vmatprep.mubr.msk.f32.mxu1 %vm1344_vm0, %v1345_v6 }
  0x21   :  { %1315 = vmatpush3.bf16.msra.mxu0 %v1282_v10  ;;  %1331 = vmatpush3.bf16.msra.mxu1 %v1282_v10 }
  0x22   :  { %1316 = vmatprep.subr.bf16.mxu0 %v1343_v0  ;;  %1332 = vmatprep.subr.bf16.mxu1 %v1343_v0 }
  0x23   :  { %1069 = vmatmul.mubr.msk.f32.gmra.mrb[6].mxu0 %vm37_vm4, %v27_v24  ;;  %1128 = vmatmul.mubr.msk.f32.gmra.mrb[6].mxu1 %vm37_vm4, %v868_v25 }
  0x24   :  { %1071 = vmatprep.mubr.msk.f32.mxu0 %vm1344_vm0, %v1345_v6  ;;  %1130 = vmatprep.mubr.msk.f32.mxu1 %vm1344_vm0, %v1345_v6 }
  0x25   :  { %1318 = vmatpush3.bf16.msra.mxu0 %v1285_v13  ;;  %1334 = vmatpush3.bf16.msra.mxu1 %v1285_v13 }
  0x26   :  { %1319 = vmatprep.subr.bf16.mxu0 %v1343_v0  ;;  %1335 = vmatprep.subr.bf16.mxu1 %v1343_v0  ;;  %v902_v0 = vld [vmem:[%s1928_s0 + $0x120] sm:$0xff] }
  0x27   :  { %1072 = vmatmul.mubr.msk.f32.gmra.mrb[8].mxu0 %vm37_vm4, %v28_v26  ;;  %1131 = vmatmul.mubr.msk.f32.gmra.mrb[8].mxu1 %vm37_vm4, %v869_v27 }
  0x28   :  { %1074 = vmatprep.mubr.msk.f32.mxu0 %vm1344_vm0, %v1345_v6  ;;  %1133 = vmatprep.mubr.msk.f32.mxu1 %vm1344_vm0, %v1345_v6 }
  0x29   :  { %1322 = vmatpush3.bf16.msk.msra.mxu0 %vm1410_vm3, %v1288_v16  ;;  %1338 = vmatpush3.bf16.msk.msra.mxu1 %vm1410_vm3, %v1288_v16 }
  0x2b   :  { %1075 = vmatmul.mubr.msk.f32.gmra.mrb[10].mxu0 %vm37_vm4, %v29_v28  ;;  %1134 = vmatmul.mubr.msk.f32.gmra.mrb[10].mxu1 %vm37_vm4, %v870_v29 }
  0x2c   :  { %1077 = vmatprep.mubr.msk.f32.mxu0 %vm1344_vm0, %v1345_v6  ;;  %1136 = vmatprep.mubr.msk.f32.mxu1 %vm1344_vm0, %v1345_v6 }
  0x2f   :  { %1078 = vmatmul.mubr.msk.f32.gmra.mrb[12].mxu0 %vm37_vm4, %v30_v30  ;;  %1137 = vmatmul.mubr.msk.f32.gmra.mrb[12].mxu1 %vm37_vm4, %v871_v31 }
  0x30   :  { %1080 = vmatprep.mubr.msk.f32.mxu0 %vm1344_vm0, %v1345_v6  ;;  %1139 = vmatprep.mubr.msk.f32.mxu1 %vm1344_vm0, %v1345_v6 }
  0x33   :  { %1081 = vmatmul.mubr.msk.f32.gmra.mrb[14].mxu0 %vm37_vm4, %v31_v32  ;;  %1140 = vmatmul.mubr.msk.f32.gmra.mrb[14].mxu1 %vm37_vm4, %v872_v33 }
  0x34   :  { %1083 = vmatprep.mubr.msk.f32.mxu0 %vm1344_vm0, %v1345_v6  ;;  %1142 = vmatprep.mubr.msk.f32.mxu1 %vm1344_vm0, %v1345_v6 }
  0x37   :  { %1084 = vmatmul.mubr.msk.f32.gmra.mrb[16].mxu0 %vm37_vm4, %v32_v34  ;;  %1143 = vmatmul.mubr.msk.f32.gmra.mrb[16].mxu1 %vm37_vm4, %v873_v35 }
  0x38   :  { %1086 = vmatprep.mubr.msk.f32.mxu0 %vm1344_vm0, %v1345_v6  ;;  %1145 = vmatprep.mubr.msk.f32.mxu1 %vm1344_vm0, %v1345_v6 }
  0x3b   :  { %1087 = vmatmul.mubr.msk.f32.gmra.mrb[18].mxu0 %vm37_vm4, %v33_v36  ;;  %1146 = vmatmul.mubr.msk.f32.gmra.mrb[18].mxu1 %vm37_vm4, %v874_v37 }
  0x3c   :  { %1089 = vmatprep.mubr.msk.f32.mxu0 %vm1344_vm0, %v1345_v6  ;;  %1148 = vmatprep.mubr.msk.f32.mxu1 %vm1344_vm0, %v1345_v6 }
  0x3f   :  { %1090 = vmatmul.mubr.msk.f32.gmra.mrb[20].mxu0 %vm37_vm4, %v34_v38  ;;  %1149 = vmatmul.mubr.msk.f32.gmra.mrb[20].mxu1 %vm37_vm4, %v875_v39 }
  0x40   :  { %1092 = vmatprep.mubr.msk.f32.mxu0 %vm1344_vm0, %v1345_v6  ;;  %1151 = vmatprep.mubr.msk.f32.mxu1 %vm1344_vm0, %v1345_v6 }
  0x43   :  { %1093 = vmatmul.mubr.msk.f32.gmra.mrb[22].mxu0 %vm37_vm4, %v35_v40  ;;  %1152 = vmatmul.mubr.msk.f32.gmra.mrb[22].mxu1 %vm37_vm4, %v876_v41 }
  0x44   :  { %1095 = vmatprep.mubr.msk.f32.mxu0 %vm1344_vm0, %v1345_v6  ;;  %1154 = vmatprep.mubr.msk.f32.mxu1 %vm1344_vm0, %v1345_v6 }
  0x47   :  { %1096 = vmatmul.mubr.msk.f32.gmra.mrb[24].mxu0 %vm37_vm4, %v36_v42  ;;  %1155 = vmatmul.mubr.msk.f32.gmra.mrb[24].mxu1 %vm37_vm4, %v877_v43 }
  0x48   :  { %1177 = vmatprep.mubr.msk.f32.mxu0 %vm1344_vm0, %v1345_v6  ;;  %1236 = vmatprep.mubr.msk.f32.mxu1 %vm1344_vm0, %v1345_v6 }
  0x4b   :  { %1178 = vmatmul.mubr.msk.f32.vlgmr.msra.gmra.mrb[26].mxu0 %vm37_vm4, %v892_v44  ;;  %1237 = vmatmul.mubr.msk.f32.vlgmr.msra.gmra.mrb[26].mxu1 %vm37_vm4, %v919_v45 }
  0x4c   :  { %1180 = vmatprep.mubr.msk.f32.mxu0 %vm1344_vm0, %v1345_v6  ;;  %1239 = vmatprep.mubr.msk.f32.mxu1 %vm1344_vm0, %v1345_v6 }
  0x4f   :  { %1181 = vmatmul.mubr.msk.f32.gmra.mrb[28].mxu0 %vm37_vm4, %v893_v46  ;;  %1240 = vmatmul.mubr.msk.f32.gmra.mrb[28].mxu1 %vm37_vm4, %v920_v47 }
  0x50   :  { %1183 = vmatprep.mubr.msk.f32.mxu0 %vm1344_vm0, %v1345_v6  ;;  %1242 = vmatprep.mubr.msk.f32.mxu1 %vm1344_vm0, %v1345_v6 }
  0x53   :  { %1184 = vmatmul.mubr.msk.f32.gmra.mrb[30].mxu0 %vm37_vm4, %v894_v48  ;;  %1243 = vmatmul.mubr.msk.f32.gmra.mrb[30].mxu1 %vm37_vm4, %v921_v49 }
  0x54   :  { %1186 = vmatprep.mubr.msk.f32.mxu0 %vm1344_vm0, %v1345_v6  ;;  %1245 = vmatprep.mubr.msk.f32.mxu1 %vm1344_vm0, %v1345_v6 }
  0x57   :  { %1187 = vmatmul.mubr.msk.f32.gmra.mrb[32].mxu0 %vm37_vm4, %v895_v50  ;;  %1246 = vmatmul.mubr.msk.f32.gmra.mrb[32].mxu1 %vm37_vm4, %v922_v51 }
  0x58   :  { %1189 = vmatprep.mubr.msk.f32.mxu0 %vm1344_vm0, %v1345_v6  ;;  %1248 = vmatprep.mubr.msk.f32.mxu1 %vm1344_vm0, %v1345_v6 }
  0x5b   :  { %1190 = vmatmul.mubr.msk.f32.gmra.mrb[34].mxu0 %vm37_vm4, %v896_v52  ;;  %1249 = vmatmul.mubr.msk.f32.gmra.mrb[34].mxu1 %vm37_vm4, %v923_v53 }
  0x5c   :  { %1192 = vmatprep.mubr.msk.f32.mxu0 %vm1344_vm0, %v1345_v6  ;;  %1251 = vmatprep.mubr.msk.f32.mxu1 %vm1344_vm0, %v1345_v6 }
  0x5f   :  { %1193 = vmatmul.mubr.msk.f32.gmra.mrb[36].mxu0 %vm37_vm4, %v897_v54  ;;  %1252 = vmatmul.mubr.msk.f32.gmra.mrb[36].mxu1 %vm37_vm4, %v924_v55 }
  0x60   :  { %1195 = vmatprep.mubr.msk.f32.mxu0 %vm1344_vm0, %v1345_v6  ;;  %1254 = vmatprep.mubr.msk.f32.mxu1 %vm1344_vm0, %v1345_v6 }
  0x63   :  { %1196 = vmatmul.mubr.msk.f32.gmra.mrb[38].mxu0 %vm37_vm4, %v898_v56  ;;  %1255 = vmatmul.mubr.msk.f32.gmra.mrb[38].mxu1 %vm37_vm4, %v925_v57 }
  0x64   :  { %1198 = vmatprep.mubr.msk.f32.mxu0 %vm1344_vm0, %v1345_v6  ;;  %1257 = vmatprep.mubr.msk.f32.mxu1 %vm1344_vm0, %v1345_v6 }
  0x67   :  { %1199 = vmatmul.mubr.msk.f32.gmra.mrb[40].mxu0 %vm37_vm4, %v899_v58  ;;  %1258 = vmatmul.mubr.msk.f32.gmra.mrb[40].mxu1 %vm37_vm4, %v926_v59 }
  0x68   :  { %1201 = vmatprep.mubr.msk.f32.mxu0 %vm1344_vm0, %v1345_v6  ;;  %1260 = vmatprep.mubr.msk.f32.mxu1 %vm1344_vm0, %v1345_v6 }
  0x6b   :  { %1202 = vmatmul.mubr.msk.f32.gmra.mrb[42].mxu0 %vm37_vm4, %v900_v60  ;;  %1261 = vmatmul.mubr.msk.f32.gmra.mrb[42].mxu1 %vm37_vm4, %v927_v61 }
  0x6c   :  { %1204 = vmatprep.mubr.msk.f32.mxu0 %vm1344_vm0, %v1345_v6  ;;  %1263 = vmatprep.mubr.msk.f32.mxu1 %vm1344_vm0, %v1345_v6 }
  0x6f   :  { %1205 = vmatmul.mubr.msk.f32.gmra.mrb[44].mxu0 %vm37_vm4, %v901_v62  ;;  %1264 = vmatmul.mubr.msk.f32.gmra.mrb[44].mxu1 %vm37_vm4, %v928_v63 }
  0x70   :  { %1207 = vmatprep.mubr.msk.f32.mxu0 %vm1344_vm0, %v1345_v6  ;;  %1266 = vmatprep.mubr.msk.f32.mxu1 %vm1344_vm0, %v1345_v6 }
  0x73   :  { %1208 = vmatmul.mubr.msk.f32.gmra.mrb[46].mxu0 %vm37_vm4, %v902_v0  ;;  %1267 = vmatmul.mubr.msk.f32.gmra.mrb[46].mxu1 %vm37_vm4, %v929_v1 }
  0x74   :  { %1210 = vmatprep.mubr.msk.f32.mxu0 %vm1344_vm0, %v1345_v6  ;;  %1269 = vmatprep.mubr.msk.f32.mxu1 %vm1344_vm0, %v1345_v6 }
  0x77   :  { %1211 = vmatmul.mubr.msk.f32.gmra.mrb[48].mxu0 %vm37_vm4, %v903_v2  ;;  %1270 = vmatmul.mubr.msk.f32.gmra.mrb[48].mxu1 %vm37_vm4, %v930_v3 }
  0x78   :  { %1213 = vmatprep.mubr.msk.f32.mxu0 %vm1344_vm0, %v1345_v6  ;;  %1272 = vmatprep.mubr.msk.f32.mxu1 %vm1344_vm0, %v1345_v6 }
  0x7b   :  { %1214 = vmatmul.mubr.msk.f32.gmra.mrb[50].mxu0 %vm37_vm4, %v904_v4  ;;  %1273 = vmatmul.mubr.msk.f32.gmra.mrb[50].mxu1 %vm37_vm4, %v931_v5 }
  0xea   :  { %v1741_v7 = vpop.f32.mrb[0].mxu0  ;;  %v1743_v8 = vpop.f32.mrb[0].mxu1 }
  0xeb   :  { %v1061_v9 = vpop.f32.mrb[1].mxu0  ;;  %v394_v10 = vmax.f32 %v1741_v7, %v1743_v8  ;;  %v1120_v11 = vpop.f32.mrb[1].mxu1 }
  0xee   :  { %v1747_v12 = vpop.f32.mrb[2].mxu0  ;;  %v1749_v6 = vpop.f32.mrb[2].mxu1 }
  0xef   :  { %v1064_v13 = vpop.f32.mrb[3].mxu0  ;;  %v395_v14 = vmax.f32 %v1747_v12, %v1749_v6  ;;  %v1123_v15 = vpop.f32.mrb[3].mxu1 }
  0xf2   :  { %v1753_v16 = vpop.f32.mrb[4].mxu0  ;;  %v1755_v17 = vpop.f32.mrb[4].mxu1 }
  0xf3   :  { %v1067_v18 = vpop.f32.mrb[5].mxu0  ;;  %v396_v19 = vmax.f32 %v1753_v16, %v1755_v17  ;;  %v1126_v20 = vpop.f32.mrb[5].mxu1 }
  0xf6   :  { %v1759_v21 = vpop.f32.mrb[6].mxu0  ;;  %v1761_v22 = vpop.f32.mrb[6].mxu1 }
  0xf7   :  { %v1070_v23 = vpop.f32.mrb[7].mxu0  ;;  %v397_v24 = vmax.f32 %v1759_v21, %v1761_v22  ;;  %v1129_v25 = vpop.f32.mrb[7].mxu1 }
  0xf8   :  { %v1825_v23 = vld [vmem:[%s1929_s2] ss:$0 sm:$0xff] }
  0xfa   :  { %v1765_v26 = vpop.f32.mrb[8].mxu0  ;;  %v1767_v27 = vpop.f32.mrb[8].mxu1 }
  0xfb   :  { %v1073_v28 = vpop.f32.mrb[9].mxu0  ;;  %v398_v29 = vmax.f32 %v1765_v26, %v1767_v27  ;;  %v1132_v30 = vpop.f32.mrb[9].mxu1 }
  0xfe   :  { %v1771_v31 = vpop.f32.mrb[10].mxu0  ;;  %v1773_v32 = vpop.f32.mrb[10].mxu1 }
  0xff   :  { %v1076_v33 = vpop.f32.mrb[11].mxu0  ;;  %v399_v34 = vmax.f32 %v1771_v31, %v1773_v32  ;;  %v1135_v35 = vpop.f32.mrb[11].mxu1 }
 0x102   :  { %v1777_v36 = vpop.f32.mrb[12].mxu0  ;;  %v1779_v37 = vpop.f32.mrb[12].mxu1 }
 0x103   :  { %v1079_v38 = vpop.f32.mrb[13].mxu0  ;;  %v400_v39 = vmax.f32 %v1777_v36, %v1779_v37  ;;  %v1138_v40 = vpop.f32.mrb[13].mxu1 }
 0x106   :  { %v1783_v41 = vpop.f32.mrb[14].mxu0  ;;  %v1785_v42 = vpop.f32.mrb[14].mxu1 }
 0x107   :  { %v1082_v43 = vpop.f32.mrb[15].mxu0  ;;  %v401_v44 = vmax.f32 %v1783_v41, %v1785_v42  ;;  %v1141_v45 = vpop.f32.mrb[15].mxu1 }
 0x10a   :  { %v1789_v46 = vpop.f32.mrb[16].mxu0  ;;  %v1791_v47 = vpop.f32.mrb[16].mxu1 }
 0x10b   :  { %v1085_v48 = vpop.f32.mrb[17].mxu0  ;;  %v402_v49 = vmax.f32 %v1789_v46, %v1791_v47  ;;  %v1144_v50 = vpop.f32.mrb[17].mxu1 }
 0x10e   :  { %v1795_v51 = vpop.f32.mrb[18].mxu0  ;;  %v1797_v52 = vpop.f32.mrb[18].mxu1 }
 0x10f   :  { %v1088_v53 = vpop.f32.mrb[19].mxu0  ;;  %v403_v54 = vmax.f32 %v1795_v51, %v1797_v52  ;;  %v1147_v55 = vpop.f32.mrb[19].mxu1 }
 0x112   :  { %v1801_v56 = vpop.f32.mrb[20].mxu0  ;;  %v1803_v57 = vpop.f32.mrb[20].mxu1 }
 0x113   :  { %v1091_v58 = vpop.f32.mrb[21].mxu0  ;;  %v404_v59 = vmax.f32 %v1801_v56, %v1803_v57  ;;  %v1150_v60 = vpop.f32.mrb[21].mxu1 }
 0x116   :  { %v1807_v61 = vpop.f32.mrb[22].mxu0  ;;  %v1809_v62 = vpop.f32.mrb[22].mxu1 }
 0x117   :  { %v1094_v63 = vpop.f32.mrb[23].mxu0  ;;  %v405_v0 = vmax.f32 %v1807_v61, %v1809_v62  ;;  %v1153_v1 = vpop.f32.mrb[23].mxu1 }
 0x11a   :  { %v1813_v2 = vpop.f32.mrb[24].mxu0  ;;  %v1815_v3 = vpop.f32.mrb[24].mxu1 }
 0x11b   :  { %v1097_v4 = vpop.f32.mrb[25].mxu0  ;;  %v406_v5 = vmax.f32 %v1813_v2, %v1815_v3  ;;  %v1156_v9 = vpop.f32.mrb[25].mxu1 }
 0x11e   :  { %v526_v11 = vpop.f32.mrb[26].mxu0  ;;  %v722_v13 = vpop.f32.mrb[26].mxu1 }
 0x11f   :  { %v590_v15 = vmax.f32 %v394_v10, %v526_v11  ;;  %v1179_v18 = vpop.f32.mrb[27].mxu0  ;;  %v1238_v20 = vpop.f32.mrb[27].mxu1 }
 0x121   :  { %v786_v25 = vmax.f32 %v590_v15, %v722_v13 }
 0x122   :  { %v531_v28 = vpop.f32.mrb[28].mxu0  ;;  %v727_v30 = vpop.f32.mrb[28].mxu1 }
 0x123   :  { %v806_v33 = vadd.f32 %v1825_v23, %v786_v25  ;;  %v591_v35 = vmax.f32 %v395_v14, %v531_v28  ;;  %v1182_v38 = vpop.f32.mrb[29].mxu0  ;;  %v1241_v40 = vpop.f32.mrb[29].mxu1 }
 0x125   :  { %v819_v7 = vmax.f32 %v806_v33, 0.0  ;;  %v787_v8 = vmax.f32 %v591_v35, %v727_v30 }
 0x126   :  { %v536_v10 = vpop.f32.mrb[30].mxu0  ;;  %v732_v43 = vpop.f32.mrb[30].mxu1 }
 0x127   :  { %833 = vst.msk [vmem:[%s1930_s3] sm:$0xff] %vm832_vm5, %v819_v7  ;;  %v807_v45 = vadd.f32 %v1825_v23, %v787_v8  ;;  %v592_v48 = vmax.f32 %v396_v19, %v536_v10  ;;  %v1185_v12 = vpop.f32.mrb[31].mxu0  ;;  %v1244_v6 = vpop.f32.mrb[31].mxu1 }
 0x129   :  { %v820_v14 = vmax.f32 %v807_v45, 0.0  ;;  %v788_v50 = vmax.f32 %v592_v48, %v732_v43 }
 0x12a   :  { %v541_v53 = vpop.f32.mrb[32].mxu0  ;;  %v737_v55 = vpop.f32.mrb[32].mxu1 }
 0x12b   :  { %834 = vst.msk [vmem:[%s1930_s3 + $0x8] sm:$0xff] %vm832_vm5, %v820_v14  ;;  %v808_v58 = vadd.f32 %v1825_v23, %v788_v50  ;;  %v593_v60 = vmax.f32 %v397_v24, %v541_v53  ;;  %v1188_v63 = vpop.f32.mrb[33].mxu0  ;;  %v1247_v16 = vpop.f32.mrb[33].mxu1 }
 0x12d   :  { %v821_v17 = vmax.f32 %v808_v58, 0.0  ;;  %v789_v19 = vmax.f32 %v593_v60, %v737_v55 }
 0x12e   :  { %v546_v1 = vpop.f32.mrb[34].mxu0  ;;  %v742_v4 = vpop.f32.mrb[34].mxu1 }
 0x12f   :  { %835 = vst.msk [vmem:[%s1930_s3 + $0x10] sm:$0xff] %vm832_vm5, %v821_v17  ;;  %v809_v9 = vadd.f32 %v1825_v23, %v789_v19  ;;  %v594_v11 = vmax.f32 %v398_v29, %v546_v1  ;;  %v1191_v13 = vpop.f32.mrb[35].mxu0  ;;  %v1250_v21 = vpop.f32.mrb[35].mxu1 }
 0x131   :  { %v822_v22 = vmax.f32 %v809_v9, 0.0  ;;  %v790_v24 = vmax.f32 %v594_v11, %v742_v4 }
 0x132   :  { %v551_v15 = vpop.f32.mrb[36].mxu0  ;;  %v747_v18 = vpop.f32.mrb[36].mxu1 }
 0x133   :  { %836 = vst.msk [vmem:[%s1930_s3 + $0x18] sm:$0xff] %vm832_vm5, %v822_v22  ;;  %v810_v20 = vadd.f32 %v1825_v23, %v790_v24  ;;  %v595_v25 = vmax.f32 %v399_v34, %v551_v15  ;;  %v1194_v28 = vpop.f32.mrb[37].mxu0  ;;  %v1253_v26 = vpop.f32.mrb[37].mxu1 }
 0x135   :  { %v823_v27 = vmax.f32 %v810_v20, 0.0  ;;  %v791_v29 = vmax.f32 %v595_v25, %v747_v18 }
 0x136   :  { %v556_v30 = vpop.f32.mrb[38].mxu0  ;;  %v752_v33 = vpop.f32.mrb[38].mxu1 }
 0x137   :  { %837 = vst.msk [vmem:[%s1930_s3 + $0x20] sm:$0xff] %vm832_vm5, %v823_v27  ;;  %v811_v35 = vadd.f32 %v1825_v23, %v791_v29  ;;  %v596_v38 = vmax.f32 %v400_v39, %v556_v30  ;;  %v1197_v40 = vpop.f32.mrb[39].mxu0  ;;  %v1256_v31 = vpop.f32.mrb[39].mxu1 }
 0x139   :  { %v824_v32 = vmax.f32 %v811_v35, 0.0  ;;  %v792_v34 = vmax.f32 %v596_v38, %v752_v33 }
 0x13a   :  { %v561_v7 = vpop.f32.mrb[40].mxu0  ;;  %v757_v8 = vpop.f32.mrb[40].mxu1 }
 0x13b   :  { %838 = vst.msk [vmem:[%s1930_s3 + $0x28] sm:$0xff] %vm832_vm5, %v824_v32  ;;  %v812_v10 = vadd.f32 %v1825_v23, %v792_v34  ;;  %v597_v43 = vmax.f32 %v401_v44, %v561_v7  ;;  %v1200_v45 = vpop.f32.mrb[41].mxu0  ;;  %v1259_v36 = vpop.f32.mrb[41].mxu1 }
 0x13d   :  { %v825_v37 = vmax.f32 %v812_v10, 0.0  ;;  %v793_v39 = vmax.f32 %v597_v43, %v757_v8 }
 0x13e   :  { %v566_v48 = vpop.f32.mrb[42].mxu0  ;;  %v762_v12 = vpop.f32.mrb[42].mxu1 }
 0x13f   :  { %839 = vst.msk [vmem:[%s1930_s3 + $0x30] sm:$0xff] %vm832_vm5, %v825_v37  ;;  %v813_v6 = vadd.f32 %v1825_v23, %v793_v39  ;;  %v598_v14 = vmax.f32 %v402_v49, %v566_v48  ;;  %v1203_v50 = vpop.f32.mrb[43].mxu0  ;;  %v1262_v41 = vpop.f32.mrb[43].mxu1 }
 0x141   :  { %v826_v42 = vmax.f32 %v813_v6, 0.0  ;;  %v794_v44 = vmax.f32 %v598_v14, %v762_v12 }
 0x142   :  { %v571_v53 = vpop.f32.mrb[44].mxu0  ;;  %v767_v55 = vpop.f32.mrb[44].mxu1 }
 0x143   :  { %840 = vst.msk [vmem:[%s1930_s3 + $0x38] sm:$0xff] %vm832_vm5, %v826_v42  ;;  %v814_v58 = vadd.f32 %v1825_v23, %v794_v44  ;;  %v599_v60 = vmax.f32 %v403_v54, %v571_v53  ;;  %v1206_v63 = vpop.f32.mrb[45].mxu0  ;;  %v1265_v46 = vpop.f32.mrb[45].mxu1 }
 0x145   :  { %v827_v47 = vmax.f32 %v814_v58, 0.0  ;;  %v795_v49 = vmax.f32 %v599_v60, %v767_v55 }
 0x146   :  { %v576_v16 = vpop.f32.mrb[46].mxu0  ;;  %v772_v17 = vpop.f32.mrb[46].mxu1 }
 0x147   :  { %841 = vst.msk [vmem:[%s1930_s3 + $0x40] sm:$0xff] %vm832_vm5, %v827_v47  ;;  %v815_v19 = vadd.f32 %v1825_v23, %v795_v49  ;;  %v600_v1 = vmax.f32 %v404_v59, %v576_v16  ;;  %v1209_v4 = vpop.f32.mrb[47].mxu0  ;;  %v1268_v51 = vpop.f32.mrb[47].mxu1 }
 0x149   :  { %v828_v52 = vmax.f32 %v815_v19, 0.0  ;;  %v796_v54 = vmax.f32 %v600_v1, %v772_v17 }
 0x14a   :  { %v581_v9 = vpop.f32.mrb[48].mxu0  ;;  %v777_v11 = vpop.f32.mrb[48].mxu1 }
 0x14b   :  { %842 = vst.msk [vmem:[%s1930_s3 + $0x48] sm:$0xff] %vm832_vm5, %v828_v52  ;;  %v816_v13 = vadd.f32 %v1825_v23, %v796_v54  ;;  %v601_v21 = vmax.f32 %v405_v0, %v581_v9  ;;  %v1212_v22 = vpop.f32.mrb[49].mxu0  ;;  %v1271_v56 = vpop.f32.mrb[49].mxu1 }
 0x14d   :  { %v829_v57 = vmax.f32 %v816_v13, 0.0  ;;  %v797_v59 = vmax.f32 %v601_v21, %v777_v11 }
 0x14e   :  { %v586_v24 = vpop.f32.mrb[50].mxu0  ;;  %v782_v15 = vpop.f32.mrb[50].mxu1 }
 0x14f   :  { %843 = vst.msk [vmem:[%s1930_s3 + $0x50] sm:$0xff] %vm832_vm5, %v829_v57  ;;  %v817_v18 = vadd.f32 %v1825_v23, %v797_v59  ;;  %v602_v20 = vmax.f32 %v406_v5, %v586_v24  ;;  %v1215_v25 = vpop.f32.mrb[51].mxu0  ;;  %v1274_v61 = vpop.f32.mrb[51].mxu1 }
 0x151   :  { %v830_v62 = vmax.f32 %v817_v18, 0.0  ;;  %v798_v0 = vmax.f32 %v602_v20, %v782_v15 }
 0x153   :  { %844 = vst.msk [vmem:[%s1930_s3 + $0x58] sm:$0xff] %vm832_vm5, %v830_v62  ;;  %v818_v28 = vadd.f32 %v1825_v23, %v798_v0 }
 0x155   :  { %v831_v26 = vmax.f32 %v818_v28, 0.0 }
 0x157   :  { %846 = vst.msk [vmem:[%s1930_s3 + $0x60] sm:$0x3] %vm845_vm6, %v831_v26 }

// kernel: forward.8
= control target key start
LH: loop header
LB: loop body
LE: loop exit
PB: predicated region body
PF: predicated region fallthrough
CT: control target
= control target key end

     0   :  { %vm27_vm0 = vcmask 588800   ;;  %vm458_vm1 = vcmask 64512   ;;  %s834_s1 = inlined_call_operand.vmem [shape: f32[72,8], index: 1, kind: input, shape index: {}]   ;;  %s835_s0 = inlined_call_operand.vmem [shape: f32[4,32,72], index: 0, kind: input, shape index: {}]   ;;  %s836_s2 = inlined_call_operand.vmem [shape: f32[1,8], index: 2, kind: input, shape index: {}]   ;;  %s837_s3 = inlined_call_operand.vmem [shape: f32[32,8], index: 3, kind: output, shape index: {}]  }
   0x1   :  { %v14_v0 = vld [vmem:[%s834_s1] sm:$0xff]  ;;  %v15_v1 = vld [vmem:[%s834_s1 + $0x8] sm:$0xff]  ;;  %v16_v2 = vld [vmem:[%s834_s1 + $0x10] sm:$0xff] }
   0x2   :  { %v644_v3 = vpack.c.bf16 %v15_v1, %v14_v0  ;;  %v17_v4 = vld [vmem:[%s834_s1 + $0x18] sm:$0xff]  ;;  %v18_v6 = vld [vmem:[%s834_s1 + $0x20] sm:$0xff]  ;;  %v19_v7 = vld [vmem:[%s834_s1 + $0x28] sm:$0xff] }
   0x3   :  { %v648_v5 = vpack.c.bf16 %v17_v4, %v16_v2  ;;  %v23_v8 = vld [vmem:[%s835_s0] sm:$0xff]  ;;  %v652_v10 = vpack.c.bf16 %v19_v7, %v18_v6  ;;  %v20_v11 = vld [vmem:[%s834_s1 + $0x30] sm:$0xff]  ;;  %v21_v12 = vld [vmem:[%s834_s1 + $0x38] sm:$0xff] }
   0x4   :  { %645 = vmatprep.subr.bf16.mxu0 %v644_v3  ;;  %661 = vmatprep.subr.bf16.mxu1 %v644_v3  ;;  %v471_v9 = vld [vmem:[%s835_s0 + $0x20] sm:$0xff]  ;;  %v656_v13 = vpack.c.bf16 %v21_v12, %v20_v11  ;;  %v24_v15 = vld [vmem:[%s835_s0 + $0x8] sm:$0xff]  ;;  %v25_v17 = vld [vmem:[%s835_s0 + $0x10] sm:$0xff] }
   0x5   :  { %647 = vmatpush3.bf16.msra.mxu0 %v644_v3  ;;  %663 = vmatpush3.bf16.msra.mxu1 %v644_v3  ;;  %v22_v14 = vld [vmem:[%s834_s1 + $0x40] sm:$0xff]  ;;  %v472_v16 = vld [vmem:[%s835_s0 + $0x28] sm:$0xff]  ;;  %v473_v18 = vld [vmem:[%s835_s0 + $0x30] sm:$0xff] }
   0x6   :  { %649 = vmatprep.subr.bf16.mxu0 %v648_v5  ;;  %665 = vmatprep.subr.bf16.mxu1 %v648_v5  ;;  %v26_v19 = vld [vmem:[%s835_s0 + $0x18] sm:$0xff]  ;;  %v479_v21 = vld [vmem:[%s835_s0 + $0x40] sm:$0xff]  ;;  %v480_v23 = vld [vmem:[%s835_s0 + $0x48] sm:$0xff] }
   0x7   :  { %566 = vmatprep.mubr.msk.f32.mxu0 %vm27_vm0, %v23_v8  ;;  %590 = vmatprep.mubr.msk.f32.mxu1 %vm27_vm0, %v471_v9  ;;  %v474_v20 = vld [vmem:[%s835_s0 + $0x38] sm:$0xff]  ;;  %v487_v22 = vld [vmem:[%s835_s0 + $0x60] sm:$0xff]  ;;  %v488_v24 = vld [vmem:[%s835_s0 + $0x68] sm:$0xff] }
   0x8   :  { %v481_v25 = vld [vmem:[%s835_s0 + $0x50] sm:$0xff]  ;;  %v482_v27 = vld [vmem:[%s835_s0 + $0x58] sm:$0xff]  ;;  %v495_v47 = vld [vmem:[%s836_s2] ss:$0 sm:$0xff] }
   0x9   :  { %651 = vmatpush3.bf16.msra.mxu0 %v648_v5  ;;  %667 = vmatpush3.bf16.msra.mxu1 %v648_v5  ;;  %v489_v26 = vld [vmem:[%s835_s0 + $0x70] sm:$0xff]  ;;  %v490_v28 = vld [vmem:[%s835_s0 + $0x78] sm:$0xff] }
   0xa   :  { %653 = vmatprep.subr.bf16.mxu0 %v652_v10  ;;  %669 = vmatprep.subr.bf16.mxu1 %v652_v10 }
   0xd   :  { %655 = vmatpush3.bf16.msra.mxu0 %v652_v10  ;;  %671 = vmatpush3.bf16.msra.mxu1 %v652_v10 }
   0xe   :  { %657 = vmatprep.subr.bf16.mxu0 %v656_v13  ;;  %673 = vmatprep.subr.bf16.mxu1 %v656_v13 }
  0x11   :  { %659 = vmatpush3.bf16.msra.mxu0 %v656_v13  ;;  %675 = vmatpush3.bf16.msra.mxu1 %v656_v13 }
  0x12   :  { %564 = vmatprep.subr.mxu0 %v22_v14  ;;  %588 = vmatprep.subr.mxu1 %v22_v14 }
  0x15   :  { %565 = vmatpush3.msra.mxu0 %v22_v14  ;;  %589 = vmatpush3.msra.mxu1 %v22_v14 }
  0x16   :  { %567 = vmatmul.mubr.msk.f32.vlgmr.msra.gmra.mrb[0].mxu0 %vm27_vm0, %v24_v15  ;;  %591 = vmatmul.mubr.msk.f32.vlgmr.msra.gmra.mrb[0].mxu1 %vm27_vm0, %v472_v16 }
  0x17   :  { %677 = vmatprep.subr.bf16.mxu0 %v644_v3  ;;  %693 = vmatprep.subr.bf16.mxu1 %v644_v3 }
  0x18   :  { %679 = vmatpush3.bf16.msra.mxu0 %v644_v3  ;;  %695 = vmatpush3.bf16.msra.mxu1 %v644_v3 }
  0x19   :  { %681 = vmatprep.subr.bf16.mxu0 %v648_v5  ;;  %697 = vmatprep.subr.bf16.mxu1 %v648_v5 }
  0x1a   :  { %569 = vmatprep.mubr.msk.f32.mxu0 %vm27_vm0, %v25_v17  ;;  %593 = vmatprep.mubr.msk.f32.mxu1 %vm27_vm0, %v473_v18 }
  0x1b   :  { %570 = vmatmul.mubr.msk.f32.gmra.mrb[2].mxu0 %vm27_vm0, %v26_v19  ;;  %594 = vmatmul.mubr.msk.f32.gmra.mrb[2].mxu1 %vm27_vm0, %v474_v20 }
  0x1c   :  { %683 = vmatpush3.bf16.msra.mxu0 %v648_v5  ;;  %699 = vmatpush3.bf16.msra.mxu1 %v648_v5 }
  0x1d   :  { %685 = vmatprep.subr.bf16.mxu0 %v652_v10  ;;  %701 = vmatprep.subr.bf16.mxu1 %v652_v10 }
  0x1e   :  { %614 = vmatprep.mubr.msk.f32.mxu0 %vm27_vm0, %v479_v21  ;;  %638 = vmatprep.mubr.msk.f32.mxu1 %vm27_vm0, %v487_v22 }
  0x20   :  { %687 = vmatpush3.bf16.msra.mxu0 %v652_v10  ;;  %703 = vmatpush3.bf16.msra.mxu1 %v652_v10 }
  0x21   :  { %689 = vmatprep.subr.bf16.mxu0 %v656_v13  ;;  %705 = vmatprep.subr.bf16.mxu1 %v656_v13 }
  0x24   :  { %691 = vmatpush3.bf16.msra.mxu0 %v656_v13  ;;  %707 = vmatpush3.bf16.msra.mxu1 %v656_v13 }
  0x25   :  { %612 = vmatprep.subr.mxu0 %v22_v14  ;;  %636 = vmatprep.subr.mxu1 %v22_v14 }
  0x28   :  { %613 = vmatpush3.msra.mxu0 %v22_v14  ;;  %637 = vmatpush3.msra.mxu1 %v22_v14 }
  0x29   :  { %615 = vmatmul.mubr.msk.f32.vlgmr.msra.gmra.mrb[4].mxu0 %vm27_vm0, %v480_v23  ;;  %639 = vmatmul.mubr.msk.f32.vlgmr.msra.gmra.mrb[4].mxu1 %vm27_vm0, %v488_v24 }
  0x2a   :  { %617 = vmatprep.mubr.msk.f32.mxu0 %vm27_vm0, %v481_v25  ;;  %641 = vmatprep.mubr.msk.f32.mxu1 %vm27_vm0, %v489_v26 }
  0x2d   :  { %618 = vmatmul.mubr.msk.f32.gmra.mrb[6].mxu0 %vm27_vm0, %v482_v27  ;;  %642 = vmatmul.mubr.msk.f32.gmra.mrb[6].mxu1 %vm27_vm0, %v490_v28 }
  0xe9   :  { %v568_v29 = vpop.f32.mrb[0].mxu0  ;;  %v592_v30 = vpop.f32.mrb[0].mxu1 }
  0xea   :  { %v228_v31 = vmax.f32 %v568_v29, %v592_v30  ;;  %v106_v32 = vpop.f32.mrb[1].mxu0  ;;  %v208_v33 = vpop.f32.mrb[1].mxu1 }
  0xeb   :  { %v227_v34 = vmax.f32 %v106_v32, %v208_v33 }
  0xee   :  { %v571_v35 = vpop.f32.mrb[2].mxu0  ;;  %v595_v36 = vpop.f32.mrb[2].mxu1 }
  0xef   :  { %v230_v37 = vmax.f32 %v571_v35, %v595_v36  ;;  %v116_v38 = vpop.f32.mrb[3].mxu0  ;;  %v218_v39 = vpop.f32.mrb[3].mxu1 }
  0xf0   :  { %v229_v40 = vmax.f32 %v116_v38, %v218_v39 }
  0xfc   :  { %v616_v41 = vpop.f32.mrb[4].mxu0  ;;  %v640_v42 = vpop.f32.mrb[4].mxu1 }
  0xfd   :  { %v334_v43 = vmax.f32 %v228_v31, %v616_v41  ;;  %v314_v44 = vpop.f32.mrb[5].mxu0  ;;  %v420_v45 = vpop.f32.mrb[5].mxu1 }
  0xfe   :  { %v333_v46 = vmax.f32 %v227_v34, %v314_v44 }
  0xff   :  { %v440_v48 = vmax.f32 %v334_v43, %v640_v42 }
 0x100   :  { %v439_v49 = vmax.f32 %v333_v46, %v420_v45  ;;  %v619_v50 = vpop.f32.mrb[6].mxu0  ;;  %v643_v51 = vpop.f32.mrb[6].mxu1 }
 0x101   :  { %v451_v52 = vadd.f32 %v495_v47, %v440_v48  ;;  %v336_v53 = vmax.f32 %v230_v37, %v619_v50  ;;  %v324_v54 = vpop.f32.mrb[7].mxu0  ;;  %v430_v55 = vpop.f32.mrb[7].mxu1 }
 0x102   :  { %v450_v56 = vadd.f32 %v495_v47, %v439_v49  ;;  %v335_v57 = vmax.f32 %v229_v40, %v324_v54 }
 0x103   :  { %v455_v58 = vmax.f32 %v451_v52, 0.0  ;;  %v442_v59 = vmax.f32 %v336_v53, %v643_v51 }
 0x104   :  { %v454_v60 = vmax.f32 %v450_v56, 0.0  ;;  %v441_v61 = vmax.f32 %v335_v57, %v430_v55 }
 0x105   :  { %460 = vst.msk [vmem:[%s837_s3 + $0x8] sm:$0xff] %vm458_vm1, %v455_v58  ;;  %v453_v62 = vadd.f32 %v495_v47, %v442_v59 }
 0x106   :  { %459 = vst.msk [vmem:[%s837_s3] sm:$0xff] %vm458_vm1, %v454_v60  ;;  %v452_v63 = vadd.f32 %v495_v47, %v441_v61 }
 0x107   :  { %v457_v0 = vmax.f32 %v453_v62, 0.0 }
 0x108   :  { %v456_v1 = vmax.f32 %v452_v63, 0.0 }
 0x109   :  { %462 = vst.msk [vmem:[%s837_s3 + $0x18] sm:$0xff] %vm458_vm1, %v457_v0 }
 0x10a   :  { %461 = vst.msk [vmem:[%s837_s3 + $0x10] sm:$0xff] %vm458_vm1, %v456_v1 }

// kernel: forward.9
= control target key start
LH: loop header
LB: loop body
LE: loop exit
PB: predicated region body
PF: predicated region fallthrough
CT: control target
= control target key end

     0   :  { %v686_v0 = vmov 0.0|0.0   ;;  %vm47_vm0 = vcmask 588800   ;;  %v687_v39 = vmov 0.0   ;;  %vm490_vm1 = vcmask 64512   ;;  %s1044_s1 = inlined_call_operand.vmem [shape: f32[200,8], index: 1, kind: input, shape index: {}]   ;;  %s1045_s0 = inlined_call_operand.vmem [shape: f32[4,32,200], index: 0, kind: input, shape index: {}]   ;;  %s1046_s2 = inlined_call_operand.vmem [shape: f32[1,8], index: 2, kind: input, shape index: {}]   ;;  %s1047_s3 = inlined_call_operand.vmem [shape: f32[32,8], index: 3, kind: output, shape index: {}]  }
   0x1   :  { %540 = vmatprep.subr.bf16.mxu0 %v686_v0  ;;  %v14_v1 = vld [vmem:[%s1044_s1] sm:$0xff]  ;;  %v15_v2 = vld [vmem:[%s1044_s1 + $0x8] sm:$0xff]  ;;  %576 = vmatprep.subr.bf16.mxu1 %v686_v0  ;;  %v16_v3 = vld [vmem:[%s1044_s1 + $0x10] sm:$0xff] }
   0x2   :  { %v719_v4 = vpack.c.bf16 %v15_v2, %v14_v1  ;;  %v17_v5 = vld [vmem:[%s1044_s1 + $0x18] sm:$0xff]  ;;  %v18_v7 = vld [vmem:[%s1044_s1 + $0x20] sm:$0xff]  ;;  %v19_v8 = vld [vmem:[%s1044_s1 + $0x28] sm:$0xff] }
   0x3   :  { %v726_v6 = vpack.c.bf16 %v17_v5, %v16_v3  ;;  %v738_v9 = vpack.c.bf16 %v19_v8, %v18_v7  ;;  %v20_v10 = vld [vmem:[%s1044_s1 + $0x30] sm:$0xff]  ;;  %v21_v11 = vld [vmem:[%s1044_s1 + $0x38] sm:$0xff]  ;;  %v40_v12 = vld [vmem:[%s1045_s0 + $0x8] sm:$0xff] }
   0x4   :  { %542 = vmatpush1.bf16.msra.mxu0 %v719_v4  ;;  %578 = vmatpush1.bf16.msra.mxu1 %v719_v4  ;;  %v504_v13 = vld [vmem:[%s1045_s0 + $0x48] sm:$0xff]  ;;  %v758_v14 = vpack.c.bf16 %v21_v11, %v20_v10  ;;  %v22_v15 = vld [vmem:[%s1044_s1 + $0x40] sm:$0xff]  ;;  %v24_v18 = vld [vmem:[%s1044_s1 + $0x50] sm:$0xff] }
   0x5   :  { %543 = vmatprep.subr.bf16.mxu0 %v686_v0  ;;  %579 = vmatprep.subr.bf16.mxu1 %v686_v0  ;;  %v23_v16 = vld [vmem:[%s1044_s1 + $0x48] sm:$0xff]  ;;  %v25_v19 = vld [vmem:[%s1044_s1 + $0x58] sm:$0xff]  ;;  %v26_v21 = vld [vmem:[%s1044_s1 + $0x60] sm:$0xff] }
   0x6   :  { %499 = vmatprep.mubr.msk.f32.mxu0 %vm47_vm0, %v40_v12  ;;  %511 = vmatprep.mubr.msk.f32.mxu1 %vm47_vm0, %v504_v13  ;;  %v770_v17 = vpack.c.bf16 %v23_v16, %v22_v15  ;;  %v782_v20 = vpack.c.bf16 %v25_v19, %v24_v18  ;;  %v27_v22 = vld [vmem:[%s1044_s1 + $0x68] sm:$0xff]  ;;  %v28_v24 = vld [vmem:[%s1044_s1 + $0x70] sm:$0xff]  ;;  %v29_v25 = vld [vmem:[%s1044_s1 + $0x78] sm:$0xff] }
   0x7   :  { %v794_v23 = vpack.c.bf16 %v27_v22, %v26_v21  ;;  %v806_v26 = vpack.c.bf16 %v29_v25, %v28_v24  ;;  %v30_v27 = vld [vmem:[%s1044_s1 + $0x80] sm:$0xff]  ;;  %v31_v28 = vld [vmem:[%s1044_s1 + $0x88] sm:$0xff]  ;;  %v32_v30 = vld [vmem:[%s1044_s1 + $0x90] sm:$0xff] }
   0x8   :  { %545 = vmatpush1.bf16.msra.mxu0 %v726_v6  ;;  %581 = vmatpush1.bf16.msra.mxu1 %v726_v6  ;;  %v818_v29 = vpack.c.bf16 %v31_v28, %v30_v27  ;;  %v33_v31 = vld [vmem:[%s1044_s1 + $0x98] sm:$0xff]  ;;  %v34_v33 = vld [vmem:[%s1044_s1 + $0xa0] sm:$0xff]  ;;  %v35_v34 = vld [vmem:[%s1044_s1 + $0xa8] sm:$0xff] }
   0x9   :  { %546 = vmatprep.subr.bf16.mxu0 %v686_v0  ;;  %582 = vmatprep.subr.bf16.mxu1 %v686_v0  ;;  %v830_v32 = vpack.c.bf16 %v33_v31, %v32_v30  ;;  %v842_v35 = vpack.c.bf16 %v35_v34, %v34_v33  ;;  %v36_v36 = vld [vmem:[%s1044_s1 + $0xb0] sm:$0xff]  ;;  %v37_v37 = vld [vmem:[%s1044_s1 + $0xb8] sm:$0xff]  ;;  %v864_v40 = vld [vmem:[%s1044_s1 + $0xc0] sm:$0xff] }
   0xa   :  { %v854_v38 = vpack.c.bf16 %v37_v37, %v36_v36  ;;  %v39_v41 = vld [vmem:[%s1045_s0] sm:$0xff]  ;;  %v42_v43 = vld [vmem:[%s1045_s0 + $0x18] sm:$0xff]  ;;  %v41_v44 = vld [vmem:[%s1045_s0 + $0x10] sm:$0xff] }
   0xb   :  { %v503_v42 = vld [vmem:[%s1045_s0 + $0x40] sm:$0xff]  ;;  %v506_v45 = vld [vmem:[%s1045_s0 + $0x58] sm:$0xff]  ;;  %v505_v46 = vld [vmem:[%s1045_s0 + $0x50] sm:$0xff] }
   0xc   :  { %548 = vmatpush1.bf16.msra.mxu0 %v738_v9  ;;  %584 = vmatpush1.bf16.msra.mxu1 %v738_v9  ;;  %v44_v47 = vld [vmem:[%s1045_s0 + $0x28] sm:$0xff]  ;;  %v43_v48 = vld [vmem:[%s1045_s0 + $0x20] sm:$0xff]  ;;  %v46_v51 = vld [vmem:[%s1045_s0 + $0x38] sm:$0xff] }
   0xd   :  { %549 = vmatprep.subr.bf16.mxu0 %v686_v0  ;;  %585 = vmatprep.subr.bf16.mxu1 %v686_v0  ;;  %v508_v49 = vld [vmem:[%s1045_s0 + $0x68] sm:$0xff]  ;;  %v507_v50 = vld [vmem:[%s1045_s0 + $0x60] sm:$0xff]  ;;  %v45_v52 = vld [vmem:[%s1045_s0 + $0x30] sm:$0xff] }
   0xe   :  { %v510_v53 = vld [vmem:[%s1045_s0 + $0x78] sm:$0xff]  ;;  %v509_v54 = vld [vmem:[%s1045_s0 + $0x70] sm:$0xff]  ;;  %v516_v55 = vld [vmem:[%s1045_s0 + $0x88] sm:$0xff] }
   0xf   :  { %v528_v56 = vld [vmem:[%s1045_s0 + $0xc8] sm:$0xff]  ;;  %v515_v57 = vld [vmem:[%s1045_s0 + $0x80] sm:$0xff]  ;;  %v518_v58 = vld [vmem:[%s1045_s0 + $0x98] sm:$0xff] }
  0x10   :  { %551 = vmatpush1.bf16.msra.mxu0 %v758_v14  ;;  %587 = vmatpush1.bf16.msra.mxu1 %v758_v14  ;;  %v527_v59 = vld [vmem:[%s1045_s0 + $0xc0] sm:$0xff]  ;;  %v530_v60 = vld [vmem:[%s1045_s0 + $0xd8] sm:$0xff]  ;;  %v517_v61 = vld [vmem:[%s1045_s0 + $0x90] sm:$0xff] }
  0x11   :  { %552 = vmatprep.subr.bf16.mxu0 %v686_v0  ;;  %588 = vmatprep.subr.bf16.mxu1 %v686_v0  ;;  %v520_v62 = vld [vmem:[%s1045_s0 + $0xa8] sm:$0xff]  ;;  %v529_v63 = vld [vmem:[%s1045_s0 + $0xd0] sm:$0xff]  ;;  %v519_v1 = vld [vmem:[%s1045_s0 + $0xa0] sm:$0xff] }
  0x12   :  { %v522_v2 = vld [vmem:[%s1045_s0 + $0xb8] sm:$0xff]  ;;  %v531_v3 = vld [vmem:[%s1045_s0 + $0xe0] sm:$0xff]  ;;  %v521_v5 = vld [vmem:[%s1045_s0 + $0xb0] sm:$0xff] }
  0x13   :  { %v539_v31 = vld [vmem:[%s1046_s2] ss:$0 sm:$0xff] }
  0x14   :  { %554 = vmatpush1.bf16.msra.mxu0 %v770_v17  ;;  %590 = vmatpush1.bf16.msra.mxu1 %v770_v17 }
  0x15   :  { %555 = vmatprep.subr.bf16.mxu0 %v686_v0  ;;  %591 = vmatprep.subr.bf16.mxu1 %v686_v0 }
  0x18   :  { %557 = vmatpush1.bf16.msra.mxu0 %v782_v20  ;;  %593 = vmatpush1.bf16.msra.mxu1 %v782_v20 }
  0x19   :  { %558 = vmatprep.subr.bf16.mxu0 %v686_v0  ;;  %594 = vmatprep.subr.bf16.mxu1 %v686_v0 }
  0x1c   :  { %560 = vmatpush1.bf16.msra.mxu0 %v794_v23  ;;  %596 = vmatpush1.bf16.msra.mxu1 %v794_v23 }
  0x1d   :  { %561 = vmatprep.subr.bf16.mxu0 %v686_v0  ;;  %597 = vmatprep.subr.bf16.mxu1 %v686_v0 }
  0x20   :  { %563 = vmatpush1.bf16.msra.mxu0 %v806_v26  ;;  %599 = vmatpush1.bf16.msra.mxu1 %v806_v26 }
  0x21   :  { %564 = vmatprep.subr.bf16.mxu0 %v686_v0  ;;  %600 = vmatprep.subr.bf16.mxu1 %v686_v0 }
  0x24   :  { %566 = vmatpush1.bf16.msra.mxu0 %v818_v29  ;;  %602 = vmatpush1.bf16.msra.mxu1 %v818_v29 }
  0x25   :  { %567 = vmatprep.subr.bf16.mxu0 %v686_v0  ;;  %603 = vmatprep.subr.bf16.mxu1 %v686_v0 }
  0x28   :  { %569 = vmatpush1.bf16.msra.mxu0 %v830_v32  ;;  %605 = vmatpush1.bf16.msra.mxu1 %v830_v32 }
  0x29   :  { %570 = vmatprep.subr.bf16.mxu0 %v686_v0  ;;  %606 = vmatprep.subr.bf16.mxu1 %v686_v0 }
  0x2c   :  { %572 = vmatpush1.bf16.msra.mxu0 %v842_v35  ;;  %608 = vmatpush1.bf16.msra.mxu1 %v842_v35 }
  0x2d   :  { %573 = vmatprep.subr.bf16.mxu0 %v686_v0  ;;  %609 = vmatprep.subr.bf16.mxu1 %v686_v0 }
  0x30   :  { %575 = vmatpush1.bf16.msra.mxu0 %v854_v38  ;;  %611 = vmatpush1.bf16.msra.mxu1 %v854_v38 }
  0x31   :  { %108 = vmatprep.subr.mxu0 %v687_v39  ;;  %214 = vmatprep.subr.mxu1 %v687_v39 }
  0x34   :  { %109 = vmatpush1.msra.mxu0 %v864_v40  ;;  %215 = vmatpush1.msra.mxu1 %v864_v40 }
  0x35   :  { %125 = vmatmul.mubr.f32.vlgmr.msra.gmra.mrb[0].mxu0 %v39_v41  ;;  %612 = vmatprep.subr.bf16.mxu0 %v686_v0 }
  0x36   :  { %231 = vmatmul.mubr.f32.vlgmr.msra.gmra.mrb[0].mxu1 %v503_v42  ;;  %614 = vmatpush1.bf16.msra.mxu0 %v719_v4 }
  0x37   :  { %648 = vmatprep.subr.bf16.mxu1 %v686_v0  ;;  %615 = vmatprep.subr.bf16.mxu0 %v686_v0 }
  0x38   :  { %650 = vmatpush1.bf16.msra.mxu1 %v719_v4  ;;  %500 = vmatprep.mubr.msk.f32.mxu0 %vm47_vm0, %v42_v43  ;;  %v534_v4 = vld [vmem:[%s1045_s0 + $0xf8] sm:$0xff] }
  0x39   :  { %651 = vmatprep.subr.bf16.mxu1 %v686_v0  ;;  %130 = vmatmul.mubr.f32.gmra.mrb[2].mxu0 %v41_v44 }
  0x3a   :  { %617 = vmatpush1.bf16.msra.mxu0 %v726_v6  ;;  %512 = vmatprep.mubr.msk.f32.mxu1 %vm47_vm0, %v506_v45 }
  0x3b   :  { %618 = vmatprep.subr.bf16.mxu0 %v686_v0  ;;  %236 = vmatmul.mubr.f32.gmra.mrb[2].mxu1 %v505_v46 }
  0x3c   :  { %653 = vmatpush1.bf16.msra.mxu1 %v726_v6  ;;  %501 = vmatprep.mubr.msk.f32.mxu0 %vm47_vm0, %v44_v47  ;;  %v533_v6 = vld [vmem:[%s1045_s0 + $0xf0] sm:$0xff] }
  0x3d   :  { %654 = vmatprep.subr.bf16.mxu1 %v686_v0  ;;  %135 = vmatmul.mubr.f32.gmra.mrb[4].mxu0 %v43_v48 }
  0x3e   :  { %620 = vmatpush1.bf16.msra.mxu0 %v738_v9  ;;  %513 = vmatprep.mubr.msk.f32.mxu1 %vm47_vm0, %v508_v49 }
  0x3f   :  { %621 = vmatprep.subr.bf16.mxu0 %v686_v0  ;;  %241 = vmatmul.mubr.f32.gmra.mrb[4].mxu1 %v507_v50 }
  0x40   :  { %656 = vmatpush1.bf16.msra.mxu1 %v738_v9  ;;  %502 = vmatprep.mubr.msk.f32.mxu0 %vm47_vm0, %v46_v51 }
  0x41   :  { %657 = vmatprep.subr.bf16.mxu1 %v686_v0  ;;  %140 = vmatmul.mubr.f32.gmra.mrb[6].mxu0 %v45_v52 }
  0x42   :  { %623 = vmatpush1.bf16.msra.mxu0 %v758_v14  ;;  %514 = vmatprep.mubr.msk.f32.mxu1 %vm47_vm0, %v510_v53 }
  0x43   :  { %624 = vmatprep.subr.bf16.mxu0 %v686_v0  ;;  %246 = vmatmul.mubr.f32.gmra.mrb[6].mxu1 %v509_v54 }
  0x44   :  { %659 = vmatpush1.bf16.msra.mxu1 %v758_v14  ;;  %523 = vmatprep.mubr.msk.f32.mxu0 %vm47_vm0, %v516_v55 }
  0x45   :  { %660 = vmatprep.subr.bf16.mxu1 %v686_v0  ;;  %535 = vmatprep.mubr.msk.f32.mxu1 %vm47_vm0, %v528_v56 }
  0x46   :  { %626 = vmatpush1.bf16.msra.mxu0 %v770_v17 }
  0x47   :  { %627 = vmatprep.subr.bf16.mxu0 %v686_v0 }
  0x48   :  { %662 = vmatpush1.bf16.msra.mxu1 %v770_v17 }
  0x49   :  { %663 = vmatprep.subr.bf16.mxu1 %v686_v0 }
  0x4a   :  { %629 = vmatpush1.bf16.msra.mxu0 %v782_v20 }
  0x4b   :  { %630 = vmatprep.subr.bf16.mxu0 %v686_v0 }
  0x4c   :  { %665 = vmatpush1.bf16.msra.mxu1 %v782_v20 }
  0x4d   :  { %666 = vmatprep.subr.bf16.mxu1 %v686_v0 }
  0x4e   :  { %632 = vmatpush1.bf16.msra.mxu0 %v794_v23 }
  0x4f   :  { %633 = vmatprep.subr.bf16.mxu0 %v686_v0 }
  0x50   :  { %668 = vmatpush1.bf16.msra.mxu1 %v794_v23 }
  0x51   :  { %669 = vmatprep.subr.bf16.mxu1 %v686_v0 }
  0x52   :  { %635 = vmatpush1.bf16.msra.mxu0 %v806_v26 }
  0x53   :  { %636 = vmatprep.subr.bf16.mxu0 %v686_v0 }
  0x54   :  { %671 = vmatpush1.bf16.msra.mxu1 %v806_v26 }
  0x55   :  { %672 = vmatprep.subr.bf16.mxu1 %v686_v0 }
  0x56   :  { %638 = vmatpush1.bf16.msra.mxu0 %v818_v29 }
  0x57   :  { %639 = vmatprep.subr.bf16.mxu0 %v686_v0 }
  0x58   :  { %674 = vmatpush1.bf16.msra.mxu1 %v818_v29 }
  0x59   :  { %675 = vmatprep.subr.bf16.mxu1 %v686_v0 }
  0x5a   :  { %641 = vmatpush1.bf16.msra.mxu0 %v830_v32 }
  0x5b   :  { %642 = vmatprep.subr.bf16.mxu0 %v686_v0 }
  0x5c   :  { %677 = vmatpush1.bf16.msra.mxu1 %v830_v32 }
  0x5d   :  { %678 = vmatprep.subr.bf16.mxu1 %v686_v0 }
  0x5e   :  { %644 = vmatpush1.bf16.msra.mxu0 %v842_v35 }
  0x5f   :  { %645 = vmatprep.subr.bf16.mxu0 %v686_v0 }
  0x60   :  { %680 = vmatpush1.bf16.msra.mxu1 %v842_v35 }
  0x61   :  { %681 = vmatprep.subr.bf16.mxu1 %v686_v0  ;;  %v532_v0 = vld [vmem:[%s1045_s0 + $0xe8] sm:$0xff] }
  0x62   :  { %647 = vmatpush1.bf16.msra.mxu0 %v854_v38 }
  0x63   :  { %324 = vmatprep.subr.mxu0 %v687_v39 }
  0x64   :  { %683 = vmatpush1.bf16.msra.mxu1 %v854_v38 }
  0x65   :  { %434 = vmatprep.subr.mxu1 %v687_v39 }
  0x66   :  { %325 = vmatpush1.msra.mxu0 %v864_v40 }
  0x67   :  { %341 = vmatmul.mubr.f32.vlgmr.msra.gmra.mrb[8].mxu0 %v515_v57 }
  0x68   :  { %435 = vmatpush1.msra.mxu1 %v864_v40  ;;  %524 = vmatprep.mubr.msk.f32.mxu0 %vm47_vm0, %v518_v58 }
  0x69   :  { %451 = vmatmul.mubr.f32.vlgmr.msra.gmra.mrb[8].mxu1 %v527_v59 }
  0x6a   :  { %536 = vmatprep.mubr.msk.f32.mxu1 %vm47_vm0, %v530_v60 }
  0x6b   :  { %346 = vmatmul.mubr.f32.gmra.mrb[10].mxu0 %v517_v61 }
  0x6c   :  { %525 = vmatprep.mubr.msk.f32.mxu0 %vm47_vm0, %v520_v62 }
  0x6d   :  { %456 = vmatmul.mubr.f32.gmra.mrb[10].mxu1 %v529_v63 }
  0x6e   :  { %537 = vmatprep.mubr.msk.f32.mxu1 %vm47_vm0, %v532_v0 }
  0x6f   :  { %351 = vmatmul.mubr.f32.gmra.mrb[12].mxu0 %v519_v1 }
  0x70   :  { %526 = vmatprep.mubr.msk.f32.mxu0 %vm47_vm0, %v522_v2 }
  0x71   :  { %461 = vmatmul.mubr.f32.gmra.mrb[12].mxu1 %v531_v3 }
  0x72   :  { %538 = vmatprep.mubr.msk.f32.mxu1 %vm47_vm0, %v534_v4 }
  0x73   :  { %356 = vmatmul.mubr.f32.gmra.mrb[14].mxu0 %v521_v5 }
  0x75   :  { %466 = vmatmul.mubr.f32.gmra.mrb[14].mxu1 %v533_v6 }
 0x108   :  { %v126_v7 = vpop.f32.mrb[0].mxu0 }
 0x109   :  { %v128_v8 = vpop.f32.mrb[1].mxu0  ;;  %v232_v9 = vpop.f32.mrb[0].mxu1 }
 0x10a   :  { %v251_v10 = vmax.f32 %v126_v7, %v232_v9  ;;  %v234_v11 = vpop.f32.mrb[1].mxu1 }
 0x10c   :  { %v131_v12 = vpop.f32.mrb[2].mxu0 }
 0x10d   :  { %v133_v13 = vpop.f32.mrb[3].mxu0 }
 0x10e   :  { %v237_v14 = vpop.f32.mrb[2].mxu1 }
 0x10f   :  { %v252_v15 = vmax.f32 %v131_v12, %v237_v14  ;;  %v239_v16 = vpop.f32.mrb[3].mxu1 }
 0x110   :  { %v136_v17 = vpop.f32.mrb[4].mxu0 }
 0x111   :  { %v138_v18 = vpop.f32.mrb[5].mxu0 }
 0x112   :  { %v242_v19 = vpop.f32.mrb[4].mxu1 }
 0x113   :  { %v253_v20 = vmax.f32 %v136_v17, %v242_v19  ;;  %v244_v21 = vpop.f32.mrb[5].mxu1 }
 0x114   :  { %v141_v22 = vpop.f32.mrb[6].mxu0 }
 0x115   :  { %v143_v23 = vpop.f32.mrb[7].mxu0 }
 0x116   :  { %v247_v24 = vpop.f32.mrb[6].mxu1 }
 0x117   :  { %v254_v25 = vmax.f32 %v141_v22, %v247_v24  ;;  %v249_v26 = vpop.f32.mrb[7].mxu1 }
 0x13a   :  { %v342_v27 = vpop.f32.mrb[8].mxu0 }
 0x13b   :  { %v361_v28 = vmax.f32 %v251_v10, %v342_v27  ;;  %v344_v29 = vpop.f32.mrb[9].mxu0 }
 0x13c   :  { %v452_v30 = vpop.f32.mrb[8].mxu1 }
 0x13d   :  { %v471_v32 = vmax.f32 %v361_v28, %v452_v30  ;;  %v454_v33 = vpop.f32.mrb[9].mxu1 }
 0x13e   :  { %v347_v34 = vpop.f32.mrb[10].mxu0 }
 0x13f   :  { %v482_v35 = vadd.f32 %v539_v31, %v471_v32  ;;  %v362_v36 = vmax.f32 %v252_v15, %v347_v34  ;;  %v349_v37 = vpop.f32.mrb[11].mxu0 }
 0x140   :  { %v457_v38 = vpop.f32.mrb[10].mxu1 }
 0x141   :  { %v486_v39 = vmax.f32 %v482_v35, 0.0  ;;  %v472_v40 = vmax.f32 %v362_v36, %v457_v38  ;;  %v459_v41 = vpop.f32.mrb[11].mxu1 }
 0x142   :  { %v352_v42 = vpop.f32.mrb[12].mxu0 }
 0x143   :  { %491 = vst.msk [vmem:[%s1047_s3] sm:$0xff] %vm490_vm1, %v486_v39  ;;  %v483_v43 = vadd.f32 %v539_v31, %v472_v40  ;;  %v363_v44 = vmax.f32 %v253_v20, %v352_v42  ;;  %v354_v45 = vpop.f32.mrb[13].mxu0 }
 0x144   :  { %v462_v46 = vpop.f32.mrb[12].mxu1 }
 0x145   :  { %v487_v47 = vmax.f32 %v483_v43, 0.0  ;;  %v473_v48 = vmax.f32 %v363_v44, %v462_v46  ;;  %v464_v49 = vpop.f32.mrb[13].mxu1 }
 0x146   :  { %v357_v50 = vpop.f32.mrb[14].mxu0 }
 0x147   :  { %492 = vst.msk [vmem:[%s1047_s3 + $0x8] sm:$0xff] %vm490_vm1, %v487_v47  ;;  %v484_v51 = vadd.f32 %v539_v31, %v473_v48  ;;  %v364_v52 = vmax.f32 %v254_v25, %v357_v50  ;;  %v359_v53 = vpop.f32.mrb[15].mxu0 }
 0x148   :  { %v467_v54 = vpop.f32.mrb[14].mxu1 }
 0x149   :  { %v488_v55 = vmax.f32 %v484_v51, 0.0  ;;  %v474_v56 = vmax.f32 %v364_v52, %v467_v54  ;;  %v469_v57 = vpop.f32.mrb[15].mxu1 }
 0x14b   :  { %493 = vst.msk [vmem:[%s1047_s3 + $0x10] sm:$0xff] %vm490_vm1, %v488_v55  ;;  %v485_v58 = vadd.f32 %v539_v31, %v474_v56 }
 0x14d   :  { %v489_v59 = vmax.f32 %v485_v58, 0.0 }
 0x14f   :  { %494 = vst.msk [vmem:[%s1047_s3 + $0x18] sm:$0xff] %vm490_vm1, %v489_v59 }

// kernel: forward.10
= control target key start
LH: loop header
LB: loop body
LE: loop exit
PB: predicated region body
PF: predicated region fallthrough
CT: control target
= control target key end

     0   :  { %v299_v0 = vmov 0.0|0.0   ;;  %vm64_vm0 = vcmask 588800   ;;  %v300_v39 = vmov 0.0   ;;  %vm211_vm1 = vcmask 64512   ;;  %s522_s1 = inlined_call_operand.vmem [shape: f32[200,8], index: 1, kind: input, shape index: {}]   ;;  %s523_s0 = inlined_call_operand.vmem [shape: f32[72,200], index: 0, kind: input, shape index: {}]   ;;  %s524_s2 = inlined_call_operand.vmem [shape: f32[1,8], index: 2, kind: input, shape index: {}]   ;;  %s525_s3 = inlined_call_operand.vmem [shape: f32[72,8], index: 3, kind: output, shape index: {}]  }
   0x1   :  { %235 = vmatprep.subr.bf16.mxu0 %v299_v0  ;;  %v32_v1 = vld [vmem:[%s522_s1] sm:$0xff]  ;;  %v33_v2 = vld [vmem:[%s522_s1 + $0x8] sm:$0xff]  ;;  %271 = vmatprep.subr.bf16.mxu1 %v299_v0  ;;  %v34_v3 = vld [vmem:[%s522_s1 + $0x10] sm:$0xff] }
   0x2   :  { %v236_v4 = vpack.c.bf16 %v33_v2, %v32_v1  ;;  %v35_v5 = vld [vmem:[%s522_s1 + $0x18] sm:$0xff]  ;;  %v36_v7 = vld [vmem:[%s522_s1 + $0x20] sm:$0xff]  ;;  %v37_v8 = vld [vmem:[%s522_s1 + $0x28] sm:$0xff] }
   0x3   :  { %v239_v6 = vpack.c.bf16 %v35_v5, %v34_v3  ;;  %v242_v9 = vpack.c.bf16 %v37_v8, %v36_v7  ;;  %v38_v10 = vld [vmem:[%s522_s1 + $0x30] sm:$0xff]  ;;  %v39_v11 = vld [vmem:[%s522_s1 + $0x38] sm:$0xff]  ;;  %v15_v12 = vld [vmem:[%s523_s0 + $0x8] sm:$0xff] }
   0x4   :  { %237 = vmatpush1.bf16.msra.mxu0 %v236_v4  ;;  %284 = vmatpush1.bf16.msra.mxu1 %v236_v4  ;;  %v25_v13 = vld [vmem:[%s523_s0 + $0x58] sm:$0xff]  ;;  %v245_v14 = vpack.c.bf16 %v39_v11, %v38_v10  ;;  %v40_v15 = vld [vmem:[%s522_s1 + $0x40] sm:$0xff]  ;;  %v41_v16 = vld [vmem:[%s522_s1 + $0x48] sm:$0xff] }
   0x5   :  { %238 = vmatprep.subr.bf16.mxu0 %v299_v0  ;;  %272 = vmatprep.subr.bf16.mxu1 %v299_v0  ;;  %v248_v17 = vpack.c.bf16 %v41_v16, %v40_v15  ;;  %v42_v18 = vld [vmem:[%s522_s1 + $0x50] sm:$0xff]  ;;  %v43_v19 = vld [vmem:[%s522_s1 + $0x58] sm:$0xff]  ;;  %v44_v21 = vld [vmem:[%s522_s1 + $0x60] sm:$0xff] }
   0x6   :  { %226 = vmatprep.mubr.msk.f32.mxu0 %vm64_vm0, %v15_v12  ;;  %231 = vmatprep.mubr.msk.f32.mxu1 %vm64_vm0, %v25_v13  ;;  %v251_v20 = vpack.c.bf16 %v43_v19, %v42_v18  ;;  %v45_v22 = vld [vmem:[%s522_s1 + $0x68] sm:$0xff]  ;;  %v46_v24 = vld [vmem:[%s522_s1 + $0x70] sm:$0xff]  ;;  %v47_v25 = vld [vmem:[%s522_s1 + $0x78] sm:$0xff] }
   0x7   :  { %v254_v23 = vpack.c.bf16 %v45_v22, %v44_v21  ;;  %v257_v26 = vpack.c.bf16 %v47_v25, %v46_v24  ;;  %v48_v27 = vld [vmem:[%s522_s1 + $0x80] sm:$0xff]  ;;  %v49_v28 = vld [vmem:[%s522_s1 + $0x88] sm:$0xff]  ;;  %v50_v30 = vld [vmem:[%s522_s1 + $0x90] sm:$0xff] }
   0x8   :  { %240 = vmatpush1.bf16.msra.mxu0 %v239_v6  ;;  %285 = vmatpush1.bf16.msra.mxu1 %v239_v6  ;;  %v260_v29 = vpack.c.bf16 %v49_v28, %v48_v27  ;;  %v51_v31 = vld [vmem:[%s522_s1 + $0x98] sm:$0xff]  ;;  %v52_v33 = vld [vmem:[%s522_s1 + $0xa0] sm:$0xff]  ;;  %v53_v34 = vld [vmem:[%s522_s1 + $0xa8] sm:$0xff] }
   0x9   :  { %241 = vmatprep.subr.bf16.mxu0 %v299_v0  ;;  %273 = vmatprep.subr.bf16.mxu1 %v299_v0  ;;  %v263_v32 = vpack.c.bf16 %v51_v31, %v50_v30  ;;  %v266_v35 = vpack.c.bf16 %v53_v34, %v52_v33  ;;  %v54_v36 = vld [vmem:[%s522_s1 + $0xb0] sm:$0xff]  ;;  %v55_v37 = vld [vmem:[%s522_s1 + $0xb8] sm:$0xff]  ;;  %v56_v40 = vld [vmem:[%s522_s1 + $0xc0] sm:$0xff] }
   0xa   :  { %v269_v38 = vpack.c.bf16 %v55_v37, %v54_v36  ;;  %v14_v41 = vld [vmem:[%s523_s0] sm:$0xff]  ;;  %v24_v42 = vld [vmem:[%s523_s0 + $0x50] sm:$0xff]  ;;  %v17_v43 = vld [vmem:[%s523_s0 + $0x18] sm:$0xff] }
   0xb   :  { %v27_v44 = vld [vmem:[%s523_s0 + $0x68] sm:$0xff]  ;;  %v16_v45 = vld [vmem:[%s523_s0 + $0x10] sm:$0xff]  ;;  %v26_v46 = vld [vmem:[%s523_s0 + $0x60] sm:$0xff] }
   0xc   :  { %243 = vmatpush1.bf16.msra.mxu0 %v242_v9  ;;  %286 = vmatpush1.bf16.msra.mxu1 %v242_v9  ;;  %v19_v47 = vld [vmem:[%s523_s0 + $0x28] sm:$0xff]  ;;  %v29_v48 = vld [vmem:[%s523_s0 + $0x78] sm:$0xff]  ;;  %v18_v49 = vld [vmem:[%s523_s0 + $0x20] sm:$0xff] }
   0xd   :  { %244 = vmatprep.subr.bf16.mxu0 %v299_v0  ;;  %274 = vmatprep.subr.bf16.mxu1 %v299_v0  ;;  %v28_v50 = vld [vmem:[%s523_s0 + $0x70] sm:$0xff]  ;;  %v21_v51 = vld [vmem:[%s523_s0 + $0x38] sm:$0xff]  ;;  %v31_v52 = vld [vmem:[%s523_s0 + $0x88] sm:$0xff] }
   0xe   :  { %v20_v53 = vld [vmem:[%s523_s0 + $0x30] sm:$0xff]  ;;  %v30_v54 = vld [vmem:[%s523_s0 + $0x80] sm:$0xff]  ;;  %v23_v55 = vld [vmem:[%s523_s0 + $0x48] sm:$0xff] }
   0xf   :  { %v22_v56 = vld [vmem:[%s523_s0 + $0x40] sm:$0xff] }
  0x10   :  { %246 = vmatpush1.bf16.msra.mxu0 %v245_v14  ;;  %287 = vmatpush1.bf16.msra.mxu1 %v245_v14  ;;  %v225_v57 = vld [vmem:[%s524_s2] ss:$0 sm:$0xff] }
  0x11   :  { %247 = vmatprep.subr.bf16.mxu0 %v299_v0  ;;  %275 = vmatprep.subr.bf16.mxu1 %v299_v0 }
  0x14   :  { %249 = vmatpush1.bf16.msra.mxu0 %v248_v17  ;;  %288 = vmatpush1.bf16.msra.mxu1 %v248_v17 }
  0x15   :  { %250 = vmatprep.subr.bf16.mxu0 %v299_v0  ;;  %276 = vmatprep.subr.bf16.mxu1 %v299_v0 }
  0x18   :  { %252 = vmatpush1.bf16.msra.mxu0 %v251_v20  ;;  %289 = vmatpush1.bf16.msra.mxu1 %v251_v20 }
  0x19   :  { %253 = vmatprep.subr.bf16.mxu0 %v299_v0  ;;  %277 = vmatprep.subr.bf16.mxu1 %v299_v0 }
  0x1c   :  { %255 = vmatpush1.bf16.msra.mxu0 %v254_v23  ;;  %290 = vmatpush1.bf16.msra.mxu1 %v254_v23 }
  0x1d   :  { %256 = vmatprep.subr.bf16.mxu0 %v299_v0  ;;  %278 = vmatprep.subr.bf16.mxu1 %v299_v0 }
  0x20   :  { %258 = vmatpush1.bf16.msra.mxu0 %v257_v26  ;;  %291 = vmatpush1.bf16.msra.mxu1 %v257_v26 }
  0x21   :  { %259 = vmatprep.subr.bf16.mxu0 %v299_v0  ;;  %279 = vmatprep.subr.bf16.mxu1 %v299_v0 }
  0x24   :  { %261 = vmatpush1.bf16.msra.mxu0 %v260_v29  ;;  %292 = vmatpush1.bf16.msra.mxu1 %v260_v29 }
  0x25   :  { %262 = vmatprep.subr.bf16.mxu0 %v299_v0  ;;  %280 = vmatprep.subr.bf16.mxu1 %v299_v0 }
  0x28   :  { %264 = vmatpush1.bf16.msra.mxu0 %v263_v32  ;;  %293 = vmatpush1.bf16.msra.mxu1 %v263_v32 }
  0x29   :  { %265 = vmatprep.subr.bf16.mxu0 %v299_v0  ;;  %281 = vmatprep.subr.bf16.mxu1 %v299_v0 }
  0x2c   :  { %267 = vmatpush1.bf16.msra.mxu0 %v266_v35  ;;  %294 = vmatpush1.bf16.msra.mxu1 %v266_v35 }
  0x2d   :  { %268 = vmatprep.subr.bf16.mxu0 %v299_v0  ;;  %282 = vmatprep.subr.bf16.mxu1 %v299_v0 }
  0x30   :  { %270 = vmatpush1.bf16.msra.mxu0 %v269_v38  ;;  %295 = vmatpush1.bf16.msra.mxu1 %v269_v38 }
  0x31   :  { %140 = vmatprep.subr.mxu0 %v300_v39  ;;  %283 = vmatprep.subr.mxu1 %v300_v39 }
  0x34   :  { %141 = vmatpush1.msra.mxu0 %v56_v40  ;;  %296 = vmatpush1.msra.mxu1 %v56_v40 }
  0x35   :  { %157 = vmatmul.mubr.f32.vlgmr.msra.gmra.mrb[0].mxu0 %v14_v41  ;;  %182 = vmatmul.mubr.f32.vlgmr.msra.gmra.mrb[0].mxu1 %v24_v42 }
  0x36   :  { %227 = vmatprep.mubr.msk.f32.mxu0 %vm64_vm0, %v17_v43  ;;  %232 = vmatprep.mubr.msk.f32.mxu1 %vm64_vm0, %v27_v44 }
  0x39   :  { %162 = vmatmul.mubr.f32.gmra.mrb[2].mxu0 %v16_v45  ;;  %187 = vmatmul.mubr.f32.gmra.mrb[2].mxu1 %v26_v46 }
  0x3a   :  { %228 = vmatprep.mubr.msk.f32.mxu0 %vm64_vm0, %v19_v47  ;;  %233 = vmatprep.mubr.msk.f32.mxu1 %vm64_vm0, %v29_v48 }
  0x3d   :  { %167 = vmatmul.mubr.f32.gmra.mrb[4].mxu0 %v18_v49  ;;  %192 = vmatmul.mubr.f32.gmra.mrb[4].mxu1 %v28_v50 }
  0x3e   :  { %229 = vmatprep.mubr.msk.f32.mxu0 %vm64_vm0, %v21_v51  ;;  %234 = vmatprep.mubr.msk.f32.mxu1 %vm64_vm0, %v31_v52 }
  0x41   :  { %172 = vmatmul.mubr.f32.gmra.mrb[6].mxu0 %v20_v53  ;;  %197 = vmatmul.mubr.f32.gmra.mrb[6].mxu1 %v30_v54 }
  0x42   :  { %230 = vmatprep.mubr.msk.f32.mxu0 %vm64_vm0, %v23_v55 }
  0x45   :  { %177 = vmatmul.mubr.f32.gmra.mrb[8].mxu0 %v22_v56 }
 0x108   :  { %v158_v58 = vpop.f32.mrb[0].mxu0  ;;  %v183_v59 = vpop.f32.mrb[0].mxu1 }
 0x109   :  { %v159_v60 = vadd.f32 %v225_v57, %v158_v58  ;;  %v160_v61 = vpop.f32.mrb[1].mxu0  ;;  %v184_v62 = vadd.f32 %v225_v57, %v183_v59  ;;  %v185_v63 = vpop.f32.mrb[1].mxu1 }
 0x10b   :  { %v202_v0 = vmax.f32 %v159_v60, 0.0  ;;  %v207_v1 = vmax.f32 %v184_v62, 0.0 }
 0x10c   :  { %v163_v2 = vpop.f32.mrb[2].mxu0  ;;  %v188_v3 = vpop.f32.mrb[2].mxu1 }
 0x10d   :  { %212 = vst.msk [vmem:[%s525_s3] sm:$0xff] %vm211_vm1, %v202_v0  ;;  %217 = vst.msk [vmem:[%s525_s3 + $0x28] sm:$0xff] %vm211_vm1, %v207_v1  ;;  %v164_v4 = vadd.f32 %v225_v57, %v163_v2  ;;  %v165_v5 = vpop.f32.mrb[3].mxu0  ;;  %v189_v6 = vadd.f32 %v225_v57, %v188_v3  ;;  %v190_v7 = vpop.f32.mrb[3].mxu1 }
 0x10f   :  { %v203_v8 = vmax.f32 %v164_v4, 0.0  ;;  %v208_v9 = vmax.f32 %v189_v6, 0.0 }
 0x110   :  { %v168_v10 = vpop.f32.mrb[4].mxu0  ;;  %v193_v11 = vpop.f32.mrb[4].mxu1 }
 0x111   :  { %213 = vst.msk [vmem:[%s525_s3 + $0x8] sm:$0xff] %vm211_vm1, %v203_v8  ;;  %218 = vst.msk [vmem:[%s525_s3 + $0x30] sm:$0xff] %vm211_vm1, %v208_v9  ;;  %v169_v12 = vadd.f32 %v225_v57, %v168_v10  ;;  %v170_v13 = vpop.f32.mrb[5].mxu0  ;;  %v194_v14 = vadd.f32 %v225_v57, %v193_v11  ;;  %v195_v15 = vpop.f32.mrb[5].mxu1 }
 0x113   :  { %v204_v16 = vmax.f32 %v169_v12, 0.0  ;;  %v209_v17 = vmax.f32 %v194_v14, 0.0 }
 0x114   :  { %v173_v18 = vpop.f32.mrb[6].mxu0  ;;  %v198_v19 = vpop.f32.mrb[6].mxu1 }
 0x115   :  { %214 = vst.msk [vmem:[%s525_s3 + $0x10] sm:$0xff] %vm211_vm1, %v204_v16  ;;  %219 = vst.msk [vmem:[%s525_s3 + $0x38] sm:$0xff] %vm211_vm1, %v209_v17  ;;  %v174_v20 = vadd.f32 %v225_v57, %v173_v18  ;;  %v175_v21 = vpop.f32.mrb[7].mxu0  ;;  %v199_v22 = vadd.f32 %v225_v57, %v198_v19  ;;  %v200_v23 = vpop.f32.mrb[7].mxu1 }
 0x117   :  { %v205_v24 = vmax.f32 %v174_v20, 0.0  ;;  %v210_v25 = vmax.f32 %v199_v22, 0.0 }
 0x118   :  { %v178_v26 = vpop.f32.mrb[8].mxu0 }
 0x119   :  { %215 = vst.msk [vmem:[%s525_s3 + $0x18] sm:$0xff] %vm211_vm1, %v205_v24  ;;  %220 = vst.msk [vmem:[%s525_s3 + $0x40] sm:$0xff] %vm211_vm1, %v210_v25  ;;  %v179_v27 = vadd.f32 %v225_v57, %v178_v26  ;;  %v180_v28 = vpop.f32.mrb[9].mxu0 }
 0x11b   :  { %v206_v29 = vmax.f32 %v179_v27, 0.0 }
 0x11d   :  { %216 = vst.msk [vmem:[%s525_s3 + $0x20] sm:$0xff] %vm211_vm1, %v206_v29 }

// kernel: forward.11
= control target key start
LH: loop header
LB: loop body
LE: loop exit
PB: predicated region body
PF: predicated region fallthrough
CT: control target
= control target key end

     0   :  { %vm27_vm0 = vcmask 588800   ;;  %vm458_vm1 = vcmask 130048   ;;  %s834_s1 = inlined_call_operand.vmem [shape: f32[72,16], index: 1, kind: input, shape index: {}]   ;;  %s835_s0 = inlined_call_operand.vmem [shape: f32[4,32,72], index: 0, kind: input, shape index: {}]   ;;  %s836_s2 = inlined_call_operand.vmem [shape: f32[1,16], index: 2, kind: input, shape index: {}]   ;;  %s837_s3 = inlined_call_operand.vmem [shape: f32[32,16], index: 3, kind: output, shape index: {}]  }
   0x1   :  { %v14_v0 = vld [vmem:[%s834_s1] sm:$0xff]  ;;  %v15_v1 = vld [vmem:[%s834_s1 + $0x8] sm:$0xff]  ;;  %v16_v2 = vld [vmem:[%s834_s1 + $0x10] sm:$0xff] }
   0x2   :  { %v644_v3 = vpack.c.bf16 %v15_v1, %v14_v0  ;;  %v17_v4 = vld [vmem:[%s834_s1 + $0x18] sm:$0xff]  ;;  %v18_v6 = vld [vmem:[%s834_s1 + $0x20] sm:$0xff]  ;;  %v19_v7 = vld [vmem:[%s834_s1 + $0x28] sm:$0xff] }
   0x3   :  { %v648_v5 = vpack.c.bf16 %v17_v4, %v16_v2  ;;  %v23_v8 = vld [vmem:[%s835_s0] sm:$0xff]  ;;  %v652_v10 = vpack.c.bf16 %v19_v7, %v18_v6  ;;  %v20_v11 = vld [vmem:[%s834_s1 + $0x30] sm:$0xff]  ;;  %v21_v12 = vld [vmem:[%s834_s1 + $0x38] sm:$0xff] }
   0x4   :  { %645 = vmatprep.subr.bf16.mxu0 %v644_v3  ;;  %661 = vmatprep.subr.bf16.mxu1 %v644_v3  ;;  %v471_v9 = vld [vmem:[%s835_s0 + $0x20] sm:$0xff]  ;;  %v656_v13 = vpack.c.bf16 %v21_v12, %v20_v11  ;;  %v24_v15 = vld [vmem:[%s835_s0 + $0x8] sm:$0xff]  ;;  %v25_v17 = vld [vmem:[%s835_s0 + $0x10] sm:$0xff] }
   0x5   :  { %647 = vmatpush3.bf16.msra.mxu0 %v644_v3  ;;  %663 = vmatpush3.bf16.msra.mxu1 %v644_v3  ;;  %v22_v14 = vld [vmem:[%s834_s1 + $0x40] sm:$0xff]  ;;  %v472_v16 = vld [vmem:[%s835_s0 + $0x28] sm:$0xff]  ;;  %v473_v18 = vld [vmem:[%s835_s0 + $0x30] sm:$0xff] }
   0x6   :  { %649 = vmatprep.subr.bf16.mxu0 %v648_v5  ;;  %665 = vmatprep.subr.bf16.mxu1 %v648_v5  ;;  %v26_v19 = vld [vmem:[%s835_s0 + $0x18] sm:$0xff]  ;;  %v479_v21 = vld [vmem:[%s835_s0 + $0x40] sm:$0xff]  ;;  %v480_v23 = vld [vmem:[%s835_s0 + $0x48] sm:$0xff] }
   0x7   :  { %566 = vmatprep.mubr.msk.f32.mxu0 %vm27_vm0, %v23_v8  ;;  %590 = vmatprep.mubr.msk.f32.mxu1 %vm27_vm0, %v471_v9  ;;  %v474_v20 = vld [vmem:[%s835_s0 + $0x38] sm:$0xff]  ;;  %v487_v22 = vld [vmem:[%s835_s0 + $0x60] sm:$0xff]  ;;  %v488_v24 = vld [vmem:[%s835_s0 + $0x68] sm:$0xff] }
   0x8   :  { %v481_v25 = vld [vmem:[%s835_s0 + $0x50] sm:$0xff]  ;;  %v482_v27 = vld [vmem:[%s835_s0 + $0x58] sm:$0xff]  ;;  %v495_v47 = vld [vmem:[%s836_s2] ss:$0 sm:$0xff] }
   0x9   :  { %651 = vmatpush3.bf16.msra.mxu0 %v648_v5  ;;  %667 = vmatpush3.bf16.msra.mxu1 %v648_v5  ;;  %v489_v26 = vld [vmem:[%s835_s0 + $0x70] sm:$0xff]  ;;  %v490_v28 = vld [vmem:[%s835_s0 + $0x78] sm:$0xff] }
   0xa   :  { %653 = vmatprep.subr.bf16.mxu0 %v652_v10  ;;  %669 = vmatprep.subr.bf16.mxu1 %v652_v10 }
   0xd   :  { %655 = vmatpush3.bf16.msra.mxu0 %v652_v10  ;;  %671 = vmatpush3.bf16.msra.mxu1 %v652_v10 }
   0xe   :  { %657 = vmatprep.subr.bf16.mxu0 %v656_v13  ;;  %673 = vmatprep.subr.bf16.mxu1 %v656_v13 }
  0x11   :  { %659 = vmatpush3.bf16.msra.mxu0 %v656_v13  ;;  %675 = vmatpush3.bf16.msra.mxu1 %v656_v13 }
  0x12   :  { %564 = vmatprep.subr.mxu0 %v22_v14  ;;  %588 = vmatprep.subr.mxu1 %v22_v14 }
  0x15   :  { %565 = vmatpush3.msra.mxu0 %v22_v14  ;;  %589 = vmatpush3.msra.mxu1 %v22_v14 }
  0x16   :  { %567 = vmatmul.mubr.msk.f32.vlgmr.msra.gmra.mrb[0].mxu0 %vm27_vm0, %v24_v15  ;;  %591 = vmatmul.mubr.msk.f32.vlgmr.msra.gmra.mrb[0].mxu1 %vm27_vm0, %v472_v16 }
  0x17   :  { %677 = vmatprep.subr.bf16.mxu0 %v644_v3  ;;  %693 = vmatprep.subr.bf16.mxu1 %v644_v3 }
  0x18   :  { %679 = vmatpush3.bf16.msra.mxu0 %v644_v3  ;;  %695 = vmatpush3.bf16.msra.mxu1 %v644_v3 }
  0x19   :  { %681 = vmatprep.subr.bf16.mxu0 %v648_v5  ;;  %697 = vmatprep.subr.bf16.mxu1 %v648_v5 }
  0x1a   :  { %569 = vmatprep.mubr.msk.f32.mxu0 %vm27_vm0, %v25_v17  ;;  %593 = vmatprep.mubr.msk.f32.mxu1 %vm27_vm0, %v473_v18 }
  0x1b   :  { %570 = vmatmul.mubr.msk.f32.gmra.mrb[2].mxu0 %vm27_vm0, %v26_v19  ;;  %594 = vmatmul.mubr.msk.f32.gmra.mrb[2].mxu1 %vm27_vm0, %v474_v20 }
  0x1c   :  { %683 = vmatpush3.bf16.msra.mxu0 %v648_v5  ;;  %699 = vmatpush3.bf16.msra.mxu1 %v648_v5 }
  0x1d   :  { %685 = vmatprep.subr.bf16.mxu0 %v652_v10  ;;  %701 = vmatprep.subr.bf16.mxu1 %v652_v10 }
  0x1e   :  { %614 = vmatprep.mubr.msk.f32.mxu0 %vm27_vm0, %v479_v21  ;;  %638 = vmatprep.mubr.msk.f32.mxu1 %vm27_vm0, %v487_v22 }
  0x20   :  { %687 = vmatpush3.bf16.msra.mxu0 %v652_v10  ;;  %703 = vmatpush3.bf16.msra.mxu1 %v652_v10 }
  0x21   :  { %689 = vmatprep.subr.bf16.mxu0 %v656_v13  ;;  %705 = vmatprep.subr.bf16.mxu1 %v656_v13 }
  0x24   :  { %691 = vmatpush3.bf16.msra.mxu0 %v656_v13  ;;  %707 = vmatpush3.bf16.msra.mxu1 %v656_v13 }
  0x25   :  { %612 = vmatprep.subr.mxu0 %v22_v14  ;;  %636 = vmatprep.subr.mxu1 %v22_v14 }
  0x28   :  { %613 = vmatpush3.msra.mxu0 %v22_v14  ;;  %637 = vmatpush3.msra.mxu1 %v22_v14 }
  0x29   :  { %615 = vmatmul.mubr.msk.f32.vlgmr.msra.gmra.mrb[4].mxu0 %vm27_vm0, %v480_v23  ;;  %639 = vmatmul.mubr.msk.f32.vlgmr.msra.gmra.mrb[4].mxu1 %vm27_vm0, %v488_v24 }
  0x2a   :  { %617 = vmatprep.mubr.msk.f32.mxu0 %vm27_vm0, %v481_v25  ;;  %641 = vmatprep.mubr.msk.f32.mxu1 %vm27_vm0, %v489_v26 }
  0x2d   :  { %618 = vmatmul.mubr.msk.f32.gmra.mrb[6].mxu0 %vm27_vm0, %v482_v27  ;;  %642 = vmatmul.mubr.msk.f32.gmra.mrb[6].mxu1 %vm27_vm0, %v490_v28 }
  0xe9   :  { %v568_v29 = vpop.f32.mrb[0].mxu0  ;;  %v592_v30 = vpop.f32.mrb[0].mxu1 }
  0xea   :  { %v228_v31 = vmax.f32 %v568_v29, %v592_v30  ;;  %v106_v32 = vpop.f32.mrb[1].mxu0  ;;  %v208_v33 = vpop.f32.mrb[1].mxu1 }
  0xeb   :  { %v227_v34 = vmax.f32 %v106_v32, %v208_v33 }
  0xee   :  { %v571_v35 = vpop.f32.mrb[2].mxu0  ;;  %v595_v36 = vpop.f32.mrb[2].mxu1 }
  0xef   :  { %v230_v37 = vmax.f32 %v571_v35, %v595_v36  ;;  %v116_v38 = vpop.f32.mrb[3].mxu0  ;;  %v218_v39 = vpop.f32.mrb[3].mxu1 }
  0xf0   :  { %v229_v40 = vmax.f32 %v116_v38, %v218_v39 }
  0xfc   :  { %v616_v41 = vpop.f32.mrb[4].mxu0  ;;  %v640_v42 = vpop.f32.mrb[4].mxu1 }
  0xfd   :  { %v334_v43 = vmax.f32 %v228_v31, %v616_v41  ;;  %v314_v44 = vpop.f32.mrb[5].mxu0  ;;  %v420_v45 = vpop.f32.mrb[5].mxu1 }
  0xfe   :  { %v333_v46 = vmax.f32 %v227_v34, %v314_v44 }
  0xff   :  { %v440_v48 = vmax.f32 %v334_v43, %v640_v42 }
 0x100   :  { %v439_v49 = vmax.f32 %v333_v46, %v420_v45  ;;  %v619_v50 = vpop.f32.mrb[6].mxu0  ;;  %v643_v51 = vpop.f32.mrb[6].mxu1 }
 0x101   :  { %v451_v52 = vadd.f32 %v495_v47, %v440_v48  ;;  %v336_v53 = vmax.f32 %v230_v37, %v619_v50  ;;  %v324_v54 = vpop.f32.mrb[7].mxu0  ;;  %v430_v55 = vpop.f32.mrb[7].mxu1 }
 0x102   :  { %v450_v56 = vadd.f32 %v495_v47, %v439_v49  ;;  %v335_v57 = vmax.f32 %v229_v40, %v324_v54 }
 0x103   :  { %v455_v58 = vmax.f32 %v451_v52, 0.0  ;;  %v442_v59 = vmax.f32 %v336_v53, %v643_v51 }
 0x104   :  { %v454_v60 = vmax.f32 %v450_v56, 0.0  ;;  %v441_v61 = vmax.f32 %v335_v57, %v430_v55 }
 0x105   :  { %460 = vst.msk [vmem:[%s837_s3 + $0x8] sm:$0xff] %vm458_vm1, %v455_v58  ;;  %v453_v62 = vadd.f32 %v495_v47, %v442_v59 }
 0x106   :  { %459 = vst.msk [vmem:[%s837_s3] sm:$0xff] %vm458_vm1, %v454_v60  ;;  %v452_v63 = vadd.f32 %v495_v47, %v441_v61 }
 0x107   :  { %v457_v0 = vmax.f32 %v453_v62, 0.0 }
 0x108   :  { %v456_v1 = vmax.f32 %v452_v63, 0.0 }
 0x109   :  { %462 = vst.msk [vmem:[%s837_s3 + $0x18] sm:$0xff] %vm458_vm1, %v457_v0 }
 0x10a   :  { %461 = vst.msk [vmem:[%s837_s3 + $0x10] sm:$0xff] %vm458_vm1, %v456_v1 }

// kernel: forward.12
= control target key start
LH: loop header
LB: loop body
LE: loop exit
PB: predicated region body
PF: predicated region fallthrough
CT: control target
= control target key end

     0   :  { %v686_v0 = vmov 0.0|0.0   ;;  %vm47_vm0 = vcmask 588800   ;;  %v687_v39 = vmov 0.0   ;;  %vm490_vm1 = vcmask 130048   ;;  %s1044_s1 = inlined_call_operand.vmem [shape: f32[200,16], index: 1, kind: input, shape index: {}]   ;;  %s1045_s0 = inlined_call_operand.vmem [shape: f32[4,32,200], index: 0, kind: input, shape index: {}]   ;;  %s1046_s2 = inlined_call_operand.vmem [shape: f32[1,16], index: 2, kind: input, shape index: {}]   ;;  %s1047_s3 = inlined_call_operand.vmem [shape: f32[32,16], index: 3, kind: output, shape index: {}]  }
   0x1   :  { %540 = vmatprep.subr.bf16.mxu0 %v686_v0  ;;  %v14_v1 = vld [vmem:[%s1044_s1] sm:$0xff]  ;;  %v15_v2 = vld [vmem:[%s1044_s1 + $0x8] sm:$0xff]  ;;  %576 = vmatprep.subr.bf16.mxu1 %v686_v0  ;;  %v16_v3 = vld [vmem:[%s1044_s1 + $0x10] sm:$0xff] }
   0x2   :  { %v719_v4 = vpack.c.bf16 %v15_v2, %v14_v1  ;;  %v17_v5 = vld [vmem:[%s1044_s1 + $0x18] sm:$0xff]  ;;  %v18_v7 = vld [vmem:[%s1044_s1 + $0x20] sm:$0xff]  ;;  %v19_v8 = vld [vmem:[%s1044_s1 + $0x28] sm:$0xff] }
   0x3   :  { %v726_v6 = vpack.c.bf16 %v17_v5, %v16_v3  ;;  %v738_v9 = vpack.c.bf16 %v19_v8, %v18_v7  ;;  %v20_v10 = vld [vmem:[%s1044_s1 + $0x30] sm:$0xff]  ;;  %v21_v11 = vld [vmem:[%s1044_s1 + $0x38] sm:$0xff]  ;;  %v40_v12 = vld [vmem:[%s1045_s0 + $0x8] sm:$0xff] }
   0x4   :  { %542 = vmatpush1.bf16.msra.mxu0 %v719_v4  ;;  %578 = vmatpush1.bf16.msra.mxu1 %v719_v4  ;;  %v504_v13 = vld [vmem:[%s1045_s0 + $0x48] sm:$0xff]  ;;  %v758_v14 = vpack.c.bf16 %v21_v11, %v20_v10  ;;  %v22_v15 = vld [vmem:[%s1044_s1 + $0x40] sm:$0xff]  ;;  %v24_v18 = vld [vmem:[%s1044_s1 + $0x50] sm:$0xff] }
   0x5   :  { %543 = vmatprep.subr.bf16.mxu0 %v686_v0  ;;  %579 = vmatprep.subr.bf16.mxu1 %v686_v0  ;;  %v23_v16 = vld [vmem:[%s1044_s1 + $0x48] sm:$0xff]  ;;  %v25_v19 = vld [vmem:[%s1044_s1 + $0x58] sm:$0xff]  ;;  %v26_v21 = vld [vmem:[%s1044_s1 + $0x60] sm:$0xff] }
   0x6   :  { %499 = vmatprep.mubr.msk.f32.mxu0 %vm47_vm0, %v40_v12  ;;  %511 = vmatprep.mubr.msk.f32.mxu1 %vm47_vm0, %v504_v13  ;;  %v770_v17 = vpack.c.bf16 %v23_v16, %v22_v15  ;;  %v782_v20 = vpack.c.bf16 %v25_v19, %v24_v18  ;;  %v27_v22 = vld [vmem:[%s1044_s1 + $0x68] sm:$0xff]  ;;  %v28_v24 = vld [vmem:[%s1044_s1 + $0x70] sm:$0xff]  ;;  %v29_v25 = vld [vmem:[%s1044_s1 + $0x78] sm:$0xff] }
   0x7   :  { %v794_v23 = vpack.c.bf16 %v27_v22, %v26_v21  ;;  %v806_v26 = vpack.c.bf16 %v29_v25, %v28_v24  ;;  %v30_v27 = vld [vmem:[%s1044_s1 + $0x80] sm:$0xff]  ;;  %v31_v28 = vld [vmem:[%s1044_s1 + $0x88] sm:$0xff]  ;;  %v32_v30 = vld [vmem:[%s1044_s1 + $0x90] sm:$0xff] }
   0x8   :  { %545 = vmatpush1.bf16.msra.mxu0 %v726_v6  ;;  %581 = vmatpush1.bf16.msra.mxu1 %v726_v6  ;;  %v818_v29 = vpack.c.bf16 %v31_v28, %v30_v27  ;;  %v33_v31 = vld [vmem:[%s1044_s1 + $0x98] sm:$0xff]  ;;  %v34_v33 = vld [vmem:[%s1044_s1 + $0xa0] sm:$0xff]  ;;  %v35_v34 = vld [vmem:[%s1044_s1 + $0xa8] sm:$0xff] }
   0x9   :  { %546 = vmatprep.subr.bf16.mxu0 %v686_v0  ;;  %582 = vmatprep.subr.bf16.mxu1 %v686_v0  ;;  %v830_v32 = vpack.c.bf16 %v33_v31, %v32_v30  ;;  %v842_v35 = vpack.c.bf16 %v35_v34, %v34_v33  ;;  %v36_v36 = vld [vmem:[%s1044_s1 + $0xb0] sm:$0xff]  ;;  %v37_v37 = vld [vmem:[%s1044_s1 + $0xb8] sm:$0xff]  ;;  %v864_v40 = vld [vmem:[%s1044_s1 + $0xc0] sm:$0xff] }
   0xa   :  { %v854_v38 = vpack.c.bf16 %v37_v37, %v36_v36  ;;  %v39_v41 = vld [vmem:[%s1045_s0] sm:$0xff]  ;;  %v42_v43 = vld [vmem:[%s1045_s0 + $0x18] sm:$0xff]  ;;  %v41_v44 = vld [vmem:[%s1045_s0 + $0x10] sm:$0xff] }
   0xb   :  { %v503_v42 = vld [vmem:[%s1045_s0 + $0x40] sm:$0xff]  ;;  %v506_v45 = vld [vmem:[%s1045_s0 + $0x58] sm:$0xff]  ;;  %v505_v46 = vld [vmem:[%s1045_s0 + $0x50] sm:$0xff] }
   0xc   :  { %548 = vmatpush1.bf16.msra.mxu0 %v738_v9  ;;  %584 = vmatpush1.bf16.msra.mxu1 %v738_v9  ;;  %v44_v47 = vld [vmem:[%s1045_s0 + $0x28] sm:$0xff]  ;;  %v43_v48 = vld [vmem:[%s1045_s0 + $0x20] sm:$0xff]  ;;  %v46_v51 = vld [vmem:[%s1045_s0 + $0x38] sm:$0xff] }
   0xd   :  { %549 = vmatprep.subr.bf16.mxu0 %v686_v0  ;;  %585 = vmatprep.subr.bf16.mxu1 %v686_v0  ;;  %v508_v49 = vld [vmem:[%s1045_s0 + $0x68] sm:$0xff]  ;;  %v507_v50 = vld [vmem:[%s1045_s0 + $0x60] sm:$0xff]  ;;  %v45_v52 = vld [vmem:[%s1045_s0 + $0x30] sm:$0xff] }
   0xe   :  { %v510_v53 = vld [vmem:[%s1045_s0 + $0x78] sm:$0xff]  ;;  %v509_v54 = vld [vmem:[%s1045_s0 + $0x70] sm:$0xff]  ;;  %v516_v55 = vld [vmem:[%s1045_s0 + $0x88] sm:$0xff] }
   0xf   :  { %v528_v56 = vld [vmem:[%s1045_s0 + $0xc8] sm:$0xff]  ;;  %v515_v57 = vld [vmem:[%s1045_s0 + $0x80] sm:$0xff]  ;;  %v518_v58 = vld [vmem:[%s1045_s0 + $0x98] sm:$0xff] }
  0x10   :  { %551 = vmatpush1.bf16.msra.mxu0 %v758_v14  ;;  %587 = vmatpush1.bf16.msra.mxu1 %v758_v14  ;;  %v527_v59 = vld [vmem:[%s1045_s0 + $0xc0] sm:$0xff]  ;;  %v530_v60 = vld [vmem:[%s1045_s0 + $0xd8] sm:$0xff]  ;;  %v517_v61 = vld [vmem:[%s1045_s0 + $0x90] sm:$0xff] }
  0x11   :  { %552 = vmatprep.subr.bf16.mxu0 %v686_v0  ;;  %588 = vmatprep.subr.bf16.mxu1 %v686_v0  ;;  %v520_v62 = vld [vmem:[%s1045_s0 + $0xa8] sm:$0xff]  ;;  %v529_v63 = vld [vmem:[%s1045_s0 + $0xd0] sm:$0xff]  ;;  %v519_v1 = vld [vmem:[%s1045_s0 + $0xa0] sm:$0xff] }
  0x12   :  { %v522_v2 = vld [vmem:[%s1045_s0 + $0xb8] sm:$0xff]  ;;  %v531_v3 = vld [vmem:[%s1045_s0 + $0xe0] sm:$0xff]  ;;  %v521_v5 = vld [vmem:[%s1045_s0 + $0xb0] sm:$0xff] }
  0x13   :  { %v539_v31 = vld [vmem:[%s1046_s2] ss:$0 sm:$0xff] }
  0x14   :  { %554 = vmatpush1.bf16.msra.mxu0 %v770_v17  ;;  %590 = vmatpush1.bf16.msra.mxu1 %v770_v17 }
  0x15   :  { %555 = vmatprep.subr.bf16.mxu0 %v686_v0  ;;  %591 = vmatprep.subr.bf16.mxu1 %v686_v0 }
  0x18   :  { %557 = vmatpush1.bf16.msra.mxu0 %v782_v20  ;;  %593 = vmatpush1.bf16.msra.mxu1 %v782_v20 }
  0x19   :  { %558 = vmatprep.subr.bf16.mxu0 %v686_v0  ;;  %594 = vmatprep.subr.bf16.mxu1 %v686_v0 }
  0x1c   :  { %560 = vmatpush1.bf16.msra.mxu0 %v794_v23  ;;  %596 = vmatpush1.bf16.msra.mxu1 %v794_v23 }
  0x1d   :  { %561 = vmatprep.subr.bf16.mxu0 %v686_v0  ;;  %597 = vmatprep.subr.bf16.mxu1 %v686_v0 }
  0x20   :  { %563 = vmatpush1.bf16.msra.mxu0 %v806_v26  ;;  %599 = vmatpush1.bf16.msra.mxu1 %v806_v26 }
  0x21   :  { %564 = vmatprep.subr.bf16.mxu0 %v686_v0  ;;  %600 = vmatprep.subr.bf16.mxu1 %v686_v0 }
  0x24   :  { %566 = vmatpush1.bf16.msra.mxu0 %v818_v29  ;;  %602 = vmatpush1.bf16.msra.mxu1 %v818_v29 }
  0x25   :  { %567 = vmatprep.subr.bf16.mxu0 %v686_v0  ;;  %603 = vmatprep.subr.bf16.mxu1 %v686_v0 }
  0x28   :  { %569 = vmatpush1.bf16.msra.mxu0 %v830_v32  ;;  %605 = vmatpush1.bf16.msra.mxu1 %v830_v32 }
  0x29   :  { %570 = vmatprep.subr.bf16.mxu0 %v686_v0  ;;  %606 = vmatprep.subr.bf16.mxu1 %v686_v0 }
  0x2c   :  { %572 = vmatpush1.bf16.msra.mxu0 %v842_v35  ;;  %608 = vmatpush1.bf16.msra.mxu1 %v842_v35 }
  0x2d   :  { %573 = vmatprep.subr.bf16.mxu0 %v686_v0  ;;  %609 = vmatprep.subr.bf16.mxu1 %v686_v0 }
  0x30   :  { %575 = vmatpush1.bf16.msra.mxu0 %v854_v38  ;;  %611 = vmatpush1.bf16.msra.mxu1 %v854_v38 }
  0x31   :  { %108 = vmatprep.subr.mxu0 %v687_v39  ;;  %214 = vmatprep.subr.mxu1 %v687_v39 }
  0x34   :  { %109 = vmatpush1.msra.mxu0 %v864_v40  ;;  %215 = vmatpush1.msra.mxu1 %v864_v40 }
  0x35   :  { %125 = vmatmul.mubr.f32.vlgmr.msra.gmra.mrb[0].mxu0 %v39_v41  ;;  %612 = vmatprep.subr.bf16.mxu0 %v686_v0 }
  0x36   :  { %231 = vmatmul.mubr.f32.vlgmr.msra.gmra.mrb[0].mxu1 %v503_v42  ;;  %614 = vmatpush1.bf16.msra.mxu0 %v719_v4 }
  0x37   :  { %648 = vmatprep.subr.bf16.mxu1 %v686_v0  ;;  %615 = vmatprep.subr.bf16.mxu0 %v686_v0 }
  0x38   :  { %650 = vmatpush1.bf16.msra.mxu1 %v719_v4  ;;  %500 = vmatprep.mubr.msk.f32.mxu0 %vm47_vm0, %v42_v43  ;;  %v534_v4 = vld [vmem:[%s1045_s0 + $0xf8] sm:$0xff] }
  0x39   :  { %651 = vmatprep.subr.bf16.mxu1 %v686_v0  ;;  %130 = vmatmul.mubr.f32.gmra.mrb[2].mxu0 %v41_v44 }
  0x3a   :  { %617 = vmatpush1.bf16.msra.mxu0 %v726_v6  ;;  %512 = vmatprep.mubr.msk.f32.mxu1 %vm47_vm0, %v506_v45 }
  0x3b   :  { %618 = vmatprep.subr.bf16.mxu0 %v686_v0  ;;  %236 = vmatmul.mubr.f32.gmra.mrb[2].mxu1 %v505_v46 }
  0x3c   :  { %653 = vmatpush1.bf16.msra.mxu1 %v726_v6  ;;  %501 = vmatprep.mubr.msk.f32.mxu0 %vm47_vm0, %v44_v47  ;;  %v533_v6 = vld [vmem:[%s1045_s0 + $0xf0] sm:$0xff] }
  0x3d   :  { %654 = vmatprep.subr.bf16.mxu1 %v686_v0  ;;  %135 = vmatmul.mubr.f32.gmra.mrb[4].mxu0 %v43_v48 }
  0x3e   :  { %620 = vmatpush1.bf16.msra.mxu0 %v738_v9  ;;  %513 = vmatprep.mubr.msk.f32.mxu1 %vm47_vm0, %v508_v49 }
  0x3f   :  { %621 = vmatprep.subr.bf16.mxu0 %v686_v0  ;;  %241 = vmatmul.mubr.f32.gmra.mrb[4].mxu1 %v507_v50 }
  0x40   :  { %656 = vmatpush1.bf16.msra.mxu1 %v738_v9  ;;  %502 = vmatprep.mubr.msk.f32.mxu0 %vm47_vm0, %v46_v51 }
  0x41   :  { %657 = vmatprep.subr.bf16.mxu1 %v686_v0  ;;  %140 = vmatmul.mubr.f32.gmra.mrb[6].mxu0 %v45_v52 }
  0x42   :  { %623 = vmatpush1.bf16.msra.mxu0 %v758_v14  ;;  %514 = vmatprep.mubr.msk.f32.mxu1 %vm47_vm0, %v510_v53 }
  0x43   :  { %624 = vmatprep.subr.bf16.mxu0 %v686_v0  ;;  %246 = vmatmul.mubr.f32.gmra.mrb[6].mxu1 %v509_v54 }
  0x44   :  { %659 = vmatpush1.bf16.msra.mxu1 %v758_v14  ;;  %523 = vmatprep.mubr.msk.f32.mxu0 %vm47_vm0, %v516_v55 }
  0x45   :  { %660 = vmatprep.subr.bf16.mxu1 %v686_v0  ;;  %535 = vmatprep.mubr.msk.f32.mxu1 %vm47_vm0, %v528_v56 }
  0x46   :  { %626 = vmatpush1.bf16.msra.mxu0 %v770_v17 }
  0x47   :  { %627 = vmatprep.subr.bf16.mxu0 %v686_v0 }
  0x48   :  { %662 = vmatpush1.bf16.msra.mxu1 %v770_v17 }
  0x49   :  { %663 = vmatprep.subr.bf16.mxu1 %v686_v0 }
  0x4a   :  { %629 = vmatpush1.bf16.msra.mxu0 %v782_v20 }
  0x4b   :  { %630 = vmatprep.subr.bf16.mxu0 %v686_v0 }
  0x4c   :  { %665 = vmatpush1.bf16.msra.mxu1 %v782_v20 }
  0x4d   :  { %666 = vmatprep.subr.bf16.mxu1 %v686_v0 }
  0x4e   :  { %632 = vmatpush1.bf16.msra.mxu0 %v794_v23 }
  0x4f   :  { %633 = vmatprep.subr.bf16.mxu0 %v686_v0 }
  0x50   :  { %668 = vmatpush1.bf16.msra.mxu1 %v794_v23 }
  0x51   :  { %669 = vmatprep.subr.bf16.mxu1 %v686_v0 }
  0x52   :  { %635 = vmatpush1.bf16.msra.mxu0 %v806_v26 }
  0x53   :  { %636 = vmatprep.subr.bf16.mxu0 %v686_v0 }
  0x54   :  { %671 = vmatpush1.bf16.msra.mxu1 %v806_v26 }
  0x55   :  { %672 = vmatprep.subr.bf16.mxu1 %v686_v0 }
  0x56   :  { %638 = vmatpush1.bf16.msra.mxu0 %v818_v29 }
  0x57   :  { %639 = vmatprep.subr.bf16.mxu0 %v686_v0 }
  0x58   :  { %674 = vmatpush1.bf16.msra.mxu1 %v818_v29 }
  0x59   :  { %675 = vmatprep.subr.bf16.mxu1 %v686_v0 }
  0x5a   :  { %641 = vmatpush1.bf16.msra.mxu0 %v830_v32 }
  0x5b   :  { %642 = vmatprep.subr.bf16.mxu0 %v686_v0 }
  0x5c   :  { %677 = vmatpush1.bf16.msra.mxu1 %v830_v32 }
  0x5d   :  { %678 = vmatprep.subr.bf16.mxu1 %v686_v0 }
  0x5e   :  { %644 = vmatpush1.bf16.msra.mxu0 %v842_v35 }
  0x5f   :  { %645 = vmatprep.subr.bf16.mxu0 %v686_v0 }
  0x60   :  { %680 = vmatpush1.bf16.msra.mxu1 %v842_v35 }
  0x61   :  { %681 = vmatprep.subr.bf16.mxu1 %v686_v0  ;;  %v532_v0 = vld [vmem:[%s1045_s0 + $0xe8] sm:$0xff] }
  0x62   :  { %647 = vmatpush1.bf16.msra.mxu0 %v854_v38 }
  0x63   :  { %324 = vmatprep.subr.mxu0 %v687_v39 }
  0x64   :  { %683 = vmatpush1.bf16.msra.mxu1 %v854_v38 }
  0x65   :  { %434 = vmatprep.subr.mxu1 %v687_v39 }
  0x66   :  { %325 = vmatpush1.msra.mxu0 %v864_v40 }
  0x67   :  { %341 = vmatmul.mubr.f32.vlgmr.msra.gmra.mrb[8].mxu0 %v515_v57 }
  0x68   :  { %435 = vmatpush1.msra.mxu1 %v864_v40  ;;  %524 = vmatprep.mubr.msk.f32.mxu0 %vm47_vm0, %v518_v58 }
  0x69   :  { %451 = vmatmul.mubr.f32.vlgmr.msra.gmra.mrb[8].mxu1 %v527_v59 }
  0x6a   :  { %536 = vmatprep.mubr.msk.f32.mxu1 %vm47_vm0, %v530_v60 }
  0x6b   :  { %346 = vmatmul.mubr.f32.gmra.mrb[10].mxu0 %v517_v61 }
  0x6c   :  { %525 = vmatprep.mubr.msk.f32.mxu0 %vm47_vm0, %v520_v62 }
  0x6d   :  { %456 = vmatmul.mubr.f32.gmra.mrb[10].mxu1 %v529_v63 }
  0x6e   :  { %537 = vmatprep.mubr.msk.f32.mxu1 %vm47_vm0, %v532_v0 }
  0x6f   :  { %351 = vmatmul.mubr.f32.gmra.mrb[12].mxu0 %v519_v1 }
  0x70   :  { %526 = vmatprep.mubr.msk.f32.mxu0 %vm47_vm0, %v522_v2 }
  0x71   :  { %461 = vmatmul.mubr.f32.gmra.mrb[12].mxu1 %v531_v3 }
  0x72   :  { %538 = vmatprep.mubr.msk.f32.mxu1 %vm47_vm0, %v534_v4 }
  0x73   :  { %356 = vmatmul.mubr.f32.gmra.mrb[14].mxu0 %v521_v5 }
  0x75   :  { %466 = vmatmul.mubr.f32.gmra.mrb[14].mxu1 %v533_v6 }
 0x108   :  { %v126_v7 = vpop.f32.mrb[0].mxu0 }
 0x109   :  { %v128_v8 = vpop.f32.mrb[1].mxu0  ;;  %v232_v9 = vpop.f32.mrb[0].mxu1 }
 0x10a   :  { %v251_v10 = vmax.f32 %v126_v7, %v232_v9  ;;  %v234_v11 = vpop.f32.mrb[1].mxu1 }
 0x10c   :  { %v131_v12 = vpop.f32.mrb[2].mxu0 }
 0x10d   :  { %v133_v13 = vpop.f32.mrb[3].mxu0 }
 0x10e   :  { %v237_v14 = vpop.f32.mrb[2].mxu1 }
 0x10f   :  { %v252_v15 = vmax.f32 %v131_v12, %v237_v14  ;;  %v239_v16 = vpop.f32.mrb[3].mxu1 }
 0x110   :  { %v136_v17 = vpop.f32.mrb[4].mxu0 }
 0x111   :  { %v138_v18 = vpop.f32.mrb[5].mxu0 }
 0x112   :  { %v242_v19 = vpop.f32.mrb[4].mxu1 }
 0x113   :  { %v253_v20 = vmax.f32 %v136_v17, %v242_v19  ;;  %v244_v21 = vpop.f32.mrb[5].mxu1 }
 0x114   :  { %v141_v22 = vpop.f32.mrb[6].mxu0 }
 0x115   :  { %v143_v23 = vpop.f32.mrb[7].mxu0 }
 0x116   :  { %v247_v24 = vpop.f32.mrb[6].mxu1 }
 0x117   :  { %v254_v25 = vmax.f32 %v141_v22, %v247_v24  ;;  %v249_v26 = vpop.f32.mrb[7].mxu1 }
 0x13a   :  { %v342_v27 = vpop.f32.mrb[8].mxu0 }
 0x13b   :  { %v361_v28 = vmax.f32 %v251_v10, %v342_v27  ;;  %v344_v29 = vpop.f32.mrb[9].mxu0 }
 0x13c   :  { %v452_v30 = vpop.f32.mrb[8].mxu1 }
 0x13d   :  { %v471_v32 = vmax.f32 %v361_v28, %v452_v30  ;;  %v454_v33 = vpop.f32.mrb[9].mxu1 }
 0x13e   :  { %v347_v34 = vpop.f32.mrb[10].mxu0 }
 0x13f   :  { %v482_v35 = vadd.f32 %v539_v31, %v471_v32  ;;  %v362_v36 = vmax.f32 %v252_v15, %v347_v34  ;;  %v349_v37 = vpop.f32.mrb[11].mxu0 }
 0x140   :  { %v457_v38 = vpop.f32.mrb[10].mxu1 }
 0x141   :  { %v486_v39 = vmax.f32 %v482_v35, 0.0  ;;  %v472_v40 = vmax.f32 %v362_v36, %v457_v38  ;;  %v459_v41 = vpop.f32.mrb[11].mxu1 }
 0x142   :  { %v352_v42 = vpop.f32.mrb[12].mxu0 }
 0x143   :  { %491 = vst.msk [vmem:[%s1047_s3] sm:$0xff] %vm490_vm1, %v486_v39  ;;  %v483_v43 = vadd.f32 %v539_v31, %v472_v40  ;;  %v363_v44 = vmax.f32 %v253_v20, %v352_v42  ;;  %v354_v45 = vpop.f32.mrb[13].mxu0 }
 0x144   :  { %v462_v46 = vpop.f32.mrb[12].mxu1 }
 0x145   :  { %v487_v47 = vmax.f32 %v483_v43, 0.0  ;;  %v473_v48 = vmax.f32 %v363_v44, %v462_v46  ;;  %v464_v49 = vpop.f32.mrb[13].mxu1 }
 0x146   :  { %v357_v50 = vpop.f32.mrb[14].mxu0 }
 0x147   :  { %492 = vst.msk [vmem:[%s1047_s3 + $0x8] sm:$0xff] %vm490_vm1, %v487_v47  ;;  %v484_v51 = vadd.f32 %v539_v31, %v473_v48  ;;  %v364_v52 = vmax.f32 %v254_v25, %v357_v50  ;;  %v359_v53 = vpop.f32.mrb[15].mxu0 }
 0x148   :  { %v467_v54 = vpop.f32.mrb[14].mxu1 }
 0x149   :  { %v488_v55 = vmax.f32 %v484_v51, 0.0  ;;  %v474_v56 = vmax.f32 %v364_v52, %v467_v54  ;;  %v469_v57 = vpop.f32.mrb[15].mxu1 }
 0x14b   :  { %493 = vst.msk [vmem:[%s1047_s3 + $0x10] sm:$0xff] %vm490_vm1, %v488_v55  ;;  %v485_v58 = vadd.f32 %v539_v31, %v474_v56 }
 0x14d   :  { %v489_v59 = vmax.f32 %v485_v58, 0.0 }
 0x14f   :  { %494 = vst.msk [vmem:[%s1047_s3 + $0x18] sm:$0xff] %vm490_vm1, %v489_v59 }

// kernel: forward.13
= control target key start
LH: loop header
LB: loop body
LE: loop exit
PB: predicated region body
PF: predicated region fallthrough
CT: control target
= control target key end

     0   :  { %21 = vsyncpa [#allocation3], 0  ;;  %v938_v7 = vmov 0.0|0.0   ;;  %vm939_vm0 = vmmov 0   ;;  %v940_v8 = vmov 0.0   ;;  %s1381_s0 = inlined_call_operand.vmem [shape: f32[2,128], index: 0, kind: input, shape index: {}]   ;;  %s1382_s1 = inlined_call_operand.vmem [shape: f32[2,256], index: 1, kind: input, shape index: {}]   ;;  %s1383_s2 = inlined_call_operand.vmem [shape: f32[2,256], index: 2, kind: input, shape index: {}]   ;;  %s1384_s3 = inlined_call_operand.vmem [shape: f32[128,10], index: 3, kind: input, shape index: {}]   ;;  %s1385_s4 = inlined_call_operand.vmem [shape: f32[1,10], index: 4, kind: input, shape index: {}]   ;;  %s1386_s5 = inlined_call_operand.vmem [shape: f32[256,32], index: 5, kind: input, shape index: {}]   ;;  %s1387_s6 = inlined_call_operand.vmem [shape: f32[1,32], index: 6, kind: input, shape index: {}]   ;;  %s1388_s7 = inlined_call_operand.vmem [shape: f32[32,10], index: 7, kind: input, shape index: {}]   ;;  %s1389_s8 = inlined_call_operand.vmem [shape: f32[1,10], index: 8, kind: input, shape index: {}]   ;;  %s1390_s9 = inlined_call_operand.vmem [shape: f32[256,32], index: 9, kind: input, shape index: {}]   ;;  %s1391_s10 = inlined_call_operand.vmem [shape: f32[1,32], index: 10, kind: input, shape index: {}]   ;;  %s1392_s11 = inlined_call_operand.vmem [shape: f32[32,10], index: 11, kind: input, shape index: {}]   ;;  %s1393_s12 = inlined_call_operand.vmem [shape: f32[1,10], index: 12, kind: input, shape index: {}]   ;;  %s1394_s13 = inlined_call_operand.hbm [shape: f32[2,10], index: 13, kind: output, shape index: {0}]   ;;  %s1395_s14 = inlined_call_operand.hbm [shape: f32[2,10], index: 14, kind: output, shape index: {1}]   ;;  %s1396_s15 = inlined_call_operand.hbm [shape: f32[2,10], index: 15, kind: output, shape index: {2}]  }
   0x1   :  { %v162_v0 = vld [vmem:[%s1386_s5 + $0x80] sm:$0xff]  ;;  %v163_v1 = vld [vmem:[%s1386_s5 + $0x88] sm:$0xff]  ;;  %v164_v5 = vld [vmem:[%s1386_s5 + $0x90] sm:$0xff]  ;;  %762 = vmatprep.subr.bf16.mxu0 %v938_v7  ;;  %737 = vmatprep.mubr.msk.f32.mxu0 %vm939_vm0, %v940_v8 }
   0x2   :  { %v146_v2 = vld [vmem:[%s1386_s5] sm:$0xff]  ;;  %v786_v3 = vpack.c.bf16 %v163_v1, %v162_v0  ;;  %v147_v4 = vld [vmem:[%s1386_s5 + $0x8] sm:$0xff]  ;;  %v165_v6 = vld [vmem:[%s1386_s5 + $0x98] sm:$0xff] }
   0x3   :  { %v788_v9 = vpack.c.bf16 %v147_v4, %v146_v2  ;;  %v790_v10 = vpack.c.bf16 %v165_v6, %v164_v5  ;;  %v148_v11 = vld [vmem:[%s1386_s5 + $0x10] sm:$0xff]  ;;  %v149_v12 = vld [vmem:[%s1386_s5 + $0x18] sm:$0xff]  ;;  %v166_v13 = vld [vmem:[%s1386_s5 + $0xa0] sm:$0xff] }
   0x4   :  { %787 = vmatprep.subr.bf16.mxu1 %v786_v3  ;;  %v167_v14 = vld [vmem:[%s1386_s5 + $0xa8] sm:$0xff]  ;;  %v792_v15 = vpack.c.bf16 %v149_v12, %v148_v11  ;;  %v150_v17 = vld [vmem:[%s1386_s5 + $0x20] sm:$0xff]  ;;  %v168_v19 = vld [vmem:[%s1386_s5 + $0xb0] sm:$0xff] }
   0x5   :  { %789 = vmatpush3.bf16.msra.mxu1 %v788_v9  ;;  %v794_v16 = vpack.c.bf16 %v167_v14, %v166_v13  ;;  %v151_v18 = vld [vmem:[%s1386_s5 + $0x28] sm:$0xff]  ;;  %v169_v20 = vld [vmem:[%s1386_s5 + $0xb8] sm:$0xff]  ;;  %v152_v23 = vld [vmem:[%s1386_s5 + $0x30] sm:$0xff] }
   0x6   :  { %791 = vmatprep.subr.bf16.mxu1 %v790_v10  ;;  %v796_v21 = vpack.c.bf16 %v151_v18, %v150_v17  ;;  %v798_v22 = vpack.c.bf16 %v169_v20, %v168_v19  ;;  %v153_v24 = vld [vmem:[%s1386_s5 + $0x38] sm:$0xff]  ;;  %v170_v25 = vld [vmem:[%s1386_s5 + $0xc0] sm:$0xff]  ;;  %v171_v26 = vld [vmem:[%s1386_s5 + $0xc8] sm:$0xff] }
   0x7   :  { %v1084_v27 = vld.sshfl [vmem:[%s1382_s1] sm:$0x33 pattern:$0x76325410]  ;;  %v800_v29 = vpack.c.bf16 %v153_v24, %v152_v23  ;;  %v802_v30 = vpack.c.bf16 %v171_v26, %v170_v25  ;;  %v155_v32 = vld [vmem:[%s1386_s5 + $0x48] sm:$0xff]  ;;  %v172_v33 = vld [vmem:[%s1386_s5 + $0xd0] sm:$0xff] }
   0x8   :  { %v193_v28 = vcombine.high %v1084_v27, %v1084_v27  ;;  %v154_v31 = vld [vmem:[%s1386_s5 + $0x40] sm:$0xff]  ;;  %v173_v34 = vld [vmem:[%s1386_s5 + $0xd8] sm:$0xff]  ;;  %v156_v37 = vld [vmem:[%s1386_s5 + $0x50] sm:$0xff] }
   0x9   :  { %793 = vmatpush3.bf16.msra.mxu1 %v792_v15  ;;  %v804_v35 = vpack.c.bf16 %v155_v32, %v154_v31  ;;  %v806_v36 = vpack.c.bf16 %v173_v34, %v172_v33  ;;  %v157_v38 = vld [vmem:[%s1386_s5 + $0x58] sm:$0xff]  ;;  %v174_v39 = vld [vmem:[%s1386_s5 + $0xe0] sm:$0xff]  ;;  %v175_v40 = vld [vmem:[%s1386_s5 + $0xe8] sm:$0xff] }
   0xa   :  { %795 = vmatprep.subr.bf16.mxu1 %v794_v16  ;;  %260 = vmatprep.mubr.f32.mxu1 %v193_v28  ;;  %v808_v41 = vpack.c.bf16 %v157_v38, %v156_v37  ;;  %v158_v42 = vld [vmem:[%s1386_s5 + $0x60] sm:$0xff]  ;;  %v810_v43 = vpack.c.bf16 %v175_v40, %v174_v39  ;;  %v159_v44 = vld [vmem:[%s1386_s5 + $0x68] sm:$0xff]  ;;  %v176_v45 = vld [vmem:[%s1386_s5 + $0xf0] sm:$0xff] }
   0xb   :  { %v177_v46 = vld [vmem:[%s1386_s5 + $0xf8] sm:$0xff]  ;;  %v50_v47 = vld [vmem:[%s1384_s3] sm:$0xff]  ;;  %v51_v48 = vld [vmem:[%s1384_s3 + $0x8] sm:$0xff]  ;;  %v812_v52 = vpack.c.bf16 %v159_v44, %v158_v42 }
   0xc   :  { %v52_v49 = vld [vmem:[%s1384_s3 + $0x10] sm:$0xff]  ;;  %v763_v50 = vpack.c.bf16 %v51_v48, %v50_v47  ;;  %v53_v51 = vld [vmem:[%s1384_s3 + $0x18] sm:$0xff]  ;;  %v814_v53 = vpack.c.bf16 %v177_v46, %v176_v45  ;;  %v369_v56 = vld [vmem:[%s1390_s9 + $0x80] sm:$0xff] }
   0xd   :  { %797 = vmatpush3.bf16.msra.mxu1 %v796_v21  ;;  %v160_v54 = vld [vmem:[%s1386_s5 + $0x70] sm:$0xff]  ;;  %v161_v55 = vld [vmem:[%s1386_s5 + $0x78] sm:$0xff]  ;;  %v766_v57 = vpack.c.bf16 %v53_v51, %v52_v49  ;;  %v370_v58 = vld [vmem:[%s1390_s9 + $0x88] sm:$0xff] }
   0xe   :  { %799 = vmatprep.subr.bf16.mxu1 %v798_v22  ;;  %764 = vmatpush3.bf16.msra.mxu0 %v763_v50  ;;  %v54_v59 = vld [vmem:[%s1384_s3 + $0x20] sm:$0xff]  ;;  %v55_v60 = vld [vmem:[%s1384_s3 + $0x28] sm:$0xff]  ;;  %v816_v61 = vpack.c.bf16 %v161_v55, %v160_v54 }
   0xf   :  { %765 = vmatprep.subr.bf16.mxu0 %v938_v7  ;;  %v353_v62 = vld [vmem:[%s1390_s9] sm:$0xff] }
  0x11   :  { %801 = vmatpush3.bf16.msra.mxu1 %v800_v29 }
  0x12   :  { %803 = vmatprep.subr.bf16.mxu1 %v802_v30 }
  0x15   :  { %805 = vmatpush3.bf16.msra.mxu1 %v804_v35 }
  0x16   :  { %807 = vmatprep.subr.bf16.mxu1 %v806_v36 }
  0x19   :  { %809 = vmatpush3.bf16.msra.mxu1 %v808_v41 }
  0x1a   :  { %811 = vmatprep.subr.bf16.mxu1 %v810_v43 }
  0x1d   :  { %813 = vmatpush3.bf16.msra.mxu1 %v812_v52 }
  0x1e   :  { %22 = vsyncpa [#allocation5], 0  ;;  %815 = vmatprep.subr.bf16.mxu1 %v814_v53  ;;  %v824_v63 = vpack.c.bf16 %v370_v58, %v369_v56  ;;  %v354_v0 = vld [vmem:[%s1390_s9 + $0x8] sm:$0xff]  ;;  %v371_v1 = vld [vmem:[%s1390_s9 + $0x90] sm:$0xff]  ;;  %767 = vmatpush3.bf16.msra.mxu0 %v766_v57  ;;  %v769_v3 = vpack.c.bf16 %v55_v60, %v54_v59  ;;  %vm277_vm1 = vcmask 261120   ;;  %vm143_vm2 = vcmask 74752  }
  0x1f   :  { %v1167_v2 = vld.sshfl [vmem:[%s1383_s2] sm:$0x33 pattern:$0x76325410]  ;;  %v372_v4 = vld [vmem:[%s1390_s9 + $0x98] sm:$0xff]  ;;  %768 = vmatprep.subr.bf16.mxu0 %v938_v7  ;;  %v56_v5 = vld [vmem:[%s1384_s3 + $0x30] sm:$0xff]  ;;  %v826_v9 = vpack.c.bf16 %v354_v0, %v353_v62 }
  0x20   :  { %v57_v6 = vld [vmem:[%s1384_s3 + $0x38] sm:$0xff]  ;;  %v400_v10 = vcombine.high %v1167_v2, %v1167_v2  ;;  %v828_v11 = vpack.c.bf16 %v372_v4, %v371_v1  ;;  %v355_v12 = vld [vmem:[%s1390_s9 + $0x10] sm:$0xff]  ;;  %v373_v14 = vld [vmem:[%s1390_s9 + $0xa0] sm:$0xff]  ;;  %s941_s30 = smov [#allocation2]  }
  0x21   :  { %817 = vmatpush3.bf16.msra.mxu1 %v816_v61  ;;  %v356_v13 = vld [vmem:[%s1390_s9 + $0x18] sm:$0xff]  ;;  %v772_v15 = vpack.c.bf16 %v57_v6, %v56_v5  ;;  %v374_v16 = vld [vmem:[%s1390_s9 + $0xa8] sm:$0xff]  ;;  %v58_v17 = vld [vmem:[%s1384_s3 + $0x40] sm:$0xff]  ;;  %s564_s16 = sshll.u32 %s941_s30, 4  ;;  %s565_s16 = int_to_ptr.vmem [resolvable:$true] %s564_s16 }
  0x22   :  { %825 = vmatprep.subr.bf16.mxu1 %v824_v63  ;;  %770 = vmatpush3.bf16.msra.mxu0 %v769_v3  ;;  %v59_v18 = vld [vmem:[%s1384_s3 + $0x48] sm:$0xff]  ;;  %v830_v19 = vpack.c.bf16 %v356_v13, %v355_v12  ;;  %v832_v20 = vpack.c.bf16 %v374_v16, %v373_v14  ;;  %v357_v21 = vld [vmem:[%s1390_s9 + $0x20] sm:$0xff]  ;;  %v375_v23 = vld [vmem:[%s1390_s9 + $0xb0] sm:$0xff]  ;;  %s868_s1 = scalar_lea.vmem %s565_s16, 32  ;;  %p873_p1 = scmp.lt.s32.totalorder %s565_s16, %s565_s16 }
  0x23   :  { %771 = vmatprep.subr.bf16.mxu0 %v938_v7  ;;  %v358_v22 = vld [vmem:[%s1390_s9 + $0x28] sm:$0xff]  ;;  %v775_v24 = vpack.c.bf16 %v59_v18, %v58_v17  ;;  %v376_v25 = vld [vmem:[%s1390_s9 + $0xb8] sm:$0xff]  ;;  %v60_v26 = vld [vmem:[%s1384_s3 + $0x50] sm:$0xff]  ;;  %p869_p0 = scmp.ne.s32.totalorder %s565_s16, %s868_s1  ;;  %p874_p2 = scmp.lt.s32.totalorder %s868_s1, %s868_s1 }
  0x24   :  { %261 = vmatmul.mubr.f32.vlgmr.msra.gmra.mrb[0].mxu1 %v1084_v27  ;;  %v61_v27 = vld [vmem:[%s1384_s3 + $0x58] sm:$0xff]  ;;  %v834_v28 = vpack.c.bf16 %v358_v22, %v357_v21  ;;  %v836_v29 = vpack.c.bf16 %v376_v25, %v375_v23  ;;  %v359_v30 = vld [vmem:[%s1390_s9 + $0x30] sm:$0xff]  ;;  %v377_v32 = vld [vmem:[%s1390_s9 + $0xc0] sm:$0xff] }
  0x25   :  { %827 = vmatpush3.bf16.msra.mxu1 %v826_v9  ;;  %467 = vmatprep.mubr.f32.mxu1 %v400_v10  ;;  %v360_v31 = vld [vmem:[%s1390_s9 + $0x38] sm:$0xff]  ;;  %v778_v33 = vpack.c.bf16 %v61_v27, %v60_v26  ;;  %v378_v34 = vld [vmem:[%s1390_s9 + $0xc8] sm:$0xff]  ;;  %v62_v35 = vld [vmem:[%s1384_s3 + $0x60] sm:$0xff]  ;;  %p875_p3 = por %p874_p2, %p873_p1 }
  0x26   :  { %829 = vmatprep.subr.bf16.mxu1 %v828_v11  ;;  %773 = vmatpush3.bf16.msra.mxu0 %v772_v15  ;;  %v63_v36 = vld [vmem:[%s1384_s3 + $0x68] sm:$0xff]  ;;  %v838_v37 = vpack.c.bf16 %v360_v31, %v359_v30  ;;  %v840_v38 = vpack.c.bf16 %v378_v34, %v377_v32  ;;  %v361_v39 = vld [vmem:[%s1390_s9 + $0x40] sm:$0xff]  ;;  %v379_v41 = vld [vmem:[%s1390_s9 + $0xd0] sm:$0xff] }
  0x27   :  { %774 = vmatprep.subr.bf16.mxu0 %v938_v7  ;;  %v362_v40 = vld [vmem:[%s1390_s9 + $0x48] sm:$0xff]  ;;  %v781_v42 = vpack.c.bf16 %v63_v36, %v62_v35  ;;  %v380_v43 = vld [vmem:[%s1390_s9 + $0xd8] sm:$0xff]  ;;  %v64_v44 = vld [vmem:[%s1384_s3 + $0x70] sm:$0xff]  ;;  %p876_p4 = pnand %p875_p3, %p869_p0 }
  0x28   :  { %v65_v45 = vld [vmem:[%s1384_s3 + $0x78] sm:$0xff]  ;;  %v842_v46 = vpack.c.bf16 %v362_v40, %v361_v39  ;;  %v844_v47 = vpack.c.bf16 %v380_v43, %v379_v41  ;;  %v363_v48 = vld [vmem:[%s1390_s9 + $0x50] sm:$0xff]  ;;  %v381_v50 = vld [vmem:[%s1390_s9 + $0xe0] sm:$0xff] }
  0x29   :  { %831 = vmatpush3.bf16.msra.mxu1 %v830_v19  ;;  %v364_v49 = vld [vmem:[%s1390_s9 + $0x58] sm:$0xff]  ;;  %v784_v51 = vpack.c.bf16 %v65_v45, %v64_v44  ;;  %v382_v52 = vld [vmem:[%s1390_s9 + $0xe8] sm:$0xff]  ;;  %v266_v53 = vld [vmem:[%s1388_s7] sm:$0xff] }
  0x2a   :  { %833 = vmatprep.subr.bf16.mxu1 %v832_v20  ;;  %776 = vmatpush3.bf16.msra.mxu0 %v775_v24  ;;  %v267_v54 = vld [vmem:[%s1388_s7 + $0x8] sm:$0xff]  ;;  %v846_v55 = vpack.c.bf16 %v364_v49, %v363_v48  ;;  %v848_v56 = vpack.c.bf16 %v382_v52, %v381_v50  ;;  %v365_v57 = vld [vmem:[%s1390_s9 + $0x60] sm:$0xff]  ;;  %v383_v61 = vld [vmem:[%s1390_s9 + $0xf0] sm:$0xff] }
  0x2b   :  { %777 = vmatprep.subr.bf16.mxu0 %v938_v7  ;;  %v366_v58 = vld [vmem:[%s1390_s9 + $0x68] sm:$0xff]  ;;  %v49_v59 = vld [vmem:[%s1381_s0] sm:$0x3]  ;;  %v819_v60 = vpack.c.bf16 %v267_v54, %v266_v53  ;;  %v384_v62 = vld [vmem:[%s1390_s9 + $0xf8] sm:$0xff] }
  0x2c   :  { %v850_v63 = vpack.c.bf16 %v366_v58, %v365_v57  ;;  %v852_v0 = vpack.c.bf16 %v384_v62, %v383_v61  ;;  %v367_v1 = vld [vmem:[%s1390_s9 + $0x70] sm:$0xff]  ;;  %v368_v3 = vld [vmem:[%s1390_s9 + $0x78] sm:$0xff]  ;;  %v473_v11 = vld [vmem:[%s1392_s11] sm:$0xff] }
  0x2d   :  { %835 = vmatpush3.bf16.msra.mxu1 %v834_v28  ;;  %v854_v4 = vpack.c.bf16 %v368_v3, %v367_v1  ;;  %v268_v5 = vld [vmem:[%s1388_s7 + $0x10] sm:$0xff]  ;;  %v269_v6 = vld [vmem:[%s1388_s7 + $0x18] sm:$0xff]  ;;  %v600_v12 = vld [vmem:[%s1387_s6] ss:$0 sm:$0xff] }
  0x2e   :  { %837 = vmatprep.subr.bf16.mxu1 %v836_v29  ;;  %779 = vmatpush3.bf16.msra.mxu0 %v778_v33  ;;  %v822_v9 = vpack.c.bf16 %v269_v6, %v268_v5  ;;  %v475_v17 = vld [vmem:[%s1392_s11 + $0x10] sm:$0xff]  ;;  %v476_v18 = vld [vmem:[%s1392_s11 + $0x18] sm:$0xff]  ;;  %v604_v23 = vld [vmem:[%s1391_s10] ss:$0 sm:$0xff] }
  0x2f   :  { %780 = vmatprep.subr.bf16.mxu0 %v938_v7  ;;  %v860_v19 = vpack.c.bf16 %v476_v18, %v475_v17  ;;  %v599_v27 = vld [vmem:[%s1385_s4] ss:$0 sm:$0xff] }
  0x31   :  { %839 = vmatpush3.bf16.msra.mxu1 %v838_v37 }
  0x32   :  { %841 = vmatprep.subr.bf16.mxu1 %v840_v38  ;;  %782 = vmatpush3.bf16.msra.mxu0 %v781_v42 }
  0x33   :  { %783 = vmatprep.subr.bf16.mxu0 %v938_v7 }
  0x35   :  { %843 = vmatpush3.bf16.msra.mxu1 %v842_v46 }
  0x36   :  { %845 = vmatprep.subr.bf16.mxu1 %v844_v47  ;;  %785 = vmatpush3.bf16.msra.mxu0 %v784_v51 }
  0x37   :  { %818 = vmatprep.subr.bf16.mxu0 %v938_v7 }
  0x39   :  { %847 = vmatpush3.bf16.msra.mxu1 %v846_v55  ;;  %738 = vmatmul.mubr.f32.vlgmr.msra.gmra.mrb[0].mxu0 %v49_v59 }
  0x3a   :  { %849 = vmatprep.subr.bf16.mxu1 %v848_v56  ;;  %820 = vmatpush3.bf16.msra.mxu0 %v819_v60 }
  0x3b   :  { %821 = vmatprep.subr.bf16.mxu0 %v938_v7  ;;  %748 = vmatprep.mubr.msk.f32.mxu0 %vm939_vm0, %v940_v8 }
  0x3d   :  { %851 = vmatpush3.bf16.msra.mxu1 %v850_v63 }
  0x3e   :  { %853 = vmatprep.subr.bf16.mxu1 %v852_v0  ;;  %823 = vmatpush3.bf16.msra.mxu0 %v822_v9 }
  0x3f   :  { %856 = vmatprep.subr.bf16.mxu0 %v938_v7 }
  0x41   :  { %855 = vmatpush3.bf16.msra.mxu1 %v854_v4 }
  0x44   :  { %468 = vmatmul.mubr.f32.vlgmr.msra.gmra.mrb[2].mxu1 %v1167_v2  ;;  %v474_v2 = vld [vmem:[%s1392_s11 + $0x8] sm:$0xff] }
  0x45   :  { %v857_v15 = vpack.c.bf16 %v474_v2, %v473_v11 }
  0xf7   :  { %v657_v10 = vpop.f32.mrb[0].mxu1 }
  0xf8   :  { %v658_v13 = vpop.f32.mrb[1].mxu1 }
  0xf9   :  { %v659_v14 = vadd.f32 %v658_v13, %v657_v10 }
  0xfb   :  { %v263_v16 = vadd.f32 %v659_v14, %v600_v12 }
  0xfd   :  { %749 = vmatmul.mubr.msk.f32.vlgmr.msra.gmra.mrb[2].mxu0 %vm277_vm1, %v263_v16 }
  0xfe   :  { %858 = vmatpush3.bf16.msra.mxu0 %v857_v15  ;;  %759 = vmatprep.mubr.msk.f32.mxu0 %vm939_vm0, %v940_v8 }
  0xff   :  { %859 = vmatprep.subr.bf16.mxu0 %v938_v7 }
 0x102   :  { %861 = vmatpush3.bf16.msra.mxu0 %v860_v19 }
 0x10c   :  { %v139_v20 = vpop.f32.mrb[0].mxu0 }
 0x10d   :  { %v739_v21 = vpop.f32.mrb[1].mxu0  ;;  %v140_v8 = vadd.f32 %v599_v27, %v139_v20 }
 0x10f   :  { %144 = vst.msk [vmem:[#allocation2] sm:$0x3] %vm143_vm2, %v140_v8 }
 0x117   :  { %v697_v22 = vpop.f32.mrb[2].mxu1 }
 0x118   :  { %v698_v24 = vpop.f32.mrb[3].mxu1 }
 0x119   :  { %v699_v25 = vadd.f32 %v698_v24, %v697_v22 }
 0x11b   :  { %v470_v26 = vadd.f32 %v699_v25, %v604_v23 }
 0x11d   :  { %760 = vmatmul.mubr.msk.f32.vlgmr.msra.gmra.mrb[4].mxu0 %vm277_vm1, %v470_v26 }
 0x11e   :  { %879 = shalt.err (!%p876_p4)
}
 0x11f   :  { %s880_s0 = scalar_lea.hbm %s1394_s13, 32 }
 0x120   :  { %p881_p5 = scmp.ne.s32.totalorder %s1394_s13, %s880_s0  ;;  %p884_p6 = scmp.lt.u32.totalorder %s880_s0, %s1394_s13 }
 0x122   :  { %p886_p7 = pnand %p884_p6, %p881_p5 }
 0x124   :  { %889 = shalt.err (!%p886_p7)
}
 0x125   :  { %567 = dma.vmem_to_hbm [thread:$0]  %s565_s16, 32, %s1394_s13, [#allocation3]   ;;  %v602_v7 = vld [vmem:[%s1389_s8] ss:$0 sm:$0xff] }
 0x126   :  { %v606_v31 = vld [vmem:[%s1393_s12] ss:$0 sm:$0xff]  ;;  %s942_s23 = smov [#allocation4]   ;;  %s943_s7 = smov [#allocation6]  }
 0x127   :  { %s574_s24 = sshll.u32 %s942_s23, 4  ;;  %s584_s25 = sshll.u32 %s943_s7, 4  ;;  %s575_s24 = int_to_ptr.vmem [resolvable:$true] %s574_s24  ;;  %s585_s25 = int_to_ptr.vmem [resolvable:$true] %s584_s25 }
 0x128   :  { %s890_s8 = scalar_lea.vmem %s575_s24, 32  ;;  %p895_p9 = scmp.lt.s32.totalorder %s575_s24, %s575_s24 }
 0x129   :  { %p891_p8 = scmp.ne.s32.totalorder %s575_s24, %s890_s8  ;;  %p896_p10 = scmp.lt.s32.totalorder %s890_s8, %s890_s8 }
 0x12b   :  { %p897_p11 = por %p896_p10, %p895_p9 }
 0x12d   :  { %p898_p12 = pnand %p897_p11, %p891_p8 }
 0x1d0   :  { %v347_v28 = vpop.f32.mrb[2].mxu0 }
 0x1d1   :  { %v348_v29 = vadd.f32 %v602_v7, %v347_v28  ;;  %v750_v30 = vpop.f32.mrb[3].mxu0 }
 0x1d3   :  { %351 = vst.msk [vmem:[#allocation6] sm:$0x3] %vm143_vm2, %v348_v29 }
 0x1f0   :  { %v553_v32 = vpop.f32.mrb[4].mxu0 }
 0x1f1   :  { %v554_v33 = vadd.f32 %v606_v31, %v553_v32  ;;  %v761_v34 = vpop.f32.mrb[5].mxu0 }
 0x1f3   :  { %557 = vst.msk [vmem:[#allocation4] sm:$0x3] %vm143_vm2, %v554_v33 }
 0x1f4   :  { %901 = shalt.err (!%p898_p12)
}
 0x1f5   :  { %s902_s26 = scalar_lea.hbm %s1395_s14, 32 }
 0x1f6   :  { %p903_p13 = scmp.ne.s32.totalorder %s1395_s14, %s902_s26  ;;  %p906_p0 = scmp.lt.u32.totalorder %s902_s26, %s1395_s14 }
 0x1f8   :  { %p908_p1 = pnand %p906_p0, %p903_p13 }
 0x1fa   :  { %911 = shalt.err (!%p908_p1)
}
 0x1fb   :  { %577 = dma.vmem_to_hbm [thread:$0]  %s575_s24, 32, %s1395_s14, [#allocation5]  }
 0x1fc   :  { %s912_s16 = scalar_lea.vmem %s585_s25, 32  ;;  %p917_p3 = scmp.lt.s32.totalorder %s585_s25, %s585_s25 }
 0x1fd   :  { %p913_p2 = scmp.ne.s32.totalorder %s585_s25, %s912_s16  ;;  %p918_p4 = scmp.lt.s32.totalorder %s912_s16, %s912_s16 }
 0x1ff   :  { %p919_p5 = por %p918_p4, %p917_p3 }
 0x201   :  { %p920_p6 = pnand %p919_p5, %p913_p2 }
 0x203   :  { %923 = shalt.err (!%p920_p6)
}
 0x204   :  { %s924_s17 = scalar_lea.hbm %s1396_s15, 32 }
 0x205   :  { %p925_p7 = scmp.ne.s32.totalorder %s1396_s15, %s924_s17  ;;  %p928_p8 = scmp.lt.u32.totalorder %s924_s17, %s1396_s15 }
 0x207   :  { %p930_p9 = pnand %p928_p8, %p925_p7 }
 0x209   :  { %933 = shalt.err (!%p930_p9)
}
 0x20a   :  { %587 = dma.vmem_to_hbm [thread:$0]  %s585_s25, 32, %s1396_s15, [#allocation5]  }
 0x20b   :  { %934 = dma.done.wait [#allocation3], 32  }
 0x20c   :  { %935 = vsyncadd [#allocation3], 4294967264 }
 0x20d   :  { %936 = dma.done.wait [#allocation5], 64  }
 0x20e   :  { %937 = vsyncadd [#allocation5], 4294967232 }
 0x20f   :  { %597 = vsyncpa [#allocation3], 1 }
 0x210   :  { %598 = vsyncpa [#allocation5], 1 }

</bundles_post_ra>
